<compile_context>
chip_gen: v7x
topology: tpu7x:2x2x1
jax: 0.10.0
libtpu: 0.0.40
codegen_flags: <defaults>
</compile_context>

<pallas_src>
import functools

import jax
import jax.numpy as jnp
from jax.experimental import pallas as pl
from jax.experimental.pallas import tpu as pltpu


# ----------------------------------------------------------------------------
# Fused kernel: all layers + both directions + head in one pallas_call.
#
# Packed-weight layout (built host-side in plain JAX):
#   * gate columns (width 8H):  [i_f|i_r | f_f|f_r | g_f|g_r | o_f|o_r], each H
#   * w_hh  (2H, 8H): rows 0:H -> fwd W_hh^T (fwd cols), rows H:2H -> rev cols
#   * w_in  (2*Fpad, 8H):
#       layer 0   : rows 0:in_size  -> fwd W_ih^T, rows Fpad:+in_size -> rev
#                   (slab row t = [x[t] | pad | x[T-1-t] | pad])
#       layer >= 1: rows permuted to the h-slab layout described above.
# ----------------------------------------------------------------------------
def _fused_bilstm_kernel(bn_ref, xcat0_ref, w_in_ref, w_hh_ref, b_ref,
                         fc_w_ref, fc_b_ref, out_ref, xcat_ref, ig_ref,
                         *, T, Bp, H, Fpad, num_layers):
    two_h = 2 * H

    # Layer-0 combined input slab: row-block t = [x[t] | pad | x[T-1-t] | pad].
    xcat_ref[...] = xcat0_ref[...]

    for layer in range(num_layers):                       # static unroll
        # Whole-sequence, both-direction input contribution (+ bias):
        # ONE MXU matmul over the full (T*Bp, 2*Fpad) activation slab.
        ig_ref[...] = (jnp.dot(xcat_ref[...], w_in_ref[layer],
                               preferred_element_type=jnp.float32)
                       + b_ref[layer])
        w_hh = w_hh_ref[layer]                            # (2H, 8H) block-diag

        h_cat = jnp.zeros((Bp, two_h), jnp.float32)       # [h_fwd | h_rev]
        c_cat = jnp.zeros((Bp, two_h), jnp.float32)       # [c_fwd | c_rev]

        # Static in-kernel time loop: fwd processes t=s, rev processes t=T-1-s.
        for s in range(T):
            r = T - 1 - s
            gates = (ig_ref[s * Bp:(s + 1) * Bp, :]
                     + jnp.dot(h_cat, w_hh, preferred_element_type=jnp.float32))
            i = jax.nn.sigmoid(gates[:, 0 * two_h:1 * two_h])
            f = jax.nn.sigmoid(gates[:, 1 * two_h:2 * two_h])
            g = jnp.tanh(gates[:, 2 * two_h:3 * two_h])
            o = jax.nn.sigmoid(gates[:, 3 * two_h:4 * two_h])
            c_cat = f * c_cat + i * g
            h_cat = o * jnp.tanh(c_cat)
            # Next-layer slab row t = [h_f[t] | h_r[T-1-t] | h_f[T-1-t] | h_r[t]]
            # -> both scatters are contiguous 2H-wide copies of h_cat.
            xcat_ref[s * Bp:(s + 1) * Bp, 0:two_h] = h_cat
            xcat_ref[r * Bp:(r + 1) * Bp, two_h:2 * two_h] = h_cat

    # Head: BN affine (eval mode, channel = last time step) + ReLU + Linear.
    # Junk columns (H:3H) of the last row-block hit zero fc rows -> no effect.
    last = xcat_ref[(T - 1) * Bp:T * Bp, 0:2 * two_h]     # (Bp, 4H)
    y = jnp.maximum(last * bn_ref[0] + bn_ref[1], 0.0)
    out_ref[...] = (jnp.dot(y, fc_w_ref[...], preferred_element_type=jnp.float32)
                    + fc_b_ref[...]).astype(out_ref.dtype)


# ----------------------------------------------------------------------------
# Host-side parameter packing (plain-JAX glue, runs once).
# ----------------------------------------------------------------------------
def _pack_layer(p_fwd, p_rev, layer, in_size, Fpad, H):
    w_in = jnp.zeros((2 * Fpad, 8 * H), jnp.float32)
    w_hh = jnp.zeros((2 * H, 8 * H), jnp.float32)
    bias = jnp.zeros((8 * H,), jnp.float32)
    for g in range(4):                                    # gate order i, f, g, o
        col_f = slice(2 * g * H, (2 * g + 1) * H)
        col_r = slice((2 * g + 1) * H, (2 * g + 2) * H)
        row_g = slice(g * H, (g + 1) * H)
        wih_f = p_fwd["w_ih"][row_g, :]                   # (H, in_f)
        wih_r = p_rev["w_ih"][row_g, :]
        if layer == 0:
            # slab row t = [x[t] | pad | x[T-1-t] | pad]
            w_in = w_in.at[0:in_size, col_f].set(wih_f.T)
            w_in = w_in.at[Fpad:Fpad + in_size, col_r].set(wih_r.T)
        else:
            # slab row t = [h_f[t] | h_r[T-1-t] | h_f[T-1-t] | h_r[t] | ...]
            w_in = w_in.at[0:H, col_f].set(wih_f[:, 0:H].T)
            w_in = w_in.at[3 * H:4 * H, col_f].set(wih_f[:, H:2 * H].T)
            w_in = w_in.at[2 * H:3 * H, col_r].set(wih_r[:, 0:H].T)
            w_in = w_in.at[H:2 * H, col_r].set(wih_r[:, H:2 * H].T)
        w_hh = w_hh.at[0:H, col_f].set(p_fwd["w_hh"][row_g, :].T)
        w_hh = w_hh.at[H:2 * H, col_r].set(p_rev["w_hh"][row_g, :].T)
        bias = bias.at[col_f].set(p_fwd["b_ih"][row_g] + p_fwd["b_hh"][row_g])
        bias = bias.at[col_r].set(p_rev["b_ih"][row_g] + p_rev["b_hh"][row_g])
    return w_in, w_hh, bias.reshape(1, 8 * H)


# ----------------------------------------------------------------------------
# Full forward (one pallas_call)
# ----------------------------------------------------------------------------
def bilstm_forward(params, x, *, hidden, num_layers):
    B, T, in_size = x.shape
    H = hidden
    Fpad = max(in_size, 2 * H)
    Bp = ((B + 7) // 8) * 8                               # sublane-aligned batch

    # Time-major, batch-/feature-padded input; build [x[t] | x[T-1-t]] slab.
    x_tm = jnp.transpose(x, (1, 0, 2)).astype(jnp.float32)            # (T, B, in)
    x_tm = jnp.pad(x_tm, ((0, 0), (0, Bp - B), (0, Fpad - in_size)))  # (T, Bp, Fpad)
    xcat0 = jnp.concatenate([x_tm, x_tm[::-1]], axis=-1)              # (T, Bp, 2Fpad)
    xcat0 = xcat0.reshape(T * Bp, 2 * Fpad)

    w_in_l, w_hh_l, b_l = [], [], []
    for layer in range(num_layers):
        w_in, w_hh, b = _pack_layer(params["lstm"][(layer, 0)],
                                    params["lstm"][(layer, 1)],
                                    layer, in_size, Fpad, H)
        w_in_l.append(w_in)
        w_hh_l.append(w_hh)
        b_l.append(b)
    w_in_all = jnp.stack(w_in_l)                                      # (L, 2Fpad, 8H)
    w_hh_all = jnp.stack(w_hh_l)                                      # (L, 2H, 8H)
    b_all = jnp.stack(b_l)                                            # (L, 1, 8H)

    # BatchNorm1d(T) eval mode folded to a scale/shift of the last channel.
    bn = params["bn"]
    eps = 1e-5
    scale = bn["gamma"][T - 1] / jnp.sqrt(bn["running_var"][T - 1] + eps)
    shift = bn["beta"][T - 1] - bn["running_mean"][T - 1] * scale
    bn_params = jnp.stack([scale, shift]).astype(jnp.float32)         # (2,)

    # FC packed to the slab layout of the last row-block: rows 0:H -> h_fwd
    # features, rows 3H:4H -> h_rev features, rows H:3H zero (junk columns).
    fc_wT = jnp.transpose(params["fc"]["w"]).astype(jnp.float32)      # (2H, C)
    C = fc_wT.shape[1]
    fc_w = jnp.zeros((4 * H, C), jnp.float32)
    fc_w = fc_w.at[0:H, :].set(fc_wT[0:H, :])
    fc_w = fc_w.at[3 * H:4 * H, :].set(fc_wT[H:2 * H, :])
    fc_b = params["fc"]["b"].reshape(1, -1).astype(jnp.float32)       # (1, C)

    kernel = functools.partial(_fused_bilstm_kernel, T=T, Bp=Bp, H=H, Fpad=Fpad,
                               num_layers=num_layers)
    vmem = pltpu.MemorySpace.VMEM
    out = pl.pallas_call(
        kernel,
        out_shape=jax.ShapeDtypeStruct((Bp, C), jnp.float32),
        in_specs=[pl.BlockSpec(memory_space=pltpu.MemorySpace.SMEM),  # bn scalars
                  pl.BlockSpec(memory_space=vmem),                    # xcat0
                  pl.BlockSpec(memory_space=vmem),                    # w_in_all
                  pl.BlockSpec(memory_space=vmem),                    # w_hh_all
                  pl.BlockSpec(memory_space=vmem),                    # b_all
                  pl.BlockSpec(memory_space=vmem),                    # fc_w
                  pl.BlockSpec(memory_space=vmem)],                   # fc_b
        out_specs=pl.BlockSpec(memory_space=vmem),
        scratch_shapes=[pltpu.VMEM((T * Bp, 2 * Fpad), jnp.float32),  # activation slab
                        pltpu.VMEM((T * Bp, 8 * H), jnp.float32)],    # input-gate slab
    )(bn_params, xcat0, w_in_all, w_hh_all, b_all, fc_w, fc_b)
    return out[:B]


# ----------------------------------------------------------------------------
# Pure-JAX reference (for correctness check)
# ----------------------------------------------------------------------------
def _ref_lstm_dir(x_tbf, w_ih, w_hh, b_ih, b_hh, hidden, reverse):
    T, B, _ = x_tbf.shape
    xs = x_tbf[::-1] if reverse else x_tbf

    def step(carry, x_t):
        hh, cc = carry
        gates = x_t @ w_ih.T + hh @ w_hh.T + b_ih + b_hh
        i = jax.nn.sigmoid(gates[:, :hidden])
        f = jax.nn.sigmoid(gates[:, hidden:2 * hidden])
        g = jnp.tanh(gates[:, 2 * hidden:3 * hidden])
        o = jax.nn.sigmoid(gates[:, 3 * hidden:])
        cc = f * cc + i * g
        hh = o * jnp.tanh(cc)
        return (hh, cc), hh

    init = (jnp.zeros((B, hidden), jnp.float32), jnp.zeros((B, hidden), jnp.float32))
    _, ys = jax.lax.scan(step, init, xs)
    return ys[::-1] if reverse else ys


def bilstm_forward_ref(params, x, *, hidden, num_layers):
    B, T, _ = x.shape
    h = jnp.transpose(x, (1, 0, 2)).astype(jnp.float32)
    for layer in range(num_layers):
        outs = []
        for d, rev in enumerate((False, True)):
            p = params["lstm"][(layer, d)]
            outs.append(_ref_lstm_dir(h, p["w_ih"], p["w_hh"],
                                      p["b_ih"], p["b_hh"], hidden, rev))
        h = jnp.concatenate(outs, axis=-1)
    last = h[T - 1]
    bn = params["bn"]
    eps = 1e-5
    scale = bn["gamma"][T - 1] / jnp.sqrt(bn["running_var"][T - 1] + eps)
    shift = bn["beta"][T - 1] - bn["running_mean"][T - 1] * scale
    y = jnp.maximum(last * scale + shift, 0.0)
    return y @ params["fc"]["w"].T + params["fc"]["b"]


# ----------------------------------------------------------------------------
# Deterministic parameter init (shapes follow the PyTorch module __init__)
# ----------------------------------------------------------------------------
def init_params(key, input_size, hidden, num_layers, num_classes, seq_len):
    lstm = {}
    k = float(1.0 / hidden ** 0.5)
    for layer in range(num_layers):
        in_f = input_size if layer == 0 else 2 * hidden
        for d in range(2):
            key, k1, k2, k3, k4 = jax.random.split(key, 5)
            lstm[(layer, d)] = dict(
                w_ih=jax.random.uniform(k1, (4 * hidden, in_f), jnp.float32, -k, k),
                w_hh=jax.random.uniform(k2, (4 * hidden, hidden), jnp.float32, -k, k),
                b_ih=jax.random.uniform(k3, (4 * hidden,), jnp.float32, -k, k),
                b_hh=jax.random.uniform(k4, (4 * hidden,), jnp.float32, -k, k),
            )
    key, kg, kb, km, kv, kw, kbias = jax.random.split(key, 7)
    # Synthetic (non-trivial) BN affine + running stats so the BN math is exercised.
    bn = dict(
        gamma=1.0 + 0.1 * jax.random.normal(kg, (seq_len,), jnp.float32),
        beta=0.1 * jax.random.normal(kb, (seq_len,), jnp.float32),
        running_mean=0.1 * jax.random.normal(km, (seq_len,), jnp.float32),
        running_var=1.0 + 0.1 * jax.random.uniform(kv, (seq_len,), jnp.float32),
    )
    kf = float(1.0 / (2 * hidden) ** 0.5)
    fc = dict(
        w=jax.random.uniform(kw, (num_classes, 2 * hidden), jnp.float32, -kf, kf),
        b=jax.random.uniform(kbias, (num_classes,), jnp.float32, -kf, kf),
    )
    return dict(lstm=lstm, bn=bn, fc=fc)


if __name__ == "__main__":
    B = 4
    T = 10                 # BatchNorm1d(10) ties the sequence length to 10
    INPUT_SIZE = 16
    HIDDEN = 32
    NUM_LAYERS = 2
    NUM_CLASSES = 5

    root = jax.random.PRNGKey(0)
    kx, kp = jax.random.split(root)
    x = jax.random.normal(kx, (B, T, INPUT_SIZE), jnp.float32)
    params = init_params(kp, INPUT_SIZE, HIDDEN, NUM_LAYERS, NUM_CLASSES, T)

    out = bilstm_forward(params, x, hidden=HIDDEN, num_layers=NUM_LAYERS)
    out = jax.block_until_ready(out)

    ref = jax.block_until_ready(
        bilstm_forward_ref(params, x, hidden=HIDDEN, num_layers=NUM_LAYERS))

    assert out.shape == (B, NUM_CLASSES), out.shape
    assert jnp.allclose(out, ref, rtol=1e-4, atol=1e-4), (
        f"max abs diff = {float(jnp.max(jnp.abs(out - ref)))}")

    print("KERNEL_OK")
</pallas_src>

<mosaic_0001>
module attributes {stable_mosaic.version = 11 : i64} {
  func.func @_fused_bilstm_kernel(%arg0: memref<2xf32, #tpu.memory_space<smem>>, %arg1: memref<80x128xf32, #tpu.memory_space<vmem>>, %arg2: memref<2x128x256xf32, #tpu.memory_space<vmem>>, %arg3: memref<2x64x256xf32, #tpu.memory_space<vmem>>, %arg4: memref<2x1x256xf32, #tpu.memory_space<vmem>>, %arg5: memref<128x5xf32, #tpu.memory_space<vmem>>, %arg6: memref<1x5xf32, #tpu.memory_space<vmem>>, %arg7: memref<8x5xf32, #tpu.memory_space<vmem>>, %arg8: memref<80x128xf32, #tpu.memory_space<vmem>>, %arg9: memref<80x256xf32, #tpu.memory_space<vmem>>) attributes {dimension_semantics = [], scalar_prefetch = 0 : i64, scratch_operands = 2 : i64, tpu.core_type = #tpu.core_type<tc>} {
    %c0 = arith.constant 0 : index
    %c0_0 = arith.constant 0 : index
    %0 = vector.load %arg1[%c0, %c0_0] : memref<80x128xf32, #tpu.memory_space<vmem>>, vector<80x128xf32>
    %c0_1 = arith.constant 0 : index
    %c0_2 = arith.constant 0 : index
    %1 = vector.load %arg8[%c0_1, %c0_2] : memref<80x128xf32, #tpu.memory_space<vmem>>, vector<80x128xf32>
    tpu.vector_store %arg8[%c0_1, %c0_2], %0 {strides = array<i32>} : memref<80x128xf32, #tpu.memory_space<vmem>>, vector<80x128xf32>,
    %c0_3 = arith.constant 0 : index
    %c0_4 = arith.constant 0 : index
    %2 = vector.load %arg8[%c0_3, %c0_4] : memref<80x128xf32, #tpu.memory_space<vmem>>, vector<80x128xf32>
    %c0_5 = arith.constant 0 : index
    %c0_6 = arith.constant 0 : index
    %c0_7 = arith.constant 0 : index
    %3 = vector.load %arg2[%c0_5, %c0_6, %c0_7] : memref<2x128x256xf32, #tpu.memory_space<vmem>>, vector<1x128x256xf32>
    %4 = vector.shape_cast %3 : vector<1x128x256xf32> to vector<128x256xf32>
    %cst = arith.constant dense<0.000000e+00> : vector<80x256xf32>
    %5 = tpu.matmul %2, %4, %cst {dimension_numbers = #tpu.dot_dimension_numbers<[1], [0], [0], [1], [0, 0, 1, 1], [], []>} : vector<80x128xf32>, vector<128x256xf32>, vector<80x256xf32> -> vector<80x256xf32>
    %c0_8 = arith.constant 0 : index
    %c0_9 = arith.constant 0 : index
    %c0_10 = arith.constant 0 : index
    %6 = vector.load %arg4[%c0_8, %c0_9, %c0_10] : memref<2x1x256xf32, #tpu.memory_space<vmem>>, vector<1x1x256xf32>
    %7 = vector.shape_cast %6 : vector<1x1x256xf32> to vector<1x256xf32>
    %8 = vector.broadcast %7 : vector<1x256xf32> to vector<80x256xf32>
    %9 = arith.addf %5, %8 : vector<80x256xf32>
    %c0_11 = arith.constant 0 : index
    %c0_12 = arith.constant 0 : index
    %10 = vector.load %arg9[%c0_11, %c0_12] : memref<80x256xf32, #tpu.memory_space<vmem>>, vector<80x256xf32>
    tpu.vector_store %arg9[%c0_11, %c0_12], %9 {strides = array<i32>} : memref<80x256xf32, #tpu.memory_space<vmem>>, vector<80x256xf32>,
    %c0_13 = arith.constant 0 : index
    %c0_14 = arith.constant 0 : index
    %c0_15 = arith.constant 0 : index
    %11 = vector.load %arg3[%c0_13, %c0_14, %c0_15] : memref<2x64x256xf32, #tpu.memory_space<vmem>>, vector<1x64x256xf32>
    %12 = vector.shape_cast %11 : vector<1x64x256xf32> to vector<64x256xf32>
    %cst_16 = arith.constant 0.000000e+00 : f32
    %13 = vector.broadcast %cst_16 : f32 to vector<8x64xf32>
    %cst_17 = arith.constant 0.000000e+00 : f32
    %14 = vector.broadcast %cst_17 : f32 to vector<8x64xf32>
    %c0_18 = arith.constant 0 : index
    %c0_19 = arith.constant 0 : index
    %15 = vector.load %arg9[%c0_18, %c0_19] : memref<80x256xf32, #tpu.memory_space<vmem>>, vector<8x256xf32>
    %cst_20 = arith.constant dense<0.000000e+00> : vector<8x256xf32>
    %16 = tpu.matmul %13, %12, %cst_20 {dimension_numbers = #tpu.dot_dimension_numbers<[1], [0], [0], [1], [0, 0, 1, 1], [], []>} : vector<8x64xf32>, vector<64x256xf32>, vector<8x256xf32> -> vector<8x256xf32>
    %17 = arith.addf %15, %16 : vector<8x256xf32>
    %18 = vector.extract_strided_slice %17 {offsets = [0, 0], sizes = [8, 64], strides = [1, 1]} : vector<8x256xf32> to vector<8x64xf32>
    %19 = arith.negf %18 : vector<8x64xf32>
    %20 = math.exp %19 : vector<8x64xf32>
    %cst_21 = arith.constant 1.000000e+00 : f32
    %21 = vector.broadcast %cst_21 : f32 to vector<8x64xf32>
    %22 = arith.addf %21, %20 : vector<8x64xf32>
    %23 = arith.divf %21, %22 : vector<8x64xf32>
    %24 = vector.extract_strided_slice %17 {offsets = [0, 64], sizes = [8, 64], strides = [1, 1]} : vector<8x256xf32> to vector<8x64xf32>
    %25 = arith.negf %24 : vector<8x64xf32>
    %26 = math.exp %25 : vector<8x64xf32>
    %cst_22 = arith.constant 1.000000e+00 : f32
    %27 = vector.broadcast %cst_22 : f32 to vector<8x64xf32>
    %28 = arith.addf %27, %26 : vector<8x64xf32>
    %29 = arith.divf %27, %28 : vector<8x64xf32>
    %30 = vector.extract_strided_slice %17 {offsets = [0, 128], sizes = [8, 64], strides = [1, 1]} : vector<8x256xf32> to vector<8x64xf32>
    %31 = math.tanh %30 : vector<8x64xf32>
    %32 = vector.extract_strided_slice %17 {offsets = [0, 192], sizes = [8, 64], strides = [1, 1]} : vector<8x256xf32> to vector<8x64xf32>
    %33 = arith.negf %32 : vector<8x64xf32>
    %34 = math.exp %33 : vector<8x64xf32>
    %cst_23 = arith.constant 1.000000e+00 : f32
    %35 = vector.broadcast %cst_23 : f32 to vector<8x64xf32>
    %36 = arith.addf %35, %34 : vector<8x64xf32>
    %37 = arith.divf %35, %36 : vector<8x64xf32>
    %38 = arith.mulf %29, %14 : vector<8x64xf32>
    %39 = arith.mulf %23, %31 : vector<8x64xf32>
    %40 = arith.addf %38, %39 : vector<8x64xf32>
    %41 = math.tanh %40 : vector<8x64xf32>
    %42 = arith.mulf %37, %41 : vector<8x64xf32>
    %c0_24 = arith.constant 0 : index
    %c0_25 = arith.constant 0 : index
    %43 = vector.load %arg8[%c0_24, %c0_25] : memref<80x128xf32, #tpu.memory_space<vmem>>, vector<8x64xf32>
    tpu.vector_store %arg8[%c0_24, %c0_25], %42 {strides = array<i32>} : memref<80x128xf32, #tpu.memory_space<vmem>>, vector<8x64xf32>,
    %c72 = arith.constant 72 : index
    %c64 = arith.constant 64 : index
    %44 = vector.load %arg8[%c72, %c64] : memref<80x128xf32, #tpu.memory_space<vmem>>, vector<8x64xf32>
    tpu.vector_store %arg8[%c72, %c64], %42 {strides = array<i32>} : memref<80x128xf32, #tpu.memory_space<vmem>>, vector<8x64xf32>,
    %c8 = arith.constant 8 : index
    %c0_26 = arith.constant 0 : index
    %45 = vector.load %arg9[%c8, %c0_26] : memref<80x256xf32, #tpu.memory_space<vmem>>, vector<8x256xf32>
    %cst_27 = arith.constant dense<0.000000e+00> : vector<8x256xf32>
    %46 = tpu.matmul %42, %12, %cst_27 {dimension_numbers = #tpu.dot_dimension_numbers<[1], [0], [0], [1], [0, 0, 1, 1], [], []>} : vector<8x64xf32>, vector<64x256xf32>, vector<8x256xf32> -> vector<8x256xf32>
    %47 = arith.addf %45, %46 : vector<8x256xf32>
    %48 = vector.extract_strided_slice %47 {offsets = [0, 0], sizes = [8, 64], strides = [1, 1]} : vector<8x256xf32> to vector<8x64xf32>
    %49 = arith.negf %48 : vector<8x64xf32>
    %50 = math.exp %49 : vector<8x64xf32>
    %cst_28 = arith.constant 1.000000e+00 : f32
    %51 = vector.broadcast %cst_28 : f32 to vector<8x64xf32>
    %52 = arith.addf %51, %50 : vector<8x64xf32>
    %53 = arith.divf %51, %52 : vector<8x64xf32>
    %54 = vector.extract_strided_slice %47 {offsets = [0, 64], sizes = [8, 64], strides = [1, 1]} : vector<8x256xf32> to vector<8x64xf32>
    %55 = arith.negf %54 : vector<8x64xf32>
    %56 = math.exp %55 : vector<8x64xf32>
    %cst_29 = arith.constant 1.000000e+00 : f32
    %57 = vector.broadcast %cst_29 : f32 to vector<8x64xf32>
    %58 = arith.addf %57, %56 : vector<8x64xf32>
    %59 = arith.divf %57, %58 : vector<8x64xf32>
    %60 = vector.extract_strided_slice %47 {offsets = [0, 128], sizes = [8, 64], strides = [1, 1]} : vector<8x256xf32> to vector<8x64xf32>
    %61 = math.tanh %60 : vector<8x64xf32>
    %62 = vector.extract_strided_slice %47 {offsets = [0, 192], sizes = [8, 64], strides = [1, 1]} : vector<8x256xf32> to vector<8x64xf32>
    %63 = arith.negf %62 : vector<8x64xf32>
    %64 = math.exp %63 : vector<8x64xf32>
    %cst_30 = arith.constant 1.000000e+00 : f32
    %65 = vector.broadcast %cst_30 : f32 to vector<8x64xf32>
    %66 = arith.addf %65, %64 : vector<8x64xf32>
    %67 = arith.divf %65, %66 : vector<8x64xf32>
    %68 = arith.mulf %59, %40 : vector<8x64xf32>
    %69 = arith.mulf %53, %61 : vector<8x64xf32>
    %70 = arith.addf %68, %69 : vector<8x64xf32>
    %71 = math.tanh %70 : vector<8x64xf32>
    %72 = arith.mulf %67, %71 : vector<8x64xf32>
    %c8_31 = arith.constant 8 : index
    %c0_32 = arith.constant 0 : index
    %73 = vector.load %arg8[%c8_31, %c0_32] : memref<80x128xf32, #tpu.memory_space<vmem>>, vector<8x64xf32>
    tpu.vector_store %arg8[%c8_31, %c0_32], %72 {strides = array<i32>} : memref<80x128xf32, #tpu.memory_space<vmem>>, vector<8x64xf32>,
    %c64_33 = arith.constant 64 : index
    %c64_34 = arith.constant 64 : index
    %74 = vector.load %arg8[%c64_33, %c64_34] : memref<80x128xf32, #tpu.memory_space<vmem>>, vector<8x64xf32>
    tpu.vector_store %arg8[%c64_33, %c64_34], %72 {strides = array<i32>} : memref<80x128xf32, #tpu.memory_space<vmem>>, vector<8x64xf32>,
    %c16 = arith.constant 16 : index
    %c0_35 = arith.constant 0 : index
    %75 = vector.load %arg9[%c16, %c0_35] : memref<80x256xf32, #tpu.memory_space<vmem>>, vector<8x256xf32>
    %cst_36 = arith.constant dense<0.000000e+00> : vector<8x256xf32>
    %76 = tpu.matmul %72, %12, %cst_36 {dimension_numbers = #tpu.dot_dimension_numbers<[1], [0], [0], [1], [0, 0, 1, 1], [], []>} : vector<8x64xf32>, vector<64x256xf32>, vector<8x256xf32> -> vector<8x256xf32>
    %77 = arith.addf %75, %76 : vector<8x256xf32>
    %78 = vector.extract_strided_slice %77 {offsets = [0, 0], sizes = [8, 64], strides = [1, 1]} : vector<8x256xf32> to vector<8x64xf32>
    %79 = arith.negf %78 : vector<8x64xf32>
    %80 = math.exp %79 : vector<8x64xf32>
    %cst_37 = arith.constant 1.000000e+00 : f32
    %81 = vector.broadcast %cst_37 : f32 to vector<8x64xf32>
    %82 = arith.addf %81, %80 : vector<8x64xf32>
    %83 = arith.divf %81, %82 : vector<8x64xf32>
    %84 = vector.extract_strided_slice %77 {offsets = [0, 64], sizes = [8, 64], strides = [1, 1]} : vector<8x256xf32> to vector<8x64xf32>
    %85 = arith.negf %84 : vector<8x64xf32>
    %86 = math.exp %85 : vector<8x64xf32>
    %cst_38 = arith.constant 1.000000e+00 : f32
    %87 = vector.broadcast %cst_38 : f32 to vector<8x64xf32>
    %88 = arith.addf %87, %86 : vector<8x64xf32>
    %89 = arith.divf %87, %88 : vector<8x64xf32>
    %90 = vector.extract_strided_slice %77 {offsets = [0, 128], sizes = [8, 64], strides = [1, 1]} : vector<8x256xf32> to vector<8x64xf32>
    %91 = math.tanh %90 : vector<8x64xf32>
    %92 = vector.extract_strided_slice %77 {offsets = [0, 192], sizes = [8, 64], strides = [1, 1]} : vector<8x256xf32> to vector<8x64xf32>
    %93 = arith.negf %92 : vector<8x64xf32>
    %94 = math.exp %93 : vector<8x64xf32>
    %cst_39 = arith.constant 1.000000e+00 : f32
    %95 = vector.broadcast %cst_39 : f32 to vector<8x64xf32>
    %96 = arith.addf %95, %94 : vector<8x64xf32>
    %97 = arith.divf %95, %96 : vector<8x64xf32>
    %98 = arith.mulf %89, %70 : vector<8x64xf32>
    %99 = arith.mulf %83, %91 : vector<8x64xf32>
    %100 = arith.addf %98, %99 : vector<8x64xf32>
    %101 = math.tanh %100 : vector<8x64xf32>
    %102 = arith.mulf %97, %101 : vector<8x64xf32>
    %c16_40 = arith.constant 16 : index
    %c0_41 = arith.constant 0 : index
    %103 = vector.load %arg8[%c16_40, %c0_41] : memref<80x128xf32, #tpu.memory_space<vmem>>, vector<8x64xf32>
    tpu.vector_store %arg8[%c16_40, %c0_41], %102 {strides = array<i32>} : memref<80x128xf32, #tpu.memory_space<vmem>>, vector<8x64xf32>,
    %c56 = arith.constant 56 : index
    %c64_42 = arith.constant 64 : index
    %104 = vector.load %arg8[%c56, %c64_42] : memref<80x128xf32, #tpu.memory_space<vmem>>, vector<8x64xf32>
    tpu.vector_store %arg8[%c56, %c64_42], %102 {strides = array<i32>} : memref<80x128xf32, #tpu.memory_space<vmem>>, vector<8x64xf32>,
    %c24 = arith.constant 24 : index
    %c0_43 = arith.constant 0 : index
    %105 = vector.load %arg9[%c24, %c0_43] : memref<80x256xf32, #tpu.memory_space<vmem>>, vector<8x256xf32>
    %cst_44 = arith.constant dense<0.000000e+00> : vector<8x256xf32>
    %106 = tpu.matmul %102, %12, %cst_44 {dimension_numbers = #tpu.dot_dimension_numbers<[1], [0], [0], [1], [0, 0, 1, 1], [], []>} : vector<8x64xf32>, vector<64x256xf32>, vector<8x256xf32> -> vector<8x256xf32>
    %107 = arith.addf %105, %106 : vector<8x256xf32>
    %108 = vector.extract_strided_slice %107 {offsets = [0, 0], sizes = [8, 64], strides = [1, 1]} : vector<8x256xf32> to vector<8x64xf32>
    %109 = arith.negf %108 : vector<8x64xf32>
    %110 = math.exp %109 : vector<8x64xf32>
    %cst_45 = arith.constant 1.000000e+00 : f32
    %111 = vector.broadcast %cst_45 : f32 to vector<8x64xf32>
    %112 = arith.addf %111, %110 : vector<8x64xf32>
    %113 = arith.divf %111, %112 : vector<8x64xf32>
    %114 = vector.extract_strided_slice %107 {offsets = [0, 64], sizes = [8, 64], strides = [1, 1]} : vector<8x256xf32> to vector<8x64xf32>
    %115 = arith.negf %114 : vector<8x64xf32>
    %116 = math.exp %115 : vector<8x64xf32>
    %cst_46 = arith.constant 1.000000e+00 : f32
    %117 = vector.broadcast %cst_46 : f32 to vector<8x64xf32>
    %118 = arith.addf %117, %116 : vector<8x64xf32>
    %119 = arith.divf %117, %118 : vector<8x64xf32>
    %120 = vector.extract_strided_slice %107 {offsets = [0, 128], sizes = [8, 64], strides = [1, 1]} : vector<8x256xf32> to vector<8x64xf32>
    %121 = math.tanh %120 : vector<8x64xf32>
    %122 = vector.extract_strided_slice %107 {offsets = [0, 192], sizes = [8, 64], strides = [1, 1]} : vector<8x256xf32> to vector<8x64xf32>
    %123 = arith.negf %122 : vector<8x64xf32>
    %124 = math.exp %123 : vector<8x64xf32>
    %cst_47 = arith.constant 1.000000e+00 : f32
    %125 = vector.broadcast %cst_47 : f32 to vector<8x64xf32>
    %126 = arith.addf %125, %124 : vector<8x64xf32>
    %127 = arith.divf %125, %126 : vector<8x64xf32>
    %128 = arith.mulf %119, %100 : vector<8x64xf32>
    %129 = arith.mulf %113, %121 : vector<8x64xf32>
    %130 = arith.addf %128, %129 : vector<8x64xf32>
    %131 = math.tanh %130 : vector<8x64xf32>
    %132 = arith.mulf %127, %131 : vector<8x64xf32>
    %c24_48 = arith.constant 24 : index
    %c0_49 = arith.constant 0 : index
    %133 = vector.load %arg8[%c24_48, %c0_49] : memref<80x128xf32, #tpu.memory_space<vmem>>, vector<8x64xf32>
    tpu.vector_store %arg8[%c24_48, %c0_49], %132 {strides = array<i32>} : memref<80x128xf32, #tpu.memory_space<vmem>>, vector<8x64xf32>,
    %c48 = arith.constant 48 : index
    %c64_50 = arith.constant 64 : index
    %134 = vector.load %arg8[%c48, %c64_50] : memref<80x128xf32, #tpu.memory_space<vmem>>, vector<8x64xf32>
    tpu.vector_store %arg8[%c48, %c64_50], %132 {strides = array<i32>} : memref<80x128xf32, #tpu.memory_space<vmem>>, vector<8x64xf32>,
    %c32 = arith.constant 32 : index
    %c0_51 = arith.constant 0 : index
    %135 = vector.load %arg9[%c32, %c0_51] : memref<80x256xf32, #tpu.memory_space<vmem>>, vector<8x256xf32>
    %cst_52 = arith.constant dense<0.000000e+00> : vector<8x256xf32>
    %136 = tpu.matmul %132, %12, %cst_52 {dimension_numbers = #tpu.dot_dimension_numbers<[1], [0], [0], [1], [0, 0, 1, 1], [], []>} : vector<8x64xf32>, vector<64x256xf32>, vector<8x256xf32> -> vector<8x256xf32>
    %137 = arith.addf %135, %136 : vector<8x256xf32>
    %138 = vector.extract_strided_slice %137 {offsets = [0, 0], sizes = [8, 64], strides = [1, 1]} : vector<8x256xf32> to vector<8x64xf32>
    %139 = arith.negf %138 : vector<8x64xf32>
    %140 = math.exp %139 : vector<8x64xf32>
    %cst_53 = arith.constant 1.000000e+00 : f32
    %141 = vector.broadcast %cst_53 : f32 to vector<8x64xf32>
    %142 = arith.addf %141, %140 : vector<8x64xf32>
    %143 = arith.divf %141, %142 : vector<8x64xf32>
    %144 = vector.extract_strided_slice %137 {offsets = [0, 64], sizes = [8, 64], strides = [1, 1]} : vector<8x256xf32> to vector<8x64xf32>
    %145 = arith.negf %144 : vector<8x64xf32>
    %146 = math.exp %145 : vector<8x64xf32>
    %cst_54 = arith.constant 1.000000e+00 : f32
    %147 = vector.broadcast %cst_54 : f32 to vector<8x64xf32>
    %148 = arith.addf %147, %146 : vector<8x64xf32>
    %149 = arith.divf %147, %148 : vector<8x64xf32>
    %150 = vector.extract_strided_slice %137 {offsets = [0, 128], sizes = [8, 64], strides = [1, 1]} : vector<8x256xf32> to vector<8x64xf32>
    %151 = math.tanh %150 : vector<8x64xf32>
    %152 = vector.extract_strided_slice %137 {offsets = [0, 192], sizes = [8, 64], strides = [1, 1]} : vector<8x256xf32> to vector<8x64xf32>
    %153 = arith.negf %152 : vector<8x64xf32>
    %154 = math.exp %153 : vector<8x64xf32>
    %cst_55 = arith.constant 1.000000e+00 : f32
    %155 = vector.broadcast %cst_55 : f32 to vector<8x64xf32>
    %156 = arith.addf %155, %154 : vector<8x64xf32>
    %157 = arith.divf %155, %156 : vector<8x64xf32>
    %158 = arith.mulf %149, %130 : vector<8x64xf32>
    %159 = arith.mulf %143, %151 : vector<8x64xf32>
    %160 = arith.addf %158, %159 : vector<8x64xf32>
    %161 = math.tanh %160 : vector<8x64xf32>
    %162 = arith.mulf %157, %161 : vector<8x64xf32>
    %c32_56 = arith.constant 32 : index
    %c0_57 = arith.constant 0 : index
    %163 = vector.load %arg8[%c32_56, %c0_57] : memref<80x128xf32, #tpu.memory_space<vmem>>, vector<8x64xf32>
    tpu.vector_store %arg8[%c32_56, %c0_57], %162 {strides = array<i32>} : memref<80x128xf32, #tpu.memory_space<vmem>>, vector<8x64xf32>,
    %c40 = arith.constant 40 : index
    %c64_58 = arith.constant 64 : index
    %164 = vector.load %arg8[%c40, %c64_58] : memref<80x128xf32, #tpu.memory_space<vmem>>, vector<8x64xf32>
    tpu.vector_store %arg8[%c40, %c64_58], %162 {strides = array<i32>} : memref<80x128xf32, #tpu.memory_space<vmem>>, vector<8x64xf32>,
    %c40_59 = arith.constant 40 : index
    %c0_60 = arith.constant 0 : index
    %165 = vector.load %arg9[%c40_59, %c0_60] : memref<80x256xf32, #tpu.memory_space<vmem>>, vector<8x256xf32>
    %cst_61 = arith.constant dense<0.000000e+00> : vector<8x256xf32>
    %166 = tpu.matmul %162, %12, %cst_61 {dimension_numbers = #tpu.dot_dimension_numbers<[1], [0], [0], [1], [0, 0, 1, 1], [], []>} : vector<8x64xf32>, vector<64x256xf32>, vector<8x256xf32> -> vector<8x256xf32>
    %167 = arith.addf %165, %166 : vector<8x256xf32>
    %168 = vector.extract_strided_slice %167 {offsets = [0, 0], sizes = [8, 64], strides = [1, 1]} : vector<8x256xf32> to vector<8x64xf32>
    %169 = arith.negf %168 : vector<8x64xf32>
    %170 = math.exp %169 : vector<8x64xf32>
    %cst_62 = arith.constant 1.000000e+00 : f32
    %171 = vector.broadcast %cst_62 : f32 to vector<8x64xf32>
    %172 = arith.addf %171, %170 : vector<8x64xf32>
    %173 = arith.divf %171, %172 : vector<8x64xf32>
    %174 = vector.extract_strided_slice %167 {offsets = [0, 64], sizes = [8, 64], strides = [1, 1]} : vector<8x256xf32> to vector<8x64xf32>
    %175 = arith.negf %174 : vector<8x64xf32>
    %176 = math.exp %175 : vector<8x64xf32>
    %cst_63 = arith.constant 1.000000e+00 : f32
    %177 = vector.broadcast %cst_63 : f32 to vector<8x64xf32>
    %178 = arith.addf %177, %176 : vector<8x64xf32>
    %179 = arith.divf %177, %178 : vector<8x64xf32>
    %180 = vector.extract_strided_slice %167 {offsets = [0, 128], sizes = [8, 64], strides = [1, 1]} : vector<8x256xf32> to vector<8x64xf32>
    %181 = math.tanh %180 : vector<8x64xf32>
    %182 = vector.extract_strided_slice %167 {offsets = [0, 192], sizes = [8, 64], strides = [1, 1]} : vector<8x256xf32> to vector<8x64xf32>
    %183 = arith.negf %182 : vector<8x64xf32>
    %184 = math.exp %183 : vector<8x64xf32>
    %cst_64 = arith.constant 1.000000e+00 : f32
    %185 = vector.broadcast %cst_64 : f32 to vector<8x64xf32>
    %186 = arith.addf %185, %184 : vector<8x64xf32>
    %187 = arith.divf %185, %186 : vector<8x64xf32>
    %188 = arith.mulf %179, %160 : vector<8x64xf32>
    %189 = arith.mulf %173, %181 : vector<8x64xf32>
    %190 = arith.addf %188, %189 : vector<8x64xf32>
    %191 = math.tanh %190 : vector<8x64xf32>
    %192 = arith.mulf %187, %191 : vector<8x64xf32>
    %c40_65 = arith.constant 40 : index
    %c0_66 = arith.constant 0 : index
    %193 = vector.load %arg8[%c40_65, %c0_66] : memref<80x128xf32, #tpu.memory_space<vmem>>, vector<8x64xf32>
    tpu.vector_store %arg8[%c40_65, %c0_66], %192 {strides = array<i32>} : memref<80x128xf32, #tpu.memory_space<vmem>>, vector<8x64xf32>,
    %c32_67 = arith.constant 32 : index
    %c64_68 = arith.constant 64 : index
    %194 = vector.load %arg8[%c32_67, %c64_68] : memref<80x128xf32, #tpu.memory_space<vmem>>, vector<8x64xf32>
    tpu.vector_store %arg8[%c32_67, %c64_68], %192 {strides = array<i32>} : memref<80x128xf32, #tpu.memory_space<vmem>>, vector<8x64xf32>,
    %c48_69 = arith.constant 48 : index
    %c0_70 = arith.constant 0 : index
    %195 = vector.load %arg9[%c48_69, %c0_70] : memref<80x256xf32, #tpu.memory_space<vmem>>, vector<8x256xf32>
    %cst_71 = arith.constant dense<0.000000e+00> : vector<8x256xf32>
    %196 = tpu.matmul %192, %12, %cst_71 {dimension_numbers = #tpu.dot_dimension_numbers<[1], [0], [0], [1], [0, 0, 1, 1], [], []>} : vector<8x64xf32>, vector<64x256xf32>, vector<8x256xf32> -> vector<8x256xf32>
    %197 = arith.addf %195, %196 : vector<8x256xf32>
    %198 = vector.extract_strided_slice %197 {offsets = [0, 0], sizes = [8, 64], strides = [1, 1]} : vector<8x256xf32> to vector<8x64xf32>
    %199 = arith.negf %198 : vector<8x64xf32>
    %200 = math.exp %199 : vector<8x64xf32>
    %cst_72 = arith.constant 1.000000e+00 : f32
    %201 = vector.broadcast %cst_72 : f32 to vector<8x64xf32>
    %202 = arith.addf %201, %200 : vector<8x64xf32>
    %203 = arith.divf %201, %202 : vector<8x64xf32>
    %204 = vector.extract_strided_slice %197 {offsets = [0, 64], sizes = [8, 64], strides = [1, 1]} : vector<8x256xf32> to vector<8x64xf32>
    %205 = arith.negf %204 : vector<8x64xf32>
    %206 = math.exp %205 : vector<8x64xf32>
    %cst_73 = arith.constant 1.000000e+00 : f32
    %207 = vector.broadcast %cst_73 : f32 to vector<8x64xf32>
    %208 = arith.addf %207, %206 : vector<8x64xf32>
    %209 = arith.divf %207, %208 : vector<8x64xf32>
    %210 = vector.extract_strided_slice %197 {offsets = [0, 128], sizes = [8, 64], strides = [1, 1]} : vector<8x256xf32> to vector<8x64xf32>
    %211 = math.tanh %210 : vector<8x64xf32>
    %212 = vector.extract_strided_slice %197 {offsets = [0, 192], sizes = [8, 64], strides = [1, 1]} : vector<8x256xf32> to vector<8x64xf32>
    %213 = arith.negf %212 : vector<8x64xf32>
    %214 = math.exp %213 : vector<8x64xf32>
    %cst_74 = arith.constant 1.000000e+00 : f32
    %215 = vector.broadcast %cst_74 : f32 to vector<8x64xf32>
    %216 = arith.addf %215, %214 : vector<8x64xf32>
    %217 = arith.divf %215, %216 : vector<8x64xf32>
    %218 = arith.mulf %209, %190 : vector<8x64xf32>
    %219 = arith.mulf %203, %211 : vector<8x64xf32>
    %220 = arith.addf %218, %219 : vector<8x64xf32>
    %221 = math.tanh %220 : vector<8x64xf32>
    %222 = arith.mulf %217, %221 : vector<8x64xf32>
    %c48_75 = arith.constant 48 : index
    %c0_76 = arith.constant 0 : index
    %223 = vector.load %arg8[%c48_75, %c0_76] : memref<80x128xf32, #tpu.memory_space<vmem>>, vector<8x64xf32>
    tpu.vector_store %arg8[%c48_75, %c0_76], %222 {strides = array<i32>} : memref<80x128xf32, #tpu.memory_space<vmem>>, vector<8x64xf32>,
    %c24_77 = arith.constant 24 : index
    %c64_78 = arith.constant 64 : index
    %224 = vector.load %arg8[%c24_77, %c64_78] : memref<80x128xf32, #tpu.memory_space<vmem>>, vector<8x64xf32>
    tpu.vector_store %arg8[%c24_77, %c64_78], %222 {strides = array<i32>} : memref<80x128xf32, #tpu.memory_space<vmem>>, vector<8x64xf32>,
    %c56_79 = arith.constant 56 : index
    %c0_80 = arith.constant 0 : index
    %225 = vector.load %arg9[%c56_79, %c0_80] : memref<80x256xf32, #tpu.memory_space<vmem>>, vector<8x256xf32>
    %cst_81 = arith.constant dense<0.000000e+00> : vector<8x256xf32>
    %226 = tpu.matmul %222, %12, %cst_81 {dimension_numbers = #tpu.dot_dimension_numbers<[1], [0], [0], [1], [0, 0, 1, 1], [], []>} : vector<8x64xf32>, vector<64x256xf32>, vector<8x256xf32> -> vector<8x256xf32>
    %227 = arith.addf %225, %226 : vector<8x256xf32>
    %228 = vector.extract_strided_slice %227 {offsets = [0, 0], sizes = [8, 64], strides = [1, 1]} : vector<8x256xf32> to vector<8x64xf32>
    %229 = arith.negf %228 : vector<8x64xf32>
    %230 = math.exp %229 : vector<8x64xf32>
    %cst_82 = arith.constant 1.000000e+00 : f32
    %231 = vector.broadcast %cst_82 : f32 to vector<8x64xf32>
    %232 = arith.addf %231, %230 : vector<8x64xf32>
    %233 = arith.divf %231, %232 : vector<8x64xf32>
    %234 = vector.extract_strided_slice %227 {offsets = [0, 64], sizes = [8, 64], strides = [1, 1]} : vector<8x256xf32> to vector<8x64xf32>
    %235 = arith.negf %234 : vector<8x64xf32>
    %236 = math.exp %235 : vector<8x64xf32>
    %cst_83 = arith.constant 1.000000e+00 : f32
    %237 = vector.broadcast %cst_83 : f32 to vector<8x64xf32>
    %238 = arith.addf %237, %236 : vector<8x64xf32>
    %239 = arith.divf %237, %238 : vector<8x64xf32>
    %240 = vector.extract_strided_slice %227 {offsets = [0, 128], sizes = [8, 64], strides = [1, 1]} : vector<8x256xf32> to vector<8x64xf32>
    %241 = math.tanh %240 : vector<8x64xf32>
    %242 = vector.extract_strided_slice %227 {offsets = [0, 192], sizes = [8, 64], strides = [1, 1]} : vector<8x256xf32> to vector<8x64xf32>
    %243 = arith.negf %242 : vector<8x64xf32>
    %244 = math.exp %243 : vector<8x64xf32>
    %cst_84 = arith.constant 1.000000e+00 : f32
    %245 = vector.broadcast %cst_84 : f32 to vector<8x64xf32>
    %246 = arith.addf %245, %244 : vector<8x64xf32>
    %247 = arith.divf %245, %246 : vector<8x64xf32>
    %248 = arith.mulf %239, %220 : vector<8x64xf32>
    %249 = arith.mulf %233, %241 : vector<8x64xf32>
    %250 = arith.addf %248, %249 : vector<8x64xf32>
    %251 = math.tanh %250 : vector<8x64xf32>
    %252 = arith.mulf %247, %251 : vector<8x64xf32>
    %c56_85 = arith.constant 56 : index
    %c0_86 = arith.constant 0 : index
    %253 = vector.load %arg8[%c56_85, %c0_86] : memref<80x128xf32, #tpu.memory_space<vmem>>, vector<8x64xf32>
    tpu.vector_store %arg8[%c56_85, %c0_86], %252 {strides = array<i32>} : memref<80x128xf32, #tpu.memory_space<vmem>>, vector<8x64xf32>,
    %c16_87 = arith.constant 16 : index
    %c64_88 = arith.constant 64 : index
    %254 = vector.load %arg8[%c16_87, %c64_88] : memref<80x128xf32, #tpu.memory_space<vmem>>, vector<8x64xf32>
    tpu.vector_store %arg8[%c16_87, %c64_88], %252 {strides = array<i32>} : memref<80x128xf32, #tpu.memory_space<vmem>>, vector<8x64xf32>,
    %c64_89 = arith.constant 64 : index
    %c0_90 = arith.constant 0 : index
    %255 = vector.load %arg9[%c64_89, %c0_90] : memref<80x256xf32, #tpu.memory_space<vmem>>, vector<8x256xf32>
    %cst_91 = arith.constant dense<0.000000e+00> : vector<8x256xf32>
    %256 = tpu.matmul %252, %12, %cst_91 {dimension_numbers = #tpu.dot_dimension_numbers<[1], [0], [0], [1], [0, 0, 1, 1], [], []>} : vector<8x64xf32>, vector<64x256xf32>, vector<8x256xf32> -> vector<8x256xf32>
    %257 = arith.addf %255, %256 : vector<8x256xf32>
    %258 = vector.extract_strided_slice %257 {offsets = [0, 0], sizes = [8, 64], strides = [1, 1]} : vector<8x256xf32> to vector<8x64xf32>
    %259 = arith.negf %258 : vector<8x64xf32>
    %260 = math.exp %259 : vector<8x64xf32>
    %cst_92 = arith.constant 1.000000e+00 : f32
    %261 = vector.broadcast %cst_92 : f32 to vector<8x64xf32>
    %262 = arith.addf %261, %260 : vector<8x64xf32>
    %263 = arith.divf %261, %262 : vector<8x64xf32>
    %264 = vector.extract_strided_slice %257 {offsets = [0, 64], sizes = [8, 64], strides = [1, 1]} : vector<8x256xf32> to vector<8x64xf32>
    %265 = arith.negf %264 : vector<8x64xf32>
    %266 = math.exp %265 : vector<8x64xf32>
    %cst_93 = arith.constant 1.000000e+00 : f32
    %267 = vector.broadcast %cst_93 : f32 to vector<8x64xf32>
    %268 = arith.addf %267, %266 : vector<8x64xf32>
    %269 = arith.divf %267, %268 : vector<8x64xf32>
    %270 = vector.extract_strided_slice %257 {offsets = [0, 128], sizes = [8, 64], strides = [1, 1]} : vector<8x256xf32> to vector<8x64xf32>
    %271 = math.tanh %270 : vector<8x64xf32>
    %272 = vector.extract_strided_slice %257 {offsets = [0, 192], sizes = [8, 64], strides = [1, 1]} : vector<8x256xf32> to vector<8x64xf32>
    %273 = arith.negf %272 : vector<8x64xf32>
    %274 = math.exp %273 : vector<8x64xf32>
    %cst_94 = arith.constant 1.000000e+00 : f32
    %275 = vector.broadcast %cst_94 : f32 to vector<8x64xf32>
    %276 = arith.addf %275, %274 : vector<8x64xf32>
    %277 = arith.divf %275, %276 : vector<8x64xf32>
    %278 = arith.mulf %269, %250 : vector<8x64xf32>
    %279 = arith.mulf %263, %271 : vector<8x64xf32>
    %280 = arith.addf %278, %279 : vector<8x64xf32>
    %281 = math.tanh %280 : vector<8x64xf32>
    %282 = arith.mulf %277, %281 : vector<8x64xf32>
    %c64_95 = arith.constant 64 : index
    %c0_96 = arith.constant 0 : index
    %283 = vector.load %arg8[%c64_95, %c0_96] : memref<80x128xf32, #tpu.memory_space<vmem>>, vector<8x64xf32>
    tpu.vector_store %arg8[%c64_95, %c0_96], %282 {strides = array<i32>} : memref<80x128xf32, #tpu.memory_space<vmem>>, vector<8x64xf32>,
    %c8_97 = arith.constant 8 : index
    %c64_98 = arith.constant 64 : index
    %284 = vector.load %arg8[%c8_97, %c64_98] : memref<80x128xf32, #tpu.memory_space<vmem>>, vector<8x64xf32>
    tpu.vector_store %arg8[%c8_97, %c64_98], %282 {strides = array<i32>} : memref<80x128xf32, #tpu.memory_space<vmem>>, vector<8x64xf32>,
    %c72_99 = arith.constant 72 : index
    %c0_100 = arith.constant 0 : index
    %285 = vector.load %arg9[%c72_99, %c0_100] : memref<80x256xf32, #tpu.memory_space<vmem>>, vector<8x256xf32>
    %cst_101 = arith.constant dense<0.000000e+00> : vector<8x256xf32>
    %286 = tpu.matmul %282, %12, %cst_101 {dimension_numbers = #tpu.dot_dimension_numbers<[1], [0], [0], [1], [0, 0, 1, 1], [], []>} : vector<8x64xf32>, vector<64x256xf32>, vector<8x256xf32> -> vector<8x256xf32>
    %287 = arith.addf %285, %286 : vector<8x256xf32>
    %288 = vector.extract_strided_slice %287 {offsets = [0, 0], sizes = [8, 64], strides = [1, 1]} : vector<8x256xf32> to vector<8x64xf32>
    %289 = arith.negf %288 : vector<8x64xf32>
    %290 = math.exp %289 : vector<8x64xf32>
    %cst_102 = arith.constant 1.000000e+00 : f32
    %291 = vector.broadcast %cst_102 : f32 to vector<8x64xf32>
    %292 = arith.addf %291, %290 : vector<8x64xf32>
    %293 = arith.divf %291, %292 : vector<8x64xf32>
    %294 = vector.extract_strided_slice %287 {offsets = [0, 64], sizes = [8, 64], strides = [1, 1]} : vector<8x256xf32> to vector<8x64xf32>
    %295 = arith.negf %294 : vector<8x64xf32>
    %296 = math.exp %295 : vector<8x64xf32>
    %cst_103 = arith.constant 1.000000e+00 : f32
    %297 = vector.broadcast %cst_103 : f32 to vector<8x64xf32>
    %298 = arith.addf %297, %296 : vector<8x64xf32>
    %299 = arith.divf %297, %298 : vector<8x64xf32>
    %300 = vector.extract_strided_slice %287 {offsets = [0, 128], sizes = [8, 64], strides = [1, 1]} : vector<8x256xf32> to vector<8x64xf32>
    %301 = math.tanh %300 : vector<8x64xf32>
    %302 = vector.extract_strided_slice %287 {offsets = [0, 192], sizes = [8, 64], strides = [1, 1]} : vector<8x256xf32> to vector<8x64xf32>
    %303 = arith.negf %302 : vector<8x64xf32>
    %304 = math.exp %303 : vector<8x64xf32>
    %cst_104 = arith.constant 1.000000e+00 : f32
    %305 = vector.broadcast %cst_104 : f32 to vector<8x64xf32>
    %306 = arith.addf %305, %304 : vector<8x64xf32>
    %307 = arith.divf %305, %306 : vector<8x64xf32>
    %308 = arith.mulf %299, %280 : vector<8x64xf32>
    %309 = arith.mulf %293, %301 : vector<8x64xf32>
    %310 = arith.addf %308, %309 : vector<8x64xf32>
    %311 = math.tanh %310 : vector<8x64xf32>
    %312 = arith.mulf %307, %311 : vector<8x64xf32>
    %c72_105 = arith.constant 72 : index
    %c0_106 = arith.constant 0 : index
    %313 = vector.load %arg8[%c72_105, %c0_106] : memref<80x128xf32, #tpu.memory_space<vmem>>, vector<8x64xf32>
    tpu.vector_store %arg8[%c72_105, %c0_106], %312 {strides = array<i32>} : memref<80x128xf32, #tpu.memory_space<vmem>>, vector<8x64xf32>,
    %c0_107 = arith.constant 0 : index
    %c64_108 = arith.constant 64 : index
    %314 = vector.load %arg8[%c0_107, %c64_108] : memref<80x128xf32, #tpu.memory_space<vmem>>, vector<8x64xf32>
    tpu.vector_store %arg8[%c0_107, %c64_108], %312 {strides = array<i32>} : memref<80x128xf32, #tpu.memory_space<vmem>>, vector<8x64xf32>,
    %c0_109 = arith.constant 0 : index
    %c0_110 = arith.constant 0 : index
    %315 = vector.load %arg8[%c0_109, %c0_110] : memref<80x128xf32, #tpu.memory_space<vmem>>, vector<80x128xf32>
    %c1 = arith.constant 1 : index
    %c0_111 = arith.constant 0 : index
    %c0_112 = arith.constant 0 : index
    %316 = vector.load %arg2[%c1, %c0_111, %c0_112] : memref<2x128x256xf32, #tpu.memory_space<vmem>>, vector<1x128x256xf32>
    %317 = vector.shape_cast %316 : vector<1x128x256xf32> to vector<128x256xf32>
    %cst_113 = arith.constant dense<0.000000e+00> : vector<80x256xf32>
    %318 = tpu.matmul %315, %317, %cst_113 {dimension_numbers = #tpu.dot_dimension_numbers<[1], [0], [0], [1], [0, 0, 1, 1], [], []>} : vector<80x128xf32>, vector<128x256xf32>, vector<80x256xf32> -> vector<80x256xf32>
    %c1_114 = arith.constant 1 : index
    %c0_115 = arith.constant 0 : index
    %c0_116 = arith.constant 0 : index
    %319 = vector.load %arg4[%c1_114, %c0_115, %c0_116] : memref<2x1x256xf32, #tpu.memory_space<vmem>>, vector<1x1x256xf32>
    %320 = vector.shape_cast %319 : vector<1x1x256xf32> to vector<1x256xf32>
    %321 = vector.broadcast %320 : vector<1x256xf32> to vector<80x256xf32>
    %322 = arith.addf %318, %321 : vector<80x256xf32>
    %c0_117 = arith.constant 0 : index
    %c0_118 = arith.constant 0 : index
    %323 = vector.load %arg9[%c0_117, %c0_118] : memref<80x256xf32, #tpu.memory_space<vmem>>, vector<80x256xf32>
    tpu.vector_store %arg9[%c0_117, %c0_118], %322 {strides = array<i32>} : memref<80x256xf32, #tpu.memory_space<vmem>>, vector<80x256xf32>,
    %c1_119 = arith.constant 1 : index
    %c0_120 = arith.constant 0 : index
    %c0_121 = arith.constant 0 : index
    %324 = vector.load %arg3[%c1_119, %c0_120, %c0_121] : memref<2x64x256xf32, #tpu.memory_space<vmem>>, vector<1x64x256xf32>
    %325 = vector.shape_cast %324 : vector<1x64x256xf32> to vector<64x256xf32>
    %cst_122 = arith.constant 0.000000e+00 : f32
    %326 = vector.broadcast %cst_122 : f32 to vector<8x64xf32>
    %cst_123 = arith.constant 0.000000e+00 : f32
    %327 = vector.broadcast %cst_123 : f32 to vector<8x64xf32>
    %c0_124 = arith.constant 0 : index
    %c0_125 = arith.constant 0 : index
    %328 = vector.load %arg9[%c0_124, %c0_125] : memref<80x256xf32, #tpu.memory_space<vmem>>, vector<8x256xf32>
    %cst_126 = arith.constant dense<0.000000e+00> : vector<8x256xf32>
    %329 = tpu.matmul %326, %325, %cst_126 {dimension_numbers = #tpu.dot_dimension_numbers<[1], [0], [0], [1], [0, 0, 1, 1], [], []>} : vector<8x64xf32>, vector<64x256xf32>, vector<8x256xf32> -> vector<8x256xf32>
    %330 = arith.addf %328, %329 : vector<8x256xf32>
    %331 = vector.extract_strided_slice %330 {offsets = [0, 0], sizes = [8, 64], strides = [1, 1]} : vector<8x256xf32> to vector<8x64xf32>
    %332 = arith.negf %331 : vector<8x64xf32>
    %333 = math.exp %332 : vector<8x64xf32>
    %cst_127 = arith.constant 1.000000e+00 : f32
    %334 = vector.broadcast %cst_127 : f32 to vector<8x64xf32>
    %335 = arith.addf %334, %333 : vector<8x64xf32>
    %336 = arith.divf %334, %335 : vector<8x64xf32>
    %337 = vector.extract_strided_slice %330 {offsets = [0, 64], sizes = [8, 64], strides = [1, 1]} : vector<8x256xf32> to vector<8x64xf32>
    %338 = arith.negf %337 : vector<8x64xf32>
    %339 = math.exp %338 : vector<8x64xf32>
    %cst_128 = arith.constant 1.000000e+00 : f32
    %340 = vector.broadcast %cst_128 : f32 to vector<8x64xf32>
    %341 = arith.addf %340, %339 : vector<8x64xf32>
    %342 = arith.divf %340, %341 : vector<8x64xf32>
    %343 = vector.extract_strided_slice %330 {offsets = [0, 128], sizes = [8, 64], strides = [1, 1]} : vector<8x256xf32> to vector<8x64xf32>
    %344 = math.tanh %343 : vector<8x64xf32>
    %345 = vector.extract_strided_slice %330 {offsets = [0, 192], sizes = [8, 64], strides = [1, 1]} : vector<8x256xf32> to vector<8x64xf32>
    %346 = arith.negf %345 : vector<8x64xf32>
    %347 = math.exp %346 : vector<8x64xf32>
    %cst_129 = arith.constant 1.000000e+00 : f32
    %348 = vector.broadcast %cst_129 : f32 to vector<8x64xf32>
    %349 = arith.addf %348, %347 : vector<8x64xf32>
    %350 = arith.divf %348, %349 : vector<8x64xf32>
    %351 = arith.mulf %342, %327 : vector<8x64xf32>
    %352 = arith.mulf %336, %344 : vector<8x64xf32>
    %353 = arith.addf %351, %352 : vector<8x64xf32>
    %354 = math.tanh %353 : vector<8x64xf32>
    %355 = arith.mulf %350, %354 : vector<8x64xf32>
    %c0_130 = arith.constant 0 : index
    %c0_131 = arith.constant 0 : index
    %356 = vector.load %arg8[%c0_130, %c0_131] : memref<80x128xf32, #tpu.memory_space<vmem>>, vector<8x64xf32>
    tpu.vector_store %arg8[%c0_130, %c0_131], %355 {strides = array<i32>} : memref<80x128xf32, #tpu.memory_space<vmem>>, vector<8x64xf32>,
    %c72_132 = arith.constant 72 : index
    %c64_133 = arith.constant 64 : index
    %357 = vector.load %arg8[%c72_132, %c64_133] : memref<80x128xf32, #tpu.memory_space<vmem>>, vector<8x64xf32>
    tpu.vector_store %arg8[%c72_132, %c64_133], %355 {strides = array<i32>} : memref<80x128xf32, #tpu.memory_space<vmem>>, vector<8x64xf32>,
    %c8_134 = arith.constant 8 : index
    %c0_135 = arith.constant 0 : index
    %358 = vector.load %arg9[%c8_134, %c0_135] : memref<80x256xf32, #tpu.memory_space<vmem>>, vector<8x256xf32>
    %cst_136 = arith.constant dense<0.000000e+00> : vector<8x256xf32>
    %359 = tpu.matmul %355, %325, %cst_136 {dimension_numbers = #tpu.dot_dimension_numbers<[1], [0], [0], [1], [0, 0, 1, 1], [], []>} : vector<8x64xf32>, vector<64x256xf32>, vector<8x256xf32> -> vector<8x256xf32>
    %360 = arith.addf %358, %359 : vector<8x256xf32>
    %361 = vector.extract_strided_slice %360 {offsets = [0, 0], sizes = [8, 64], strides = [1, 1]} : vector<8x256xf32> to vector<8x64xf32>
    %362 = arith.negf %361 : vector<8x64xf32>
    %363 = math.exp %362 : vector<8x64xf32>
    %cst_137 = arith.constant 1.000000e+00 : f32
    %364 = vector.broadcast %cst_137 : f32 to vector<8x64xf32>
    %365 = arith.addf %364, %363 : vector<8x64xf32>
    %366 = arith.divf %364, %365 : vector<8x64xf32>
    %367 = vector.extract_strided_slice %360 {offsets = [0, 64], sizes = [8, 64], strides = [1, 1]} : vector<8x256xf32> to vector<8x64xf32>
    %368 = arith.negf %367 : vector<8x64xf32>
    %369 = math.exp %368 : vector<8x64xf32>
    %cst_138 = arith.constant 1.000000e+00 : f32
    %370 = vector.broadcast %cst_138 : f32 to vector<8x64xf32>
    %371 = arith.addf %370, %369 : vector<8x64xf32>
    %372 = arith.divf %370, %371 : vector<8x64xf32>
    %373 = vector.extract_strided_slice %360 {offsets = [0, 128], sizes = [8, 64], strides = [1, 1]} : vector<8x256xf32> to vector<8x64xf32>
    %374 = math.tanh %373 : vector<8x64xf32>
    %375 = vector.extract_strided_slice %360 {offsets = [0, 192], sizes = [8, 64], strides = [1, 1]} : vector<8x256xf32> to vector<8x64xf32>
    %376 = arith.negf %375 : vector<8x64xf32>
    %377 = math.exp %376 : vector<8x64xf32>
    %cst_139 = arith.constant 1.000000e+00 : f32
    %378 = vector.broadcast %cst_139 : f32 to vector<8x64xf32>
    %379 = arith.addf %378, %377 : vector<8x64xf32>
    %380 = arith.divf %378, %379 : vector<8x64xf32>
    %381 = arith.mulf %372, %353 : vector<8x64xf32>
    %382 = arith.mulf %366, %374 : vector<8x64xf32>
    %383 = arith.addf %381, %382 : vector<8x64xf32>
    %384 = math.tanh %383 : vector<8x64xf32>
    %385 = arith.mulf %380, %384 : vector<8x64xf32>
    %c8_140 = arith.constant 8 : index
    %c0_141 = arith.constant 0 : index
    %386 = vector.load %arg8[%c8_140, %c0_141] : memref<80x128xf32, #tpu.memory_space<vmem>>, vector<8x64xf32>
    tpu.vector_store %arg8[%c8_140, %c0_141], %385 {strides = array<i32>} : memref<80x128xf32, #tpu.memory_space<vmem>>, vector<8x64xf32>,
    %c64_142 = arith.constant 64 : index
    %c64_143 = arith.constant 64 : index
    %387 = vector.load %arg8[%c64_142, %c64_143] : memref<80x128xf32, #tpu.memory_space<vmem>>, vector<8x64xf32>
    tpu.vector_store %arg8[%c64_142, %c64_143], %385 {strides = array<i32>} : memref<80x128xf32, #tpu.memory_space<vmem>>, vector<8x64xf32>,
    %c16_144 = arith.constant 16 : index
    %c0_145 = arith.constant 0 : index
    %388 = vector.load %arg9[%c16_144, %c0_145] : memref<80x256xf32, #tpu.memory_space<vmem>>, vector<8x256xf32>
    %cst_146 = arith.constant dense<0.000000e+00> : vector<8x256xf32>
    %389 = tpu.matmul %385, %325, %cst_146 {dimension_numbers = #tpu.dot_dimension_numbers<[1], [0], [0], [1], [0, 0, 1, 1], [], []>} : vector<8x64xf32>, vector<64x256xf32>, vector<8x256xf32> -> vector<8x256xf32>
    %390 = arith.addf %388, %389 : vector<8x256xf32>
    %391 = vector.extract_strided_slice %390 {offsets = [0, 0], sizes = [8, 64], strides = [1, 1]} : vector<8x256xf32> to vector<8x64xf32>
    %392 = arith.negf %391 : vector<8x64xf32>
    %393 = math.exp %392 : vector<8x64xf32>
    %cst_147 = arith.constant 1.000000e+00 : f32
    %394 = vector.broadcast %cst_147 : f32 to vector<8x64xf32>
    %395 = arith.addf %394, %393 : vector<8x64xf32>
    %396 = arith.divf %394, %395 : vector<8x64xf32>
    %397 = vector.extract_strided_slice %390 {offsets = [0, 64], sizes = [8, 64], strides = [1, 1]} : vector<8x256xf32> to vector<8x64xf32>
    %398 = arith.negf %397 : vector<8x64xf32>
    %399 = math.exp %398 : vector<8x64xf32>
    %cst_148 = arith.constant 1.000000e+00 : f32
    %400 = vector.broadcast %cst_148 : f32 to vector<8x64xf32>
    %401 = arith.addf %400, %399 : vector<8x64xf32>
    %402 = arith.divf %400, %401 : vector<8x64xf32>
    %403 = vector.extract_strided_slice %390 {offsets = [0, 128], sizes = [8, 64], strides = [1, 1]} : vector<8x256xf32> to vector<8x64xf32>
    %404 = math.tanh %403 : vector<8x64xf32>
    %405 = vector.extract_strided_slice %390 {offsets = [0, 192], sizes = [8, 64], strides = [1, 1]} : vector<8x256xf32> to vector<8x64xf32>
    %406 = arith.negf %405 : vector<8x64xf32>
    %407 = math.exp %406 : vector<8x64xf32>
    %cst_149 = arith.constant 1.000000e+00 : f32
    %408 = vector.broadcast %cst_149 : f32 to vector<8x64xf32>
    %409 = arith.addf %408, %407 : vector<8x64xf32>
    %410 = arith.divf %408, %409 : vector<8x64xf32>
    %411 = arith.mulf %402, %383 : vector<8x64xf32>
    %412 = arith.mulf %396, %404 : vector<8x64xf32>
    %413 = arith.addf %411, %412 : vector<8x64xf32>
    %414 = math.tanh %413 : vector<8x64xf32>
    %415 = arith.mulf %410, %414 : vector<8x64xf32>
    %c16_150 = arith.constant 16 : index
    %c0_151 = arith.constant 0 : index
    %416 = vector.load %arg8[%c16_150, %c0_151] : memref<80x128xf32, #tpu.memory_space<vmem>>, vector<8x64xf32>
    tpu.vector_store %arg8[%c16_150, %c0_151], %415 {strides = array<i32>} : memref<80x128xf32, #tpu.memory_space<vmem>>, vector<8x64xf32>,
    %c56_152 = arith.constant 56 : index
    %c64_153 = arith.constant 64 : index
    %417 = vector.load %arg8[%c56_152, %c64_153] : memref<80x128xf32, #tpu.memory_space<vmem>>, vector<8x64xf32>
    tpu.vector_store %arg8[%c56_152, %c64_153], %415 {strides = array<i32>} : memref<80x128xf32, #tpu.memory_space<vmem>>, vector<8x64xf32>,
    %c24_154 = arith.constant 24 : index
    %c0_155 = arith.constant 0 : index
    %418 = vector.load %arg9[%c24_154, %c0_155] : memref<80x256xf32, #tpu.memory_space<vmem>>, vector<8x256xf32>
    %cst_156 = arith.constant dense<0.000000e+00> : vector<8x256xf32>
    %419 = tpu.matmul %415, %325, %cst_156 {dimension_numbers = #tpu.dot_dimension_numbers<[1], [0], [0], [1], [0, 0, 1, 1], [], []>} : vector<8x64xf32>, vector<64x256xf32>, vector<8x256xf32> -> vector<8x256xf32>
    %420 = arith.addf %418, %419 : vector<8x256xf32>
    %421 = vector.extract_strided_slice %420 {offsets = [0, 0], sizes = [8, 64], strides = [1, 1]} : vector<8x256xf32> to vector<8x64xf32>
    %422 = arith.negf %421 : vector<8x64xf32>
    %423 = math.exp %422 : vector<8x64xf32>
    %cst_157 = arith.constant 1.000000e+00 : f32
    %424 = vector.broadcast %cst_157 : f32 to vector<8x64xf32>
    %425 = arith.addf %424, %423 : vector<8x64xf32>
    %426 = arith.divf %424, %425 : vector<8x64xf32>
    %427 = vector.extract_strided_slice %420 {offsets = [0, 64], sizes = [8, 64], strides = [1, 1]} : vector<8x256xf32> to vector<8x64xf32>
    %428 = arith.negf %427 : vector<8x64xf32>
    %429 = math.exp %428 : vector<8x64xf32>
    %cst_158 = arith.constant 1.000000e+00 : f32
    %430 = vector.broadcast %cst_158 : f32 to vector<8x64xf32>
    %431 = arith.addf %430, %429 : vector<8x64xf32>
    %432 = arith.divf %430, %431 : vector<8x64xf32>
    %433 = vector.extract_strided_slice %420 {offsets = [0, 128], sizes = [8, 64], strides = [1, 1]} : vector<8x256xf32> to vector<8x64xf32>
    %434 = math.tanh %433 : vector<8x64xf32>
    %435 = vector.extract_strided_slice %420 {offsets = [0, 192], sizes = [8, 64], strides = [1, 1]} : vector<8x256xf32> to vector<8x64xf32>
    %436 = arith.negf %435 : vector<8x64xf32>
    %437 = math.exp %436 : vector<8x64xf32>
    %cst_159 = arith.constant 1.000000e+00 : f32
    %438 = vector.broadcast %cst_159 : f32 to vector<8x64xf32>
    %439 = arith.addf %438, %437 : vector<8x64xf32>
    %440 = arith.divf %438, %439 : vector<8x64xf32>
    %441 = arith.mulf %432, %413 : vector<8x64xf32>
    %442 = arith.mulf %426, %434 : vector<8x64xf32>
    %443 = arith.addf %441, %442 : vector<8x64xf32>
    %444 = math.tanh %443 : vector<8x64xf32>
    %445 = arith.mulf %440, %444 : vector<8x64xf32>
    %c24_160 = arith.constant 24 : index
    %c0_161 = arith.constant 0 : index
    %446 = vector.load %arg8[%c24_160, %c0_161] : memref<80x128xf32, #tpu.memory_space<vmem>>, vector<8x64xf32>
    tpu.vector_store %arg8[%c24_160, %c0_161], %445 {strides = array<i32>} : memref<80x128xf32, #tpu.memory_space<vmem>>, vector<8x64xf32>,
    %c48_162 = arith.constant 48 : index
    %c64_163 = arith.constant 64 : index
    %447 = vector.load %arg8[%c48_162, %c64_163] : memref<80x128xf32, #tpu.memory_space<vmem>>, vector<8x64xf32>
    tpu.vector_store %arg8[%c48_162, %c64_163], %445 {strides = array<i32>} : memref<80x128xf32, #tpu.memory_space<vmem>>, vector<8x64xf32>,
    %c32_164 = arith.constant 32 : index
    %c0_165 = arith.constant 0 : index
    %448 = vector.load %arg9[%c32_164, %c0_165] : memref<80x256xf32, #tpu.memory_space<vmem>>, vector<8x256xf32>
    %cst_166 = arith.constant dense<0.000000e+00> : vector<8x256xf32>
    %449 = tpu.matmul %445, %325, %cst_166 {dimension_numbers = #tpu.dot_dimension_numbers<[1], [0], [0], [1], [0, 0, 1, 1], [], []>} : vector<8x64xf32>, vector<64x256xf32>, vector<8x256xf32> -> vector<8x256xf32>
    %450 = arith.addf %448, %449 : vector<8x256xf32>
    %451 = vector.extract_strided_slice %450 {offsets = [0, 0], sizes = [8, 64], strides = [1, 1]} : vector<8x256xf32> to vector<8x64xf32>
    %452 = arith.negf %451 : vector<8x64xf32>
    %453 = math.exp %452 : vector<8x64xf32>
    %cst_167 = arith.constant 1.000000e+00 : f32
    %454 = vector.broadcast %cst_167 : f32 to vector<8x64xf32>
    %455 = arith.addf %454, %453 : vector<8x64xf32>
    %456 = arith.divf %454, %455 : vector<8x64xf32>
    %457 = vector.extract_strided_slice %450 {offsets = [0, 64], sizes = [8, 64], strides = [1, 1]} : vector<8x256xf32> to vector<8x64xf32>
    %458 = arith.negf %457 : vector<8x64xf32>
    %459 = math.exp %458 : vector<8x64xf32>
    %cst_168 = arith.constant 1.000000e+00 : f32
    %460 = vector.broadcast %cst_168 : f32 to vector<8x64xf32>
    %461 = arith.addf %460, %459 : vector<8x64xf32>
    %462 = arith.divf %460, %461 : vector<8x64xf32>
    %463 = vector.extract_strided_slice %450 {offsets = [0, 128], sizes = [8, 64], strides = [1, 1]} : vector<8x256xf32> to vector<8x64xf32>
    %464 = math.tanh %463 : vector<8x64xf32>
    %465 = vector.extract_strided_slice %450 {offsets = [0, 192], sizes = [8, 64], strides = [1, 1]} : vector<8x256xf32> to vector<8x64xf32>
    %466 = arith.negf %465 : vector<8x64xf32>
    %467 = math.exp %466 : vector<8x64xf32>
    %cst_169 = arith.constant 1.000000e+00 : f32
    %468 = vector.broadcast %cst_169 : f32 to vector<8x64xf32>
    %469 = arith.addf %468, %467 : vector<8x64xf32>
    %470 = arith.divf %468, %469 : vector<8x64xf32>
    %471 = arith.mulf %462, %443 : vector<8x64xf32>
    %472 = arith.mulf %456, %464 : vector<8x64xf32>
    %473 = arith.addf %471, %472 : vector<8x64xf32>
    %474 = math.tanh %473 : vector<8x64xf32>
    %475 = arith.mulf %470, %474 : vector<8x64xf32>
    %c32_170 = arith.constant 32 : index
    %c0_171 = arith.constant 0 : index
    %476 = vector.load %arg8[%c32_170, %c0_171] : memref<80x128xf32, #tpu.memory_space<vmem>>, vector<8x64xf32>
    tpu.vector_store %arg8[%c32_170, %c0_171], %475 {strides = array<i32>} : memref<80x128xf32, #tpu.memory_space<vmem>>, vector<8x64xf32>,
    %c40_172 = arith.constant 40 : index
    %c64_173 = arith.constant 64 : index
    %477 = vector.load %arg8[%c40_172, %c64_173] : memref<80x128xf32, #tpu.memory_space<vmem>>, vector<8x64xf32>
    tpu.vector_store %arg8[%c40_172, %c64_173], %475 {strides = array<i32>} : memref<80x128xf32, #tpu.memory_space<vmem>>, vector<8x64xf32>,
    %c40_174 = arith.constant 40 : index
    %c0_175 = arith.constant 0 : index
    %478 = vector.load %arg9[%c40_174, %c0_175] : memref<80x256xf32, #tpu.memory_space<vmem>>, vector<8x256xf32>
    %cst_176 = arith.constant dense<0.000000e+00> : vector<8x256xf32>
    %479 = tpu.matmul %475, %325, %cst_176 {dimension_numbers = #tpu.dot_dimension_numbers<[1], [0], [0], [1], [0, 0, 1, 1], [], []>} : vector<8x64xf32>, vector<64x256xf32>, vector<8x256xf32> -> vector<8x256xf32>
    %480 = arith.addf %478, %479 : vector<8x256xf32>
    %481 = vector.extract_strided_slice %480 {offsets = [0, 0], sizes = [8, 64], strides = [1, 1]} : vector<8x256xf32> to vector<8x64xf32>
    %482 = arith.negf %481 : vector<8x64xf32>
    %483 = math.exp %482 : vector<8x64xf32>
    %cst_177 = arith.constant 1.000000e+00 : f32
    %484 = vector.broadcast %cst_177 : f32 to vector<8x64xf32>
    %485 = arith.addf %484, %483 : vector<8x64xf32>
    %486 = arith.divf %484, %485 : vector<8x64xf32>
    %487 = vector.extract_strided_slice %480 {offsets = [0, 64], sizes = [8, 64], strides = [1, 1]} : vector<8x256xf32> to vector<8x64xf32>
    %488 = arith.negf %487 : vector<8x64xf32>
    %489 = math.exp %488 : vector<8x64xf32>
    %cst_178 = arith.constant 1.000000e+00 : f32
    %490 = vector.broadcast %cst_178 : f32 to vector<8x64xf32>
    %491 = arith.addf %490, %489 : vector<8x64xf32>
    %492 = arith.divf %490, %491 : vector<8x64xf32>
    %493 = vector.extract_strided_slice %480 {offsets = [0, 128], sizes = [8, 64], strides = [1, 1]} : vector<8x256xf32> to vector<8x64xf32>
    %494 = math.tanh %493 : vector<8x64xf32>
    %495 = vector.extract_strided_slice %480 {offsets = [0, 192], sizes = [8, 64], strides = [1, 1]} : vector<8x256xf32> to vector<8x64xf32>
    %496 = arith.negf %495 : vector<8x64xf32>
    %497 = math.exp %496 : vector<8x64xf32>
    %cst_179 = arith.constant 1.000000e+00 : f32
    %498 = vector.broadcast %cst_179 : f32 to vector<8x64xf32>
    %499 = arith.addf %498, %497 : vector<8x64xf32>
    %500 = arith.divf %498, %499 : vector<8x64xf32>
    %501 = arith.mulf %492, %473 : vector<8x64xf32>
    %502 = arith.mulf %486, %494 : vector<8x64xf32>
    %503 = arith.addf %501, %502 : vector<8x64xf32>
    %504 = math.tanh %503 : vector<8x64xf32>
    %505 = arith.mulf %500, %504 : vector<8x64xf32>
    %c40_180 = arith.constant 40 : index
    %c0_181 = arith.constant 0 : index
    %506 = vector.load %arg8[%c40_180, %c0_181] : memref<80x128xf32, #tpu.memory_space<vmem>>, vector<8x64xf32>
    tpu.vector_store %arg8[%c40_180, %c0_181], %505 {strides = array<i32>} : memref<80x128xf32, #tpu.memory_space<vmem>>, vector<8x64xf32>,
    %c32_182 = arith.constant 32 : index
    %c64_183 = arith.constant 64 : index
    %507 = vector.load %arg8[%c32_182, %c64_183] : memref<80x128xf32, #tpu.memory_space<vmem>>, vector<8x64xf32>
    tpu.vector_store %arg8[%c32_182, %c64_183], %505 {strides = array<i32>} : memref<80x128xf32, #tpu.memory_space<vmem>>, vector<8x64xf32>,
    %c48_184 = arith.constant 48 : index
    %c0_185 = arith.constant 0 : index
    %508 = vector.load %arg9[%c48_184, %c0_185] : memref<80x256xf32, #tpu.memory_space<vmem>>, vector<8x256xf32>
    %cst_186 = arith.constant dense<0.000000e+00> : vector<8x256xf32>
    %509 = tpu.matmul %505, %325, %cst_186 {dimension_numbers = #tpu.dot_dimension_numbers<[1], [0], [0], [1], [0, 0, 1, 1], [], []>} : vector<8x64xf32>, vector<64x256xf32>, vector<8x256xf32> -> vector<8x256xf32>
    %510 = arith.addf %508, %509 : vector<8x256xf32>
    %511 = vector.extract_strided_slice %510 {offsets = [0, 0], sizes = [8, 64], strides = [1, 1]} : vector<8x256xf32> to vector<8x64xf32>
    %512 = arith.negf %511 : vector<8x64xf32>
    %513 = math.exp %512 : vector<8x64xf32>
    %cst_187 = arith.constant 1.000000e+00 : f32
    %514 = vector.broadcast %cst_187 : f32 to vector<8x64xf32>
    %515 = arith.addf %514, %513 : vector<8x64xf32>
    %516 = arith.divf %514, %515 : vector<8x64xf32>
    %517 = vector.extract_strided_slice %510 {offsets = [0, 64], sizes = [8, 64], strides = [1, 1]} : vector<8x256xf32> to vector<8x64xf32>
    %518 = arith.negf %517 : vector<8x64xf32>
    %519 = math.exp %518 : vector<8x64xf32>
    %cst_188 = arith.constant 1.000000e+00 : f32
    %520 = vector.broadcast %cst_188 : f32 to vector<8x64xf32>
    %521 = arith.addf %520, %519 : vector<8x64xf32>
    %522 = arith.divf %520, %521 : vector<8x64xf32>
    %523 = vector.extract_strided_slice %510 {offsets = [0, 128], sizes = [8, 64], strides = [1, 1]} : vector<8x256xf32> to vector<8x64xf32>
    %524 = math.tanh %523 : vector<8x64xf32>
    %525 = vector.extract_strided_slice %510 {offsets = [0, 192], sizes = [8, 64], strides = [1, 1]} : vector<8x256xf32> to vector<8x64xf32>
    %526 = arith.negf %525 : vector<8x64xf32>
    %527 = math.exp %526 : vector<8x64xf32>
    %cst_189 = arith.constant 1.000000e+00 : f32
    %528 = vector.broadcast %cst_189 : f32 to vector<8x64xf32>
    %529 = arith.addf %528, %527 : vector<8x64xf32>
    %530 = arith.divf %528, %529 : vector<8x64xf32>
    %531 = arith.mulf %522, %503 : vector<8x64xf32>
    %532 = arith.mulf %516, %524 : vector<8x64xf32>
    %533 = arith.addf %531, %532 : vector<8x64xf32>
    %534 = math.tanh %533 : vector<8x64xf32>
    %535 = arith.mulf %530, %534 : vector<8x64xf32>
    %c48_190 = arith.constant 48 : index
    %c0_191 = arith.constant 0 : index
    %536 = vector.load %arg8[%c48_190, %c0_191] : memref<80x128xf32, #tpu.memory_space<vmem>>, vector<8x64xf32>
    tpu.vector_store %arg8[%c48_190, %c0_191], %535 {strides = array<i32>} : memref<80x128xf32, #tpu.memory_space<vmem>>, vector<8x64xf32>,
    %c24_192 = arith.constant 24 : index
    %c64_193 = arith.constant 64 : index
    %537 = vector.load %arg8[%c24_192, %c64_193] : memref<80x128xf32, #tpu.memory_space<vmem>>, vector<8x64xf32>
    tpu.vector_store %arg8[%c24_192, %c64_193], %535 {strides = array<i32>} : memref<80x128xf32, #tpu.memory_space<vmem>>, vector<8x64xf32>,
    %c56_194 = arith.constant 56 : index
    %c0_195 = arith.constant 0 : index
    %538 = vector.load %arg9[%c56_194, %c0_195] : memref<80x256xf32, #tpu.memory_space<vmem>>, vector<8x256xf32>
    %cst_196 = arith.constant dense<0.000000e+00> : vector<8x256xf32>
    %539 = tpu.matmul %535, %325, %cst_196 {dimension_numbers = #tpu.dot_dimension_numbers<[1], [0], [0], [1], [0, 0, 1, 1], [], []>} : vector<8x64xf32>, vector<64x256xf32>, vector<8x256xf32> -> vector<8x256xf32>
    %540 = arith.addf %538, %539 : vector<8x256xf32>
    %541 = vector.extract_strided_slice %540 {offsets = [0, 0], sizes = [8, 64], strides = [1, 1]} : vector<8x256xf32> to vector<8x64xf32>
    %542 = arith.negf %541 : vector<8x64xf32>
    %543 = math.exp %542 : vector<8x64xf32>
    %cst_197 = arith.constant 1.000000e+00 : f32
    %544 = vector.broadcast %cst_197 : f32 to vector<8x64xf32>
    %545 = arith.addf %544, %543 : vector<8x64xf32>
    %546 = arith.divf %544, %545 : vector<8x64xf32>
    %547 = vector.extract_strided_slice %540 {offsets = [0, 64], sizes = [8, 64], strides = [1, 1]} : vector<8x256xf32> to vector<8x64xf32>
    %548 = arith.negf %547 : vector<8x64xf32>
    %549 = math.exp %548 : vector<8x64xf32>
    %cst_198 = arith.constant 1.000000e+00 : f32
    %550 = vector.broadcast %cst_198 : f32 to vector<8x64xf32>
    %551 = arith.addf %550, %549 : vector<8x64xf32>
    %552 = arith.divf %550, %551 : vector<8x64xf32>
    %553 = vector.extract_strided_slice %540 {offsets = [0, 128], sizes = [8, 64], strides = [1, 1]} : vector<8x256xf32> to vector<8x64xf32>
    %554 = math.tanh %553 : vector<8x64xf32>
    %555 = vector.extract_strided_slice %540 {offsets = [0, 192], sizes = [8, 64], strides = [1, 1]} : vector<8x256xf32> to vector<8x64xf32>
    %556 = arith.negf %555 : vector<8x64xf32>
    %557 = math.exp %556 : vector<8x64xf32>
    %cst_199 = arith.constant 1.000000e+00 : f32
    %558 = vector.broadcast %cst_199 : f32 to vector<8x64xf32>
    %559 = arith.addf %558, %557 : vector<8x64xf32>
    %560 = arith.divf %558, %559 : vector<8x64xf32>
    %561 = arith.mulf %552, %533 : vector<8x64xf32>
    %562 = arith.mulf %546, %554 : vector<8x64xf32>
    %563 = arith.addf %561, %562 : vector<8x64xf32>
    %564 = math.tanh %563 : vector<8x64xf32>
    %565 = arith.mulf %560, %564 : vector<8x64xf32>
    %c56_200 = arith.constant 56 : index
    %c0_201 = arith.constant 0 : index
    %566 = vector.load %arg8[%c56_200, %c0_201] : memref<80x128xf32, #tpu.memory_space<vmem>>, vector<8x64xf32>
    tpu.vector_store %arg8[%c56_200, %c0_201], %565 {strides = array<i32>} : memref<80x128xf32, #tpu.memory_space<vmem>>, vector<8x64xf32>,
    %c16_202 = arith.constant 16 : index
    %c64_203 = arith.constant 64 : index
    %567 = vector.load %arg8[%c16_202, %c64_203] : memref<80x128xf32, #tpu.memory_space<vmem>>, vector<8x64xf32>
    tpu.vector_store %arg8[%c16_202, %c64_203], %565 {strides = array<i32>} : memref<80x128xf32, #tpu.memory_space<vmem>>, vector<8x64xf32>,
    %c64_204 = arith.constant 64 : index
    %c0_205 = arith.constant 0 : index
    %568 = vector.load %arg9[%c64_204, %c0_205] : memref<80x256xf32, #tpu.memory_space<vmem>>, vector<8x256xf32>
    %cst_206 = arith.constant dense<0.000000e+00> : vector<8x256xf32>
    %569 = tpu.matmul %565, %325, %cst_206 {dimension_numbers = #tpu.dot_dimension_numbers<[1], [0], [0], [1], [0, 0, 1, 1], [], []>} : vector<8x64xf32>, vector<64x256xf32>, vector<8x256xf32> -> vector<8x256xf32>
    %570 = arith.addf %568, %569 : vector<8x256xf32>
    %571 = vector.extract_strided_slice %570 {offsets = [0, 0], sizes = [8, 64], strides = [1, 1]} : vector<8x256xf32> to vector<8x64xf32>
    %572 = arith.negf %571 : vector<8x64xf32>
    %573 = math.exp %572 : vector<8x64xf32>
    %cst_207 = arith.constant 1.000000e+00 : f32
    %574 = vector.broadcast %cst_207 : f32 to vector<8x64xf32>
    %575 = arith.addf %574, %573 : vector<8x64xf32>
    %576 = arith.divf %574, %575 : vector<8x64xf32>
    %577 = vector.extract_strided_slice %570 {offsets = [0, 64], sizes = [8, 64], strides = [1, 1]} : vector<8x256xf32> to vector<8x64xf32>
    %578 = arith.negf %577 : vector<8x64xf32>
    %579 = math.exp %578 : vector<8x64xf32>
    %cst_208 = arith.constant 1.000000e+00 : f32
    %580 = vector.broadcast %cst_208 : f32 to vector<8x64xf32>
    %581 = arith.addf %580, %579 : vector<8x64xf32>
    %582 = arith.divf %580, %581 : vector<8x64xf32>
    %583 = vector.extract_strided_slice %570 {offsets = [0, 128], sizes = [8, 64], strides = [1, 1]} : vector<8x256xf32> to vector<8x64xf32>
    %584 = math.tanh %583 : vector<8x64xf32>
    %585 = vector.extract_strided_slice %570 {offsets = [0, 192], sizes = [8, 64], strides = [1, 1]} : vector<8x256xf32> to vector<8x64xf32>
    %586 = arith.negf %585 : vector<8x64xf32>
    %587 = math.exp %586 : vector<8x64xf32>
    %cst_209 = arith.constant 1.000000e+00 : f32
    %588 = vector.broadcast %cst_209 : f32 to vector<8x64xf32>
    %589 = arith.addf %588, %587 : vector<8x64xf32>
    %590 = arith.divf %588, %589 : vector<8x64xf32>
    %591 = arith.mulf %582, %563 : vector<8x64xf32>
    %592 = arith.mulf %576, %584 : vector<8x64xf32>
    %593 = arith.addf %591, %592 : vector<8x64xf32>
    %594 = math.tanh %593 : vector<8x64xf32>
    %595 = arith.mulf %590, %594 : vector<8x64xf32>
    %c64_210 = arith.constant 64 : index
    %c0_211 = arith.constant 0 : index
    %596 = vector.load %arg8[%c64_210, %c0_211] : memref<80x128xf32, #tpu.memory_space<vmem>>, vector<8x64xf32>
    tpu.vector_store %arg8[%c64_210, %c0_211], %595 {strides = array<i32>} : memref<80x128xf32, #tpu.memory_space<vmem>>, vector<8x64xf32>,
    %c8_212 = arith.constant 8 : index
    %c64_213 = arith.constant 64 : index
    %597 = vector.load %arg8[%c8_212, %c64_213] : memref<80x128xf32, #tpu.memory_space<vmem>>, vector<8x64xf32>
    tpu.vector_store %arg8[%c8_212, %c64_213], %595 {strides = array<i32>} : memref<80x128xf32, #tpu.memory_space<vmem>>, vector<8x64xf32>,
    %c72_214 = arith.constant 72 : index
    %c0_215 = arith.constant 0 : index
    %598 = vector.load %arg9[%c72_214, %c0_215] : memref<80x256xf32, #tpu.memory_space<vmem>>, vector<8x256xf32>
    %cst_216 = arith.constant dense<0.000000e+00> : vector<8x256xf32>
    %599 = tpu.matmul %595, %325, %cst_216 {dimension_numbers = #tpu.dot_dimension_numbers<[1], [0], [0], [1], [0, 0, 1, 1], [], []>} : vector<8x64xf32>, vector<64x256xf32>, vector<8x256xf32> -> vector<8x256xf32>
    %600 = arith.addf %598, %599 : vector<8x256xf32>
    %601 = vector.extract_strided_slice %600 {offsets = [0, 0], sizes = [8, 64], strides = [1, 1]} : vector<8x256xf32> to vector<8x64xf32>
    %602 = arith.negf %601 : vector<8x64xf32>
    %603 = math.exp %602 : vector<8x64xf32>
    %cst_217 = arith.constant 1.000000e+00 : f32
    %604 = vector.broadcast %cst_217 : f32 to vector<8x64xf32>
    %605 = arith.addf %604, %603 : vector<8x64xf32>
    %606 = arith.divf %604, %605 : vector<8x64xf32>
    %607 = vector.extract_strided_slice %600 {offsets = [0, 64], sizes = [8, 64], strides = [1, 1]} : vector<8x256xf32> to vector<8x64xf32>
    %608 = arith.negf %607 : vector<8x64xf32>
    %609 = math.exp %608 : vector<8x64xf32>
    %cst_218 = arith.constant 1.000000e+00 : f32
    %610 = vector.broadcast %cst_218 : f32 to vector<8x64xf32>
    %611 = arith.addf %610, %609 : vector<8x64xf32>
    %612 = arith.divf %610, %611 : vector<8x64xf32>
    %613 = vector.extract_strided_slice %600 {offsets = [0, 128], sizes = [8, 64], strides = [1, 1]} : vector<8x256xf32> to vector<8x64xf32>
    %614 = math.tanh %613 : vector<8x64xf32>
    %615 = vector.extract_strided_slice %600 {offsets = [0, 192], sizes = [8, 64], strides = [1, 1]} : vector<8x256xf32> to vector<8x64xf32>
    %616 = arith.negf %615 : vector<8x64xf32>
    %617 = math.exp %616 : vector<8x64xf32>
    %cst_219 = arith.constant 1.000000e+00 : f32
    %618 = vector.broadcast %cst_219 : f32 to vector<8x64xf32>
    %619 = arith.addf %618, %617 : vector<8x64xf32>
    %620 = arith.divf %618, %619 : vector<8x64xf32>
    %621 = arith.mulf %612, %593 : vector<8x64xf32>
    %622 = arith.mulf %606, %614 : vector<8x64xf32>
    %623 = arith.addf %621, %622 : vector<8x64xf32>
    %624 = math.tanh %623 : vector<8x64xf32>
    %625 = arith.mulf %620, %624 : vector<8x64xf32>
    %c72_220 = arith.constant 72 : index
    %c0_221 = arith.constant 0 : index
    %626 = vector.load %arg8[%c72_220, %c0_221] : memref<80x128xf32, #tpu.memory_space<vmem>>, vector<8x64xf32>
    tpu.vector_store %arg8[%c72_220, %c0_221], %625 {strides = array<i32>} : memref<80x128xf32, #tpu.memory_space<vmem>>, vector<8x64xf32>,
    %c0_222 = arith.constant 0 : index
    %c64_223 = arith.constant 64 : index
    %627 = vector.load %arg8[%c0_222, %c64_223] : memref<80x128xf32, #tpu.memory_space<vmem>>, vector<8x64xf32>
    tpu.vector_store %arg8[%c0_222, %c64_223], %625 {strides = array<i32>} : memref<80x128xf32, #tpu.memory_space<vmem>>, vector<8x64xf32>,
    %c72_224 = arith.constant 72 : index
    %c0_225 = arith.constant 0 : index
    %628 = vector.load %arg8[%c72_224, %c0_225] : memref<80x128xf32, #tpu.memory_space<vmem>>, vector<8x128xf32>
    %c0_226 = arith.constant 0 : index
    %629 = memref.load %arg0[%c0_226] : memref<2xf32, #tpu.memory_space<smem>>
    %630 = vector.broadcast %629 : f32 to vector<8x128xf32>
    %631 = arith.mulf %628, %630 : vector<8x128xf32>
    %c1_227 = arith.constant 1 : index
    %632 = memref.load %arg0[%c1_227] : memref<2xf32, #tpu.memory_space<smem>>
    %633 = vector.broadcast %632 : f32 to vector<8x128xf32>
    %634 = arith.addf %631, %633 : vector<8x128xf32>
    %cst_228 = arith.constant 0.000000e+00 : f32
    %635 = vector.broadcast %cst_228 : f32 to vector<8x128xf32>
    %636 = arith.maximumf %634, %635 : vector<8x128xf32>
    %c0_229 = arith.constant 0 : index
    %c0_230 = arith.constant 0 : index
    %637 = vector.load %arg5[%c0_229, %c0_230] : memref<128x5xf32, #tpu.memory_space<vmem>>, vector<128x5xf32>
    %cst_231 = arith.constant dense<0.000000e+00> : vector<8x5xf32>
    %638 = tpu.matmul %636, %637, %cst_231 {dimension_numbers = #tpu.dot_dimension_numbers<[1], [0], [0], [1], [0, 0, 1, 1], [], []>} : vector<8x128xf32>, vector<128x5xf32>, vector<8x5xf32> -> vector<8x5xf32>
    %c0_232 = arith.constant 0 : index
    %c0_233 = arith.constant 0 : index
    %639 = vector.load %arg6[%c0_232, %c0_233] : memref<1x5xf32, #tpu.memory_space<vmem>>, vector<1x5xf32>
    %640 = vector.broadcast %639 : vector<1x5xf32> to vector<8x5xf32>
    %641 = arith.addf %638, %640 : vector<8x5xf32>
    %c0_234 = arith.constant 0 : index
    %c0_235 = arith.constant 0 : index
    %642 = vector.load %arg7[%c0_234, %c0_235] : memref<8x5xf32, #tpu.memory_space<vmem>>, vector<8x5xf32>
    tpu.vector_store %arg7[%c0_234, %c0_235], %641 {strides = array<i32>} : memref<8x5xf32, #tpu.memory_space<vmem>>, vector<8x5xf32>,
    return
  }
}

</mosaic_0001>

<bundles_post_ra>
// kernel: tpu_custom_call.1
= control target key start
LH: loop header
LB: loop body
LE: loop exit
PB: predicated region body
PF: predicated region fallthrough
CT: control target
= control target key end

     0   :  { %12 = vsyncpa [#allocation7], 0  ;;  %s4252_s0 = inlined_call_operand.vmem [shape: f32[2], index: 0, kind: input, shape index: {}]   ;;  %s4253_s1 = inlined_call_operand.vmem [shape: f32[80,128], index: 1, kind: input, shape index: {}]   ;;  %s4254_s2 = inlined_call_operand.hbm [shape: f32[2,128,256], index: 2, kind: input, shape index: {}]   ;;  %s4255_s3 = inlined_call_operand.hbm [shape: f32[2,64,256], index: 3, kind: input, shape index: {}]   ;;  %s4256_s4 = inlined_call_operand.vmem [shape: f32[2,1,256], index: 4, kind: input, shape index: {}]   ;;  %s4257_s5 = inlined_call_operand.vmem [shape: f32[128,5], index: 5, kind: input, shape index: {}]   ;;  %s4258_s6 = inlined_call_operand.vmem [shape: f32[1,5], index: 6, kind: input, shape index: {}]   ;;  %s4259_s7 = inlined_call_operand.hbm [shape: f32[8,5], index: 7, kind: output, shape index: {}]  }
   0x1   :  { %13 = vsyncpa [#allocation5], 0 }
   0x2   :  { %14 = vsyncpa [#allocation10], 0 }
   0x3   :  { %15 = vsyncpa [#allocation6], 0  ;;  %s22_s26 = sshll.u32 %s4252_s0, 4  ;;  %s23_s26 = int_to_ptr.vmem [resolvable:$true] %s22_s26 }
   0x4   :  { %s3593_s27 = scalar_lea.vmem %s23_s26, 16  ;;  %p3598_p1 = scmp.lt.s32.totalorder %s23_s26, %s23_s26 }
   0x5   :  { %p3594_p0 = scmp.ne.s32.totalorder %s23_s26, %s3593_s27  ;;  %p3599_p2 = scmp.lt.s32.totalorder %s3593_s27, %s3593_s27 }
   0x7   :  { %p3600_p3 = por %p3599_p2, %p3598_p1 }
   0x9   :  { %p3601_p4 = pnand %p3600_p3, %p3594_p0 }
   0xb   :  { %3604 = shalt.err (!%p3601_p4)
}
   0xc   :  { %s3679_s28 = smov [#allocation4]   ;;  %s3680_s29 = smov [#allocation8]  }
   0xd   :  { %25 = dma.vmem_to_smem %s23_s26, 16, %s3679_s28, [#allocation7]  }
   0xe   :  { %s33_s30 = sshll.u32 %s3680_s29, 4  ;;  %s3605_s10 = scalar_lea.hbm %s4254_s2, 8192  ;;  %s34_s30 = int_to_ptr.vmem [resolvable:$true] %s33_s30 }
   0xf   :  { %p3606_p5 = scmp.ne.s32.totalorder %s4254_s2, %s3605_s10  ;;  %p3609_p6 = scmp.lt.u32.totalorder %s3605_s10, %s4254_s2 }
  0x11   :  { %p3611_p7 = pnand %p3609_p6, %p3606_p5 }
  0x13   :  { %3614 = shalt.err (!%p3611_p7)
}
  0x14   :  { %s3615_s14 = scalar_lea.vmem %s34_s30, 8192  ;;  %p3620_p9 = scmp.lt.s32.totalorder %s34_s30, %s34_s30 }
  0x15   :  { %p3616_p8 = scmp.ne.s32.totalorder %s34_s30, %s3615_s14  ;;  %p3621_p10 = scmp.lt.s32.totalorder %s3615_s14, %s3615_s14 }
  0x17   :  { %p3622_p11 = por %p3621_p10, %p3620_p9 }
  0x19   :  { %p3623_p12 = pnand %p3622_p11, %p3616_p8 }
  0x1b   :  { %3626 = shalt.err (!%p3623_p12)
}
  0x1c   :  { %s3681_s15 = smov 256   ;;  %s3682_s16 = smov 16  }
  0x1d   :  { %39 = dma.hbm_to_vmem [thread:$0]  %s4254_s2, 8192, %s34_s30, [#allocation5], %s3681_s15, %s3681_s15, %s3682_s16  }
  0x1e   :  { %s3683_s19 = smov [#allocation9]   ;;  %s3627_s23 = scalar_lea.hbm %s4255_s3, 4096 }
  0x1f   :  { %s45_s20 = sshll.u32 %s3683_s19, 4  ;;  %p3628_p13 = scmp.ne.s32.totalorder %s4255_s3, %s3627_s23  ;;  %s46_s20 = int_to_ptr.vmem [resolvable:$true] %s45_s20 }
  0x20   :  { %p3631_p0 = scmp.lt.u32.totalorder %s3627_s23, %s4255_s3 }
  0x22   :  { %p3633_p1 = pnand %p3631_p0, %p3628_p13 }
  0x24   :  { %3636 = shalt.err (!%p3633_p1)
}
  0x25   :  { %s3637_s28 = scalar_lea.vmem %s46_s20, 4096  ;;  %p3642_p3 = scmp.lt.s32.totalorder %s46_s20, %s46_s20 }
  0x26   :  { %p3638_p2 = scmp.ne.s32.totalorder %s46_s20, %s3637_s28  ;;  %p3643_p4 = scmp.lt.s32.totalorder %s3637_s28, %s3637_s28 }
  0x28   :  { %p3644_p5 = por %p3643_p4, %p3642_p3 }
  0x2a   :  { %p3645_p6 = pnand %p3644_p5, %p3638_p2 }
  0x2c   :  { %3648 = shalt.err (!%p3645_p6)
}
  0x2d   :  { %51 = dma.hbm_to_vmem [thread:$0]  %s4255_s3, 4096, %s46_s20, [#allocation10], %s3681_s15, %s3681_s15, %s3682_s16  }
  0x2e   :  { %3671 = dma.done.wait [#allocation7], 16  }
  0x2f   :  { %3672 = vsyncadd [#allocation7], 4294967280 }
  0x30   :  { %3673 = dma.done.wait [#allocation5], 8192  }
  0x31   :  { %3674 = vsyncadd [#allocation5], 4294959104 }
  0x32   :  { %3675 = dma.done.wait [#allocation10], 4096  }
  0x33   :  { %3676 = vsyncadd [#allocation10], 4294963200 }
  0x34   :  { %67 = sfence }
  0x35   :  { %v99_v0 = vld [vmem:[#allocation8 + $0x8] sm:$0xff]  ;;  %v101_v1 = vld [vmem:[#allocation8 + $0x18] sm:$0xff]  ;;  %v98_v2 = vld [vmem:[#allocation8] sm:$0xff]  ;;  %v3684_v7 = vmov 0.0   ;;  %s3685_s10 = smov 64   ;;  %vm409_vm0 = vcmask 1048064  }
  0x36   :  { %v2855_v3 = vpack.c.bf16 %v101_v1, %v99_v0  ;;  %v100_v4 = vld [vmem:[#allocation8 + $0x10] sm:$0xff]  ;;  %v103_v5 = vld [vmem:[#allocation8 + $0x28] sm:$0xff]  ;;  %v105_v6 = vld [vmem:[#allocation8 + $0x38] sm:$0xff]  ;;  %206 = vmatprep.mubr.f32.mxu0 %v3684_v7  ;;  %373 = vmatprep.mubr.f32.mxu1 %v3684_v7  ;;  %vm305_vm1 = vcmask 523264   ;;  %vm3687_vm2 = vmmov 0   ;;  %s2623_s8 = sld [smem:[#allocation4]] }
  0x37   :  { %v2857_v8 = vpack.c.bf16 %v100_v4, %v98_v2  ;;  %v2859_v9 = vpack.c.bf16 %v105_v6, %v103_v5  ;;  %v102_v10 = vld [vmem:[#allocation8 + $0x20] sm:$0xff]  ;;  %v104_v11 = vld [vmem:[#allocation8 + $0x30] sm:$0xff]  ;;  %v107_v12 = vld [vmem:[#allocation8 + $0x48] sm:$0xff]  ;;  %s2801_s9 = sld [smem:[#allocation4 + $0x1]]  ;;  %s3688_s12 = smov [#allocation11]   ;;  %vm2723_vm3 = vcmask 39936  }
  0x38   :  { %2856 = vmatprep.subr.bf16.mxu0 %v2855_v3  ;;  %v109_v13 = vld [vmem:[#allocation8 + $0x58] sm:$0xff]  ;;  %v2861_v14 = vpack.c.bf16 %v104_v11, %v102_v10  ;;  %v106_v16 = vld [vmem:[#allocation8 + $0x40] sm:$0xff]  ;;  %v108_v17 = vld [vmem:[#allocation8 + $0x50] sm:$0xff]  ;;  %v132_v11 = vlaneseq }
  0x39   :  { %2858 = vmatpush1.bf16.msra.mxu0 %v2857_v8  ;;  %v2863_v15 = vpack.c.bf16 %v109_v13, %v107_v12  ;;  %v111_v18 = vld [vmem:[#allocation8 + $0x68] sm:$0xff]  ;;  %v113_v19 = vld [vmem:[#allocation8 + $0x78] sm:$0xff]  ;;  %v287_v22 = vld [vmem:[#allocation9] sm:$0xff]  ;;  %v2865_v24 = vpack.c.bf16 %v108_v17, %v106_v16 }
  0x3a   :  { %2860 = vmatprep.subr.bf16.mxu0 %v2859_v9  ;;  %v288_v20 = vld [vmem:[#allocation9 + $0x8] sm:$0xff]  ;;  %v290_v21 = vld [vmem:[#allocation9 + $0x18] sm:$0xff]  ;;  %v289_v23 = vld [vmem:[#allocation9 + $0x10] sm:$0xff]  ;;  %v2867_v29 = vpack.c.bf16 %v113_v19, %v111_v18  ;;  %v3797_v12 = vshrl.u32 %v132_v11, 7 }
  0x3b   :  { %v110_v25 = vld [vmem:[#allocation8 + $0x60] sm:$0xff]  ;;  %v112_v26 = vld [vmem:[#allocation8 + $0x70] sm:$0xff]  ;;  %v3758_v27 = vpack.c.bf16 %v290_v21, %v288_v20  ;;  %v3760_v28 = vpack.c.bf16 %v289_v23, %v287_v22  ;;  %v115_v30 = vld [vmem:[#allocation8 + $0x88] sm:$0xff] }
  0x3c   :  { %v292_v31 = vld [vmem:[#allocation9 + $0x28] sm:$0xff]  ;;  %v294_v32 = vld [vmem:[#allocation9 + $0x38] sm:$0xff]  ;;  %v291_v35 = vld [vmem:[#allocation9 + $0x20] sm:$0xff]  ;;  %v2869_v38 = vpack.c.bf16 %v112_v26, %v110_v25  ;;  %v138_v17 = vsub.s32 1, %v3797_v12 }
  0x3d   :  { %2862 = vmatpush1.bf16.msra.mxu0 %v2861_v14  ;;  %v117_v33 = vld [vmem:[#allocation8 + $0x98] sm:$0xff]  ;;  %2888 = vmatprep.subr.bf16.mxu1 %v3758_v27  ;;  %v3763_v34 = vpack.c.bf16 %v294_v32, %v292_v31  ;;  %v293_v36 = vld [vmem:[#allocation9 + $0x30] sm:$0xff]  ;;  %v296_v39 = vld [vmem:[#allocation9 + $0x48] sm:$0xff] }
  0x3e   :  { %2864 = vmatprep.subr.bf16.mxu0 %v2863_v15  ;;  %2890 = vmatpush1.bf16.msra.mxu1 %v3760_v28  ;;  %v3766_v37 = vpack.c.bf16 %v293_v36, %v291_v35  ;;  %v298_v40 = vld [vmem:[#allocation9 + $0x58] sm:$0xff]  ;;  %v295_v41 = vld [vmem:[#allocation9 + $0x40] sm:$0xff]  ;;  %v2871_v42 = vpack.c.bf16 %v117_v33, %v115_v30  ;;  %v116_v44 = vld [vmem:[#allocation8 + $0x90] sm:$0xff]  ;;  %v134_v15 = vsub.s32 0, %v3797_v12 }
  0x3f   :  { %2892 = vmatprep.subr.bf16.mxu1 %v3763_v34  ;;  %v114_v43 = vld [vmem:[#allocation8 + $0x80] sm:$0xff]  ;;  %v3769_v45 = vpack.c.bf16 %v298_v40, %v296_v39  ;;  %v297_v46 = vld [vmem:[#allocation9 + $0x50] sm:$0xff]  ;;  %v119_v47 = vld [vmem:[#allocation8 + $0xa8] sm:$0xff] }
  0x40   :  { %v121_v48 = vld [vmem:[#allocation8 + $0xb8] sm:$0xff]  ;;  %v300_v49 = vld [vmem:[#allocation9 + $0x68] sm:$0xff]  ;;  %v3772_v50 = vpack.c.bf16 %v297_v46, %v295_v41  ;;  %v2873_v52 = vpack.c.bf16 %v116_v44, %v114_v43  ;;  %v299_v54 = vld [vmem:[#allocation9 + $0x60] sm:$0xff] }
  0x41   :  { %2866 = vmatpush1.bf16.msra.mxu0 %v2865_v24  ;;  %v302_v51 = vld [vmem:[#allocation9 + $0x78] sm:$0xff]  ;;  %v301_v55 = vld [vmem:[#allocation9 + $0x70] sm:$0xff]  ;;  %v2875_v57 = vpack.c.bf16 %v121_v48, %v119_v47  ;;  %v118_v58 = vld [vmem:[#allocation8 + $0xa0] sm:$0xff] }
  0x42   :  { %2868 = vmatprep.subr.bf16.mxu0 %v2867_v29  ;;  %2894 = vmatpush1.bf16.msra.mxu1 %v3766_v37  ;;  %v3775_v53 = vpack.c.bf16 %v302_v51, %v300_v49  ;;  %v68_v56 = vld [vmem:[%s4253_s1] sm:$0xff]  ;;  %v123_v60 = vld [vmem:[#allocation8 + $0xc8] sm:$0xff]  ;;  %v125_v61 = vld [vmem:[#allocation8 + $0xd8] sm:$0xff]  ;;  %v3781_v62 = vpack.c.bf16 %v301_v55, %v299_v54 }
  0x43   :  { %2896 = vmatprep.subr.bf16.mxu1 %v3769_v45  ;;  %v120_v59 = vld [vmem:[#allocation8 + $0xb0] sm:$0xff]  ;;  %78 = vst [vmem:[#allocation2] sm:$0xff] %v68_v56  ;;  %v2879_v0 = vpack.c.bf16 %v125_v61, %v123_v60  ;;  %v122_v1 = vld [vmem:[#allocation8 + $0xc0] sm:$0xff]  ;;  %v127_v3 = vld [vmem:[#allocation8 + $0xe8] sm:$0xff] }
  0x44   :  { %v2877_v63 = vpack.c.bf16 %v120_v59, %v118_v58  ;;  %v124_v2 = vld [vmem:[#allocation8 + $0xd0] sm:$0xff]  ;;  %v129_v4 = vld [vmem:[#allocation8 + $0xf8] sm:$0xff]  ;;  %v126_v8 = vld [vmem:[#allocation8 + $0xe0] sm:$0xff] }
  0x45   :  { %2870 = vmatpush1.bf16.msra.mxu0 %v2869_v38  ;;  %v2881_v5 = vpack.c.bf16 %v124_v2, %v122_v1  ;;  %v2883_v6 = vpack.c.bf16 %v129_v4, %v127_v3  ;;  %v128_v9 = vld [vmem:[#allocation8 + $0xf0] sm:$0xff]  ;;  %v77_v35 = vld [vmem:[%s4253_s1 + $0x48] sm:$0xff]  ;;  %v70_v38 = vld [vmem:[%s4253_s1 + $0x10] sm:$0xff] }
  0x46   :  { %2872 = vmatprep.subr.bf16.mxu0 %v2871_v42  ;;  %2898 = vmatpush1.bf16.msra.mxu1 %v3772_v50  ;;  %v2885_v10 = vpack.c.bf16 %v128_v9, %v126_v8  ;;  %v130_v16 = vld [vmem:[%s4256_s4] sm:$0x3]  ;;  %87 = vst [vmem:[#allocation2 + $0x48] sm:$0xff] %v77_v35  ;;  %v69_v36 = vld [vmem:[%s4253_s1 + $0x8] sm:$0xff]  ;;  %v71_v39 = vld [vmem:[%s4253_s1 + $0x18] sm:$0xff] }
  0x47   :  { %2900 = vmatprep.subr.bf16.mxu1 %v3775_v53  ;;  %v3806_v18 = vrot.slane %v130_v16, %v134_v15  ;;  %v3810_v19 = vrot.slane %v130_v16, %v138_v17  ;;  %79 = vst [vmem:[#allocation2 + $0x8] sm:$0xff] %v69_v36  ;;  %80 = vst [vmem:[#allocation2 + $0x10] sm:$0xff] %v70_v38  ;;  %v72_v40 = vld [vmem:[%s4253_s1 + $0x20] sm:$0xff]  ;;  %v73_v41 = vld [vmem:[%s4253_s1 + $0x28] sm:$0xff] }
  0x48   :  { %81 = vst [vmem:[#allocation2 + $0x18] sm:$0xff] %v71_v39  ;;  %v74_v42 = vld [vmem:[%s4253_s1 + $0x30] sm:$0xff]  ;;  %82 = vst [vmem:[#allocation2 + $0x20] sm:$0xff] %v72_v40  ;;  %v75_v43 = vld [vmem:[%s4253_s1 + $0x38] sm:$0xff] }
  0x49   :  { %2874 = vmatpush1.bf16.msra.mxu0 %v2873_v52  ;;  %83 = vst [vmem:[#allocation2 + $0x28] sm:$0xff] %v73_v41  ;;  %84 = vst [vmem:[#allocation2 + $0x30] sm:$0xff] %v74_v42  ;;  %v76_v44 = vld [vmem:[%s4253_s1 + $0x40] sm:$0xff] }
  0x4a   :  { %2876 = vmatprep.subr.bf16.mxu0 %v2875_v57  ;;  %2902 = vmatpush1.bf16.msra.mxu1 %v3781_v62  ;;  %85 = vst [vmem:[#allocation2 + $0x38] sm:$0xff] %v75_v43  ;;  %86 = vst [vmem:[#allocation2 + $0x40] sm:$0xff] %v76_v44 }
  0x4d   :  { %2878 = vmatpush1.bf16.msra.mxu0 %v2877_v63  ;;  %374 = vmatmul.mubr.f32.vlgmr.msra.gmra.mrb[0].mxu1 %v3684_v7 }
  0x4e   :  { %2880 = vmatprep.subr.bf16.mxu0 %v2879_v0  ;;  %1476 = vmatprep.mubr.f32.mxu1 %v3684_v7 }
  0x51   :  { %2882 = vmatpush1.bf16.msra.mxu0 %v2881_v5 }
  0x52   :  { %2884 = vmatprep.subr.bf16.mxu0 %v2883_v6 }
  0x55   :  { %2886 = vmatpush1.bf16.msra.mxu0 %v2885_v10 }
  0x56   :  { %2904 = vmatprep.subr.bf16.mxu0 %v3758_v27 }
  0x58   :  { %207 = vmatmul.mubr.f32.vlgmr.msra.gmra.mrb[0].mxu0 %v68_v56 }
  0x59   :  { %2906 = vmatpush1.bf16.msra.mxu0 %v3760_v28  ;;  %212 = vmatprep.mubr.f32.mxu0 %v3684_v7 }
  0x5a   :  { %2908 = vmatprep.subr.bf16.mxu0 %v3763_v34 }
  0x5c   :  { %213 = vmatmul.mubr.f32.gmra.mrb[2].mxu0 %v69_v36 }
  0x5d   :  { %2910 = vmatpush1.bf16.msra.mxu0 %v3766_v37  ;;  %218 = vmatprep.mubr.f32.mxu0 %v3684_v7 }
  0x5e   :  { %2912 = vmatprep.subr.bf16.mxu0 %v3769_v45 }
  0x60   :  { %219 = vmatmul.mubr.f32.gmra.mrb[4].mxu0 %v70_v38 }
  0x61   :  { %2914 = vmatpush1.bf16.msra.mxu0 %v3772_v50  ;;  %224 = vmatprep.mubr.f32.mxu0 %v3684_v7 }
  0x62   :  { %2916 = vmatprep.subr.bf16.mxu0 %v3775_v53 }
  0x64   :  { %225 = vmatmul.mubr.f32.gmra.mrb[6].mxu0 %v71_v39 }
  0x65   :  { %2918 = vmatpush1.bf16.msra.mxu0 %v3781_v62  ;;  %230 = vmatprep.mubr.f32.mxu0 %v3684_v7 }
  0x66   :  { %2920 = vmatprep.subr.bf16.mxu0 %v3758_v27 }
  0x68   :  { %231 = vmatmul.mubr.f32.gmra.mrb[8].mxu0 %v72_v40 }
  0x69   :  { %236 = vmatprep.mubr.f32.mxu0 %v3684_v7 }
  0x6c   :  { %237 = vmatmul.mubr.f32.gmra.mrb[10].mxu0 %v73_v41 }
  0x6d   :  { %242 = vmatprep.mubr.f32.mxu0 %v3684_v7 }
  0x70   :  { %243 = vmatmul.mubr.f32.gmra.mrb[12].mxu0 %v74_v42 }
  0x71   :  { %248 = vmatprep.mubr.f32.mxu0 %v3684_v7 }
  0x74   :  { %249 = vmatmul.mubr.f32.gmra.mrb[14].mxu0 %v75_v43 }
  0x75   :  { %254 = vmatprep.mubr.f32.mxu0 %v3684_v7 }
  0x78   :  { %255 = vmatmul.mubr.f32.gmra.mrb[16].mxu0 %v76_v44 }
  0x79   :  { %260 = vmatprep.mubr.f32.mxu0 %v3684_v7 }
  0x7c   :  { %261 = vmatmul.mubr.f32.gmra.mrb[18].mxu0 %v77_v35 }
  0x7d   :  { %479 = vmatprep.mubr.f32.mxu0 %v3684_v7 }
 0x120   :  { %v375_v13 = vpop.f32.mrb[0].mxu1 }
 0x121   :  { %v377_v14 = vpop.f32.mrb[1].mxu1 }
 0x12b   :  { %v208_v20 = vpop.f32.mrb[0].mxu0 }
 0x12c   :  { %v209_v21 = vadd.f32 %v208_v20, %v3806_v18  ;;  %v210_v22 = vpop.f32.mrb[1].mxu0 }
 0x12d   :  { %v211_v23 = vadd.f32 %v210_v22, %v3810_v19 }
 0x12e   :  { %v380_v24 = vadd.f32 %v375_v13, %v209_v21 }
 0x12f   :  { %v381_v25 = vadd.f32 %v377_v14, %v211_v23 }
 0x130   :  { %v2742_v26 = vmul.f32 -1.442695, %v380_v24 }
 0x131   :  { %v2743_v46 = vmul.f32 -1.442695, %v381_v25 }
 0x132   :  { %3353 = vpow2.f32 %v2742_v26 }
 0x133   :  { %3355 = vtanh.f32 %v381_v25 }
 0x13c   :  { %v3354_v29 = vpop.eup %3353 }
 0x13d   :  { %v385_v30 = vadd.f32 1.0, %v3354_v29  ;;  %v3356_v31 = vpop.eup %3355 }
 0x13f   :  { %3357 = vrcp.f32 %v385_v30 }
 0x140   :  { %3359 = vpow2.f32 %v2743_v46 }
 0x149   :  { %v3358_v32 = vpop.eup %3357 }
 0x14a   :  { %v396_v33 = vmul.f32 %v3358_v32, %v3356_v31  ;;  %v3360_v47 = vpop.eup %3359  ;;  %v395_v49 = vmul.f32 0.0, %v3358_v32 }
 0x14b   :  { %v392_v48 = vadd.f32 1.0, %v3360_v47 }
 0x14c   :  { %398 = vrot.lane.b32.xlu0 %v396_v33, %s3685_s10 }
 0x14d   :  { %3361 = vrcp.f32 %v392_v48 }
 0x157   :  { %v3362_v54 = vpop.eup %3361 }
 0x1be   :  { %v399_v51 = vpop.permute.xlu0 %398 }
 0x1bf   :  { %v401_v52 = vadd.f32 %v399_v51, %v395_v49 }
 0x1c1   :  { %3363 = vtanh.f32 %v401_v52 }
 0x1cb   :  { %v3364_v55 = vpop.eup %3363 }
 0x1cc   :  { %v403_v56 = vmul.f32 %v3364_v55, %v3362_v54 }
 0x1ce   :  { %405 = vrot.lane.b32.xlu0 %v403_v56, %s3685_s10  ;;  %410 = vst.msk [vmem:[#allocation2 + $0x48] sm:$0xff] %vm409_vm0, %v403_v56 }
 0x240   :  { %v406_v57 = vpop.permute.xlu0 %405 }
 0x241   :  { %408 = vst.msk [vmem:[#allocation2] sm:$0xff] %vm305_vm1, %v406_v57  ;;  %2744 = vmatmul.mubr.msk.f32.vlgmr.msra.gmra.mrb[2].mxu0 %vm305_vm1, %v406_v57 }
 0x242   :  { %2922 = vmatpush1.bf16.msra.mxu0 %v3760_v28  ;;  %584 = vmatprep.mubr.f32.mxu0 %v3684_v7 }
 0x243   :  { %2924 = vmatprep.subr.bf16.mxu0 %v3763_v34 }
 0x246   :  { %2926 = vmatpush1.bf16.msra.mxu0 %v3766_v37 }
 0x247   :  { %2928 = vmatprep.subr.bf16.mxu0 %v3769_v45 }
 0x24a   :  { %2930 = vmatpush1.bf16.msra.mxu0 %v3772_v50 }
 0x24b   :  { %2932 = vmatprep.subr.bf16.mxu0 %v3775_v53 }
 0x24e   :  { %2934 = vmatpush1.bf16.msra.mxu0 %v3781_v62 }
 0x24f   :  { %2936 = vmatprep.subr.bf16.mxu0 %v3758_v27 }
 0x314   :  { %v481_v58 = vpop.f32.mrb[2].mxu0 }
 0x315   :  { %v3267_v59 = vadd.f32 %v481_v58, %v3806_v18  ;;  %v483_v60 = vpop.f32.mrb[3].mxu0 }
 0x316   :  { %v3268_v63 = vadd.f32 %v483_v60, %v3810_v19 }
 0x317   :  { %v2745_v61 = vmul.f32 -1.442695, %v3267_v59 }
 0x318   :  { %v2746_v5 = vmul.f32 -1.442695, %v3268_v63 }
 0x319   :  { %3365 = vpow2.f32 %v2745_v61 }
 0x31a   :  { %3367 = vtanh.f32 %v3268_v63 }
 0x323   :  { %v3366_v0 = vpop.eup %3365 }
 0x324   :  { %v491_v1 = vadd.f32 1.0, %v3366_v0  ;;  %v3368_v2 = vpop.eup %3367 }
 0x326   :  { %3369 = vrcp.f32 %v491_v1 }
 0x327   :  { %3371 = vpow2.f32 %v2746_v5 }
 0x330   :  { %v3370_v3 = vpop.eup %3369 }
 0x331   :  { %v502_v4 = vmul.f32 %v3370_v3, %v3368_v2  ;;  %v3372_v6 = vpop.eup %3371  ;;  %v501_v9 = vmul.f32 %v3370_v3, %v401_v52 }
 0x332   :  { %v498_v8 = vadd.f32 1.0, %v3372_v6 }
 0x333   :  { %504 = vrot.lane.b32.xlu1 %v502_v4, %s3685_s10 }
 0x334   :  { %3373 = vrcp.f32 %v498_v8 }
 0x33e   :  { %v3374_v13 = vpop.eup %3373 }
 0x3a5   :  { %v505_v10 = vpop.permute.xlu1 %504 }
 0x3a6   :  { %v507_v11 = vadd.f32 %v505_v10, %v501_v9 }
 0x3a8   :  { %3375 = vtanh.f32 %v507_v11 }
 0x3b2   :  { %v3376_v14 = vpop.eup %3375 }
 0x3b3   :  { %v509_v16 = vmul.f32 %v3376_v14, %v3374_v13 }
 0x3b5   :  { %511 = vrot.lane.b32.xlu1 %v509_v16, %s3685_s10  ;;  %515 = vst.msk [vmem:[#allocation2 + $0x40] sm:$0xff] %vm409_vm0, %v509_v16 }
 0x427   :  { %v512_v20 = vpop.permute.xlu1 %511 }
 0x428   :  { %514 = vst.msk [vmem:[#allocation2 + $0x8] sm:$0xff] %vm305_vm1, %v512_v20  ;;  %2747 = vmatmul.mubr.msk.f32.vlgmr.msra.gmra.mrb[4].mxu0 %vm305_vm1, %v512_v20 }
 0x429   :  { %2938 = vmatpush1.bf16.msra.mxu0 %v3760_v28  ;;  %689 = vmatprep.mubr.f32.mxu0 %v3684_v7 }
 0x42a   :  { %2940 = vmatprep.subr.bf16.mxu0 %v3763_v34 }
 0x42d   :  { %2942 = vmatpush1.bf16.msra.mxu0 %v3766_v37 }
 0x42e   :  { %2944 = vmatprep.subr.bf16.mxu0 %v3769_v45 }
 0x431   :  { %2946 = vmatpush1.bf16.msra.mxu0 %v3772_v50 }
 0x432   :  { %2948 = vmatprep.subr.bf16.mxu0 %v3775_v53 }
 0x435   :  { %2950 = vmatpush1.bf16.msra.mxu0 %v3781_v62 }
 0x436   :  { %2952 = vmatprep.subr.bf16.mxu0 %v3758_v27 }
 0x4fb   :  { %v586_v21 = vpop.f32.mrb[4].mxu0 }
 0x4fc   :  { %v3269_v22 = vadd.f32 %v586_v21, %v3806_v18  ;;  %v588_v23 = vpop.f32.mrb[5].mxu0 }
 0x4fd   :  { %v3270_v25 = vadd.f32 %v588_v23, %v3810_v19 }
 0x4fe   :  { %v2748_v24 = vmul.f32 -1.442695, %v3269_v22 }
 0x4ff   :  { %v2749_v33 = vmul.f32 -1.442695, %v3270_v25 }
 0x500   :  { %3377 = vpow2.f32 %v2748_v24 }
 0x501   :  { %3379 = vtanh.f32 %v3270_v25 }
 0x50a   :  { %v3378_v26 = vpop.eup %3377 }
 0x50b   :  { %v596_v29 = vadd.f32 1.0, %v3378_v26  ;;  %v3380_v30 = vpop.eup %3379 }
 0x50d   :  { %3381 = vrcp.f32 %v596_v29 }
 0x50e   :  { %3383 = vpow2.f32 %v2749_v33 }
 0x517   :  { %v3382_v31 = vpop.eup %3381 }
 0x518   :  { %v607_v32 = vmul.f32 %v3382_v31, %v3380_v30  ;;  %v3384_v35 = vpop.eup %3383  ;;  %v606_v38 = vmul.f32 %v3382_v31, %v507_v11 }
 0x519   :  { %v603_v36 = vadd.f32 1.0, %v3384_v35 }
 0x51a   :  { %609 = vrot.lane.b32.xlu0 %v607_v32, %s3685_s10 }
 0x51b   :  { %3385 = vrcp.f32 %v603_v36 }
 0x525   :  { %v3386_v41 = vpop.eup %3385 }
 0x58c   :  { %v610_v39 = vpop.permute.xlu0 %609 }
 0x58d   :  { %v612_v40 = vadd.f32 %v610_v39, %v606_v38 }
 0x58f   :  { %3387 = vtanh.f32 %v612_v40 }
 0x599   :  { %v3388_v42 = vpop.eup %3387 }
 0x59a   :  { %v614_v43 = vmul.f32 %v3388_v42, %v3386_v41 }
 0x59c   :  { %616 = vrot.lane.b32.xlu1 %v614_v43, %s3685_s10  ;;  %620 = vst.msk [vmem:[#allocation2 + $0x38] sm:$0xff] %vm409_vm0, %v614_v43 }
 0x60e   :  { %v617_v44 = vpop.permute.xlu1 %616 }
 0x60f   :  { %619 = vst.msk [vmem:[#allocation2 + $0x10] sm:$0xff] %vm305_vm1, %v617_v44  ;;  %2750 = vmatmul.mubr.msk.f32.vlgmr.msra.gmra.mrb[6].mxu0 %vm305_vm1, %v617_v44 }
 0x610   :  { %2954 = vmatpush1.bf16.msra.mxu0 %v3760_v28  ;;  %794 = vmatprep.mubr.f32.mxu0 %v3684_v7 }
 0x611   :  { %2956 = vmatprep.subr.bf16.mxu0 %v3763_v34 }
 0x614   :  { %2958 = vmatpush1.bf16.msra.mxu0 %v3766_v37 }
 0x615   :  { %2960 = vmatprep.subr.bf16.mxu0 %v3769_v45 }
 0x618   :  { %2962 = vmatpush1.bf16.msra.mxu0 %v3772_v50 }
 0x619   :  { %2964 = vmatprep.subr.bf16.mxu0 %v3775_v53 }
 0x61c   :  { %2966 = vmatpush1.bf16.msra.mxu0 %v3781_v62 }
 0x61d   :  { %2968 = vmatprep.subr.bf16.mxu0 %v3758_v27 }
 0x6e2   :  { %v691_v46 = vpop.f32.mrb[6].mxu0 }
 0x6e3   :  { %v3271_v47 = vadd.f32 %v691_v46, %v3806_v18  ;;  %v693_v48 = vpop.f32.mrb[7].mxu0 }
 0x6e4   :  { %v3272_v51 = vadd.f32 %v693_v48, %v3810_v19 }
 0x6e5   :  { %v2751_v49 = vmul.f32 -1.442695, %v3271_v47 }
 0x6e6   :  { %v2752_v58 = vmul.f32 -1.442695, %v3272_v51 }
 0x6e7   :  { %3389 = vpow2.f32 %v2751_v49 }
 0x6e8   :  { %3391 = vtanh.f32 %v3272_v51 }
 0x6f1   :  { %v3390_v52 = vpop.eup %3389 }
 0x6f2   :  { %v701_v54 = vadd.f32 1.0, %v3390_v52  ;;  %v3392_v55 = vpop.eup %3391 }
 0x6f4   :  { %3393 = vrcp.f32 %v701_v54 }
 0x6f5   :  { %3395 = vpow2.f32 %v2752_v58 }
 0x6fe   :  { %v3394_v56 = vpop.eup %3393 }
 0x6ff   :  { %v712_v57 = vmul.f32 %v3394_v56, %v3392_v55  ;;  %v3396_v59 = vpop.eup %3395  ;;  %v711_v61 = vmul.f32 %v3394_v56, %v612_v40 }
 0x700   :  { %v708_v60 = vadd.f32 1.0, %v3396_v59 }
 0x701   :  { %714 = vrot.lane.b32.xlu0 %v712_v57, %s3685_s10 }
 0x702   :  { %3397 = vrcp.f32 %v708_v60 }
 0x70c   :  { %v3398_v1 = vpop.eup %3397 }
 0x773   :  { %v715_v63 = vpop.permute.xlu0 %714 }
 0x774   :  { %v717_v0 = vadd.f32 %v715_v63, %v711_v61 }
 0x776   :  { %3399 = vtanh.f32 %v717_v0 }
 0x780   :  { %v3400_v2 = vpop.eup %3399 }
 0x781   :  { %v719_v3 = vmul.f32 %v3400_v2, %v3398_v1 }
 0x783   :  { %721 = vrot.lane.b32.xlu1 %v719_v3, %s3685_s10  ;;  %725 = vst.msk [vmem:[#allocation2 + $0x30] sm:$0xff] %vm409_vm0, %v719_v3 }
 0x7f5   :  { %v722_v4 = vpop.permute.xlu1 %721 }
 0x7f6   :  { %724 = vst.msk [vmem:[#allocation2 + $0x18] sm:$0xff] %vm305_vm1, %v722_v4  ;;  %2753 = vmatmul.mubr.msk.f32.vlgmr.msra.gmra.mrb[8].mxu0 %vm305_vm1, %v722_v4 }
 0x7f7   :  { %2970 = vmatpush1.bf16.msra.mxu0 %v3760_v28  ;;  %899 = vmatprep.mubr.f32.mxu0 %v3684_v7 }
 0x7f8   :  { %2972 = vmatprep.subr.bf16.mxu0 %v3763_v34 }
 0x7fb   :  { %2974 = vmatpush1.bf16.msra.mxu0 %v3766_v37 }
 0x7fc   :  { %2976 = vmatprep.subr.bf16.mxu0 %v3769_v45 }
 0x7ff   :  { %2978 = vmatpush1.bf16.msra.mxu0 %v3772_v50 }
 0x800   :  { %2980 = vmatprep.subr.bf16.mxu0 %v3775_v53 }
 0x803   :  { %2982 = vmatpush1.bf16.msra.mxu0 %v3781_v62 }
 0x804   :  { %2984 = vmatprep.subr.bf16.mxu0 %v3758_v27 }
 0x8c9   :  { %v796_v5 = vpop.f32.mrb[8].mxu0 }
 0x8ca   :  { %v3273_v6 = vadd.f32 %v796_v5, %v3806_v18  ;;  %v798_v8 = vpop.f32.mrb[9].mxu0 }
 0x8cb   :  { %v3274_v10 = vadd.f32 %v798_v8, %v3810_v19 }
 0x8cc   :  { %v2754_v9 = vmul.f32 -1.442695, %v3273_v6 }
 0x8cd   :  { %v2755_v21 = vmul.f32 -1.442695, %v3274_v10 }
 0x8ce   :  { %3401 = vpow2.f32 %v2754_v9 }
 0x8cf   :  { %3403 = vtanh.f32 %v3274_v10 }
 0x8d8   :  { %v3402_v11 = vpop.eup %3401 }
 0x8d9   :  { %v806_v13 = vadd.f32 1.0, %v3402_v11  ;;  %v3404_v14 = vpop.eup %3403 }
 0x8db   :  { %3405 = vrcp.f32 %v806_v13 }
 0x8dc   :  { %3407 = vpow2.f32 %v2755_v21 }
 0x8e5   :  { %v3406_v16 = vpop.eup %3405 }
 0x8e6   :  { %v817_v20 = vmul.f32 %v3406_v16, %v3404_v14  ;;  %v3408_v22 = vpop.eup %3407  ;;  %v816_v24 = vmul.f32 %v3406_v16, %v717_v0 }
 0x8e7   :  { %v813_v23 = vadd.f32 1.0, %v3408_v22 }
 0x8e8   :  { %819 = vrot.lane.b32.xlu0 %v817_v20, %s3685_s10 }
 0x8e9   :  { %3409 = vrcp.f32 %v813_v23 }
 0x8f3   :  { %v3410_v29 = vpop.eup %3409 }
 0x95a   :  { %v820_v25 = vpop.permute.xlu0 %819 }
 0x95b   :  { %v822_v26 = vadd.f32 %v820_v25, %v816_v24 }
 0x95d   :  { %3411 = vtanh.f32 %v822_v26 }
 0x967   :  { %v3412_v30 = vpop.eup %3411 }
 0x968   :  { %v824_v31 = vmul.f32 %v3412_v30, %v3410_v29 }
 0x96a   :  { %826 = vrot.lane.b32.xlu1 %v824_v31, %s3685_s10  ;;  %830 = vst.msk [vmem:[#allocation2 + $0x28] sm:$0xff] %vm409_vm0, %v824_v31 }
 0x9dc   :  { %v827_v32 = vpop.permute.xlu1 %826 }
 0x9dd   :  { %829 = vst.msk [vmem:[#allocation2 + $0x20] sm:$0xff] %vm305_vm1, %v827_v32  ;;  %2756 = vmatmul.mubr.msk.f32.vlgmr.msra.gmra.mrb[10].mxu0 %vm305_vm1, %v827_v32 }
 0x9de   :  { %2986 = vmatpush1.bf16.msra.mxu0 %v3760_v28  ;;  %1004 = vmatprep.mubr.f32.mxu0 %v3684_v7 }
 0x9df   :  { %2988 = vmatprep.subr.bf16.mxu0 %v3763_v34 }
 0x9e2   :  { %2990 = vmatpush1.bf16.msra.mxu0 %v3766_v37 }
 0x9e3   :  { %2992 = vmatprep.subr.bf16.mxu0 %v3769_v45 }
 0x9e6   :  { %2994 = vmatpush1.bf16.msra.mxu0 %v3772_v50 }
 0x9e7   :  { %2996 = vmatprep.subr.bf16.mxu0 %v3775_v53 }
 0x9ea   :  { %2998 = vmatpush1.bf16.msra.mxu0 %v3781_v62 }
 0x9eb   :  { %3000 = vmatprep.subr.bf16.mxu0 %v3758_v27 }
 0xab0   :  { %v901_v33 = vpop.f32.mrb[10].mxu0 }
 0xab1   :  { %v3275_v35 = vadd.f32 %v901_v33, %v3806_v18  ;;  %v903_v36 = vpop.f32.mrb[11].mxu0 }
 0xab2   :  { %v3276_v39 = vadd.f32 %v903_v36, %v3810_v19 }
 0xab3   :  { %v2757_v38 = vmul.f32 -1.442695, %v3275_v35 }
 0xab4   :  { %v2758_v46 = vmul.f32 -1.442695, %v3276_v39 }
 0xab5   :  { %3413 = vpow2.f32 %v2757_v38 }
 0xab6   :  { %3415 = vtanh.f32 %v3276_v39 }
 0xabf   :  { %v3414_v40 = vpop.eup %3413 }
 0xac0   :  { %v911_v41 = vadd.f32 1.0, %v3414_v40  ;;  %v3416_v42 = vpop.eup %3415 }
 0xac2   :  { %3417 = vrcp.f32 %v911_v41 }
 0xac3   :  { %3419 = vpow2.f32 %v2758_v46 }
 0xacc   :  { %v3418_v43 = vpop.eup %3417 }
 0xacd   :  { %v922_v44 = vmul.f32 %v3418_v43, %v3416_v42  ;;  %v3420_v47 = vpop.eup %3419  ;;  %v921_v49 = vmul.f32 %v3418_v43, %v822_v26 }
 0xace   :  { %v918_v48 = vadd.f32 1.0, %v3420_v47 }
 0xacf   :  { %924 = vrot.lane.b32.xlu0 %v922_v44, %s3685_s10 }
 0xad0   :  { %3421 = vrcp.f32 %v918_v48 }
 0xada   :  { %v3422_v54 = vpop.eup %3421 }
 0xb41   :  { %v925_v51 = vpop.permute.xlu0 %924 }
 0xb42   :  { %v927_v52 = vadd.f32 %v925_v51, %v921_v49 }
 0xb44   :  { %3423 = vtanh.f32 %v927_v52 }
 0xb4e   :  { %v3424_v55 = vpop.eup %3423 }
 0xb4f   :  { %v929_v56 = vmul.f32 %v3424_v55, %v3422_v54 }
 0xb51   :  { %931 = vrot.lane.b32.xlu1 %v929_v56, %s3685_s10  ;;  %935 = vst.msk [vmem:[#allocation2 + $0x20] sm:$0xff] %vm409_vm0, %v929_v56 }
 0xbc3   :  { %v932_v57 = vpop.permute.xlu1 %931 }
 0xbc4   :  { %934 = vst.msk [vmem:[#allocation2 + $0x28] sm:$0xff] %vm305_vm1, %v932_v57  ;;  %2759 = vmatmul.mubr.msk.f32.vlgmr.msra.gmra.mrb[12].mxu0 %vm305_vm1, %v932_v57 }
 0xbc5   :  { %3002 = vmatpush1.bf16.msra.mxu0 %v3760_v28  ;;  %1109 = vmatprep.mubr.f32.mxu0 %v3684_v7 }
 0xbc6   :  { %3004 = vmatprep.subr.bf16.mxu0 %v3763_v34 }
 0xbc9   :  { %3006 = vmatpush1.bf16.msra.mxu0 %v3766_v37 }
 0xbca   :  { %3008 = vmatprep.subr.bf16.mxu0 %v3769_v45 }
 0xbcd   :  { %3010 = vmatpush1.bf16.msra.mxu0 %v3772_v50 }
 0xbce   :  { %3012 = vmatprep.subr.bf16.mxu0 %v3775_v53 }
 0xbd1   :  { %3014 = vmatpush1.bf16.msra.mxu0 %v3781_v62 }
 0xbd2   :  { %3016 = vmatprep.subr.bf16.mxu0 %v3758_v27 }
 0xc97   :  { %v1006_v58 = vpop.f32.mrb[12].mxu0 }
 0xc98   :  { %v3277_v59 = vadd.f32 %v1006_v58, %v3806_v18  ;;  %v1008_v60 = vpop.f32.mrb[13].mxu0 }
 0xc99   :  { %v3278_v63 = vadd.f32 %v1008_v60, %v3810_v19  ;;  %v1368_v60 = vld [vmem:[#allocation8 + $0x108] sm:$0xff] }
 0xc9a   :  { %v2760_v61 = vmul.f32 -1.442695, %v3277_v59 }
 0xc9b   :  { %v2761_v5 = vmul.f32 -1.442695, %v3278_v63 }
 0xc9c   :  { %3425 = vpow2.f32 %v2760_v61  ;;  %v1370_v61 = vld [vmem:[#allocation8 + $0x118] sm:$0xff] }
 0xc9d   :  { %3427 = vtanh.f32 %v3278_v63  ;;  %v1367_v63 = vld [vmem:[#allocation8 + $0x100] sm:$0xff] }
 0xca6   :  { %v3426_v0 = vpop.eup %3425 }
 0xca7   :  { %v1016_v1 = vadd.f32 1.0, %v3426_v0  ;;  %v3428_v2 = vpop.eup %3427  ;;  %v3047_v0 = vpack.c.bf16 %v1370_v61, %v1368_v60  ;;  %v1561_v60 = vld [vmem:[#allocation9 + $0x98] sm:$0xff] }
 0xca9   :  { %3429 = vrcp.f32 %v1016_v1  ;;  %v1369_v1 = vld [vmem:[#allocation8 + $0x110] sm:$0xff]  ;;  %3048 = vmatprep.subr.bf16.mxu1 %v3047_v0 }
 0xcaa   :  { %3431 = vpow2.f32 %v2761_v5 }
 0xcb3   :  { %v3430_v3 = vpop.eup %3429 }
 0xcb4   :  { %v1027_v4 = vmul.f32 %v3430_v3, %v3428_v2  ;;  %v3432_v6 = vpop.eup %3431  ;;  %v1026_v9 = vmul.f32 %v3430_v3, %v927_v52  ;;  %v1372_v2 = vld [vmem:[#allocation8 + $0x128] sm:$0xff]  ;;  %v1374_v3 = vld [vmem:[#allocation8 + $0x138] sm:$0xff] }
 0xcb5   :  { %v1023_v8 = vadd.f32 1.0, %v3432_v6  ;;  %v3051_v5 = vpack.c.bf16 %v1374_v3, %v1372_v2  ;;  %v1371_v6 = vld [vmem:[#allocation8 + $0x120] sm:$0xff] }
 0xcb6   :  { %1029 = vrot.lane.b32.xlu0 %v1027_v4, %s3685_s10  ;;  %v3049_v4 = vpack.c.bf16 %v1369_v1, %v1367_v63 }
 0xcb7   :  { %3433 = vrcp.f32 %v1023_v8  ;;  %v1373_v8 = vld [vmem:[#allocation8 + $0x130] sm:$0xff] }
 0xcb8   :  { %3050 = vmatpush1.bf16.msra.mxu1 %v3049_v4 }
 0xcb9   :  { %3052 = vmatprep.subr.bf16.mxu1 %v3051_v5 }
 0xcc1   :  { %v3434_v13 = vpop.eup %3433 }
 0xd28   :  { %v1030_v10 = vpop.permute.xlu0 %1029 }
 0xd29   :  { %v1032_v11 = vadd.f32 %v1030_v10, %v1026_v9  ;;  %v1376_v9 = vld [vmem:[#allocation8 + $0x148] sm:$0xff]  ;;  %v1378_v10 = vld [vmem:[#allocation8 + $0x158] sm:$0xff] }
 0xd2b   :  { %3435 = vtanh.f32 %v1032_v11 }
 0xd35   :  { %v3436_v14 = vpop.eup %3435 }
 0xd36   :  { %v1034_v16 = vmul.f32 %v3436_v14, %v3434_v13  ;;  %v3055_v13 = vpack.c.bf16 %v1378_v10, %v1376_v9  ;;  %v1558_v9 = vld [vmem:[#allocation9 + $0x80] sm:$0xff]  ;;  %v1560_v10 = vld [vmem:[#allocation9 + $0x90] sm:$0xff] }
 0xd38   :  { %1036 = vrot.lane.b32.xlu1 %v1034_v16, %s3685_s10  ;;  %1040 = vst.msk [vmem:[#allocation2 + $0x18] sm:$0xff] %vm409_vm0, %v1034_v16 }
 0xdaa   :  { %v1037_v20 = vpop.permute.xlu1 %1036 }
 0xdab   :  { %1039 = vst.msk [vmem:[#allocation2 + $0x30] sm:$0xff] %vm305_vm1, %v1037_v20  ;;  %2762 = vmatmul.mubr.msk.f32.vlgmr.msra.gmra.mrb[14].mxu0 %vm305_vm1, %v1037_v20 }
 0xdac   :  { %3018 = vmatpush1.bf16.msra.mxu0 %v3760_v28  ;;  %1214 = vmatprep.mubr.f32.mxu0 %v3684_v7 }
 0xdad   :  { %3020 = vmatprep.subr.bf16.mxu0 %v3763_v34 }
 0xdb0   :  { %3022 = vmatpush1.bf16.msra.mxu0 %v3766_v37 }
 0xdb1   :  { %3024 = vmatprep.subr.bf16.mxu0 %v3769_v45 }
 0xdb4   :  { %3026 = vmatpush1.bf16.msra.mxu0 %v3772_v50 }
 0xdb5   :  { %3028 = vmatprep.subr.bf16.mxu0 %v3775_v53 }
 0xdb8   :  { %3030 = vmatpush1.bf16.msra.mxu0 %v3781_v62 }
 0xdb9   :  { %3032 = vmatprep.subr.bf16.mxu0 %v3758_v27 }
 0xe7e   :  { %v1111_v21 = vpop.f32.mrb[14].mxu0 }
 0xe7f   :  { %v3279_v22 = vadd.f32 %v1111_v21, %v3806_v18  ;;  %v1113_v23 = vpop.f32.mrb[15].mxu0 }
 0xe80   :  { %v3280_v25 = vadd.f32 %v1113_v23, %v3810_v19 }
 0xe81   :  { %v2763_v24 = vmul.f32 -1.442695, %v3279_v22 }
 0xe82   :  { %v2764_v33 = vmul.f32 -1.442695, %v3280_v25 }
 0xe83   :  { %3437 = vpow2.f32 %v2763_v24  ;;  %v1375_v24 = vld [vmem:[#allocation8 + $0x140] sm:$0xff] }
 0xe84   :  { %3439 = vtanh.f32 %v3280_v25  ;;  %v1377_v25 = vld [vmem:[#allocation8 + $0x150] sm:$0xff] }
 0xe8d   :  { %v3438_v26 = vpop.eup %3437 }
 0xe8e   :  { %v1121_v29 = vadd.f32 1.0, %v3438_v26  ;;  %v3440_v30 = vpop.eup %3439 }
 0xe90   :  { %3441 = vrcp.f32 %v1121_v29  ;;  %v3057_v29 = vpack.c.bf16 %v1377_v25, %v1375_v24 }
 0xe91   :  { %3443 = vpow2.f32 %v2764_v33  ;;  %v1379_v33 = vld [vmem:[#allocation8 + $0x160] sm:$0xff] }
 0xe9a   :  { %v3442_v31 = vpop.eup %3441 }
 0xe9b   :  { %v1132_v32 = vmul.f32 %v3442_v31, %v3440_v30  ;;  %v3444_v27 = vpop.eup %3443  ;;  %v1131_v36 = vmul.f32 %v3442_v31, %v1032_v11  ;;  %v3053_v11 = vpack.c.bf16 %v1373_v8, %v1371_v6  ;;  %v1380_v30 = vld [vmem:[#allocation8 + $0x168] sm:$0xff]  ;;  %v1382_v31 = vld [vmem:[#allocation8 + $0x178] sm:$0xff] }
 0xe9c   :  { %v1128_v35 = vadd.f32 1.0, %v3444_v27  ;;  %v1381_v27 = vld [vmem:[#allocation8 + $0x170] sm:$0xff] }
 0xe9d   :  { %1134 = vrot.lane.b32.xlu0 %v1132_v32, %s3685_s10  ;;  %3054 = vmatpush1.bf16.msra.mxu1 %v3053_v11  ;;  %v3059_v32 = vpack.c.bf16 %v1382_v31, %v1380_v30  ;;  %v1563_v11 = vld [vmem:[#allocation9 + $0xa8] sm:$0xff] }
 0xe9e   :  { %3445 = vrcp.f32 %v1128_v35  ;;  %3056 = vmatprep.subr.bf16.mxu1 %v3055_v13  ;;  %v3061_v35 = vpack.c.bf16 %v1381_v27, %v1379_v33  ;;  %v1565_v13 = vld [vmem:[#allocation9 + $0xb8] sm:$0xff]  ;;  %v1571_v31 = vld [vmem:[#allocation9 + $0xe8] sm:$0xff] }
 0xea1   :  { %3058 = vmatpush1.bf16.msra.mxu1 %v3057_v29  ;;  %v1568_v29 = vld [vmem:[#allocation9 + $0xd0] sm:$0xff] }
 0xea2   :  { %3060 = vmatprep.subr.bf16.mxu1 %v3059_v32  ;;  %v1573_v32 = vld [vmem:[#allocation9 + $0xf8] sm:$0xff] }
 0xea3   :  { %v4010_v27 = vpack.c.bf16 %v1573_v32, %v1571_v31 }
 0xea5   :  { %3062 = vmatpush1.bf16.msra.mxu1 %v3061_v35  ;;  %v1570_v35 = vld [vmem:[#allocation9 + $0xe0] sm:$0xff] }
 0xea8   :  { %v3446_v40 = vpop.eup %3445 }
 0xf0f   :  { %v1135_v38 = vpop.permute.xlu0 %1134 }
 0xf10   :  { %v1137_v39 = vadd.f32 %v1135_v38, %v1131_v36  ;;  %v1386_v36 = vld [vmem:[#allocation8 + $0x198] sm:$0xff]  ;;  %v1383_v38 = vld [vmem:[#allocation8 + $0x180] sm:$0xff] }
 0xf12   :  { %3447 = vtanh.f32 %v1137_v39 }
 0xf1c   :  { %v3448_v41 = vpop.eup %3447 }
 0xf1d   :  { %v1139_v42 = vmul.f32 %v3448_v41, %v3446_v40  ;;  %v1388_v40 = vld [vmem:[#allocation8 + $0x1a8] sm:$0xff]  ;;  %v1390_v41 = vld [vmem:[#allocation8 + $0x1b8] sm:$0xff] }
 0xf1f   :  { %1141 = vrot.lane.b32.xlu1 %v1139_v42, %s3685_s10  ;;  %1145 = vst.msk [vmem:[#allocation2 + $0x10] sm:$0xff] %vm409_vm0, %v1139_v42 }
 0xf91   :  { %v1142_v43 = vpop.permute.xlu1 %1141 }
 0xf92   :  { %1144 = vst.msk [vmem:[#allocation2 + $0x38] sm:$0xff] %vm305_vm1, %v1142_v43  ;;  %2765 = vmatmul.mubr.msk.f32.vlgmr.msra.gmra.mrb[16].mxu0 %vm305_vm1, %v1142_v43  ;;  %v3067_v43 = vpack.c.bf16 %v1390_v41, %v1388_v40  ;;  %v1361_v40 = vld [vmem:[#allocation2 + $0x28] sm:$0xff]  ;;  %v1362_v41 = vld [vmem:[#allocation2 + $0x30] sm:$0xff] }
 0xf93   :  { %3034 = vmatpush1.bf16.msra.mxu0 %v3760_v28  ;;  %1319 = vmatprep.mubr.f32.mxu0 %v3684_v7 }
 0xf94   :  { %3036 = vmatprep.subr.bf16.mxu0 %v3763_v34 }
 0xf97   :  { %3038 = vmatpush1.bf16.msra.mxu0 %v3766_v37 }
 0xf98   :  { %3040 = vmatprep.subr.bf16.mxu0 %v3769_v45 }
 0xf9b   :  { %3042 = vmatpush1.bf16.msra.mxu0 %v3772_v50 }
 0xf9c   :  { %3044 = vmatprep.subr.bf16.mxu0 %v3775_v53 }
 0xf9f   :  { %3046 = vmatpush1.bf16.msra.mxu0 %v3781_v62 }
0x1065   :  { %v1216_v44 = vpop.f32.mrb[16].mxu0 }
0x1066   :  { %v3281_v46 = vadd.f32 %v1216_v44, %v3806_v18  ;;  %v1218_v47 = vpop.f32.mrb[17].mxu0  ;;  %v1387_v44 = vld [vmem:[#allocation8 + $0x1a0] sm:$0xff] }
0x1067   :  { %v3282_v28 = vadd.f32 %v1218_v47, %v3810_v19  ;;  %v1392_v47 = vld [vmem:[#allocation8 + $0x1c8] sm:$0xff] }
0x1068   :  { %v2766_v48 = vmul.f32 -1.442695, %v3281_v46  ;;  %v1389_v46 = vld [vmem:[#allocation8 + $0x1b0] sm:$0xff] }
0x1069   :  { %v2767_v50 = vmul.f32 -1.442695, %v3282_v28 }
0x106a   :  { %3449 = vpow2.f32 %v2766_v48  ;;  %v1394_v48 = vld [vmem:[#allocation8 + $0x1d8] sm:$0xff] }
0x106b   :  { %3451 = vtanh.f32 %v3282_v28  ;;  %v3069_v28 = vpack.c.bf16 %v1389_v46, %v1387_v44 }
0x1074   :  { %v3450_v49 = vpop.eup %3449 }
0x1075   :  { %v1226_v34 = vadd.f32 1.0, %v3450_v49  ;;  %v3452_v37 = vpop.eup %3451 }
0x1077   :  { %3453 = vrcp.f32 %v1226_v34  ;;  %v3071_v34 = vpack.c.bf16 %v1394_v48, %v1392_v47  ;;  %v2771_v47 = vld [vmem:[%s4256_s4 + $0x2] sm:$0x3] }
0x1078   :  { %3455 = vpow2.f32 %v2767_v50  ;;  %v1393_v50 = vld [vmem:[#allocation8 + $0x1d0] sm:$0xff]  ;;  %v4042_v48 = vrot.slane %v2771_v47, %v134_v15 }
0x1081   :  { %v3454_v45 = vpop.eup %3453 }
0x1082   :  { %v1237_v51 = vmul.f32 %v3454_v45, %v3452_v37  ;;  %v3456_v53 = vpop.eup %3455  ;;  %v1236_v52 = vmul.f32 %v3454_v45, %v1137_v39 }
0x1083   :  { %v1233_v62 = vadd.f32 1.0, %v3456_v53 }
0x1084   :  { %1239 = vrot.lane.b32.xlu0 %v1237_v51, %s3685_s10  ;;  %v1391_v51 = vld [vmem:[#allocation8 + $0x1c0] sm:$0xff] }
0x1085   :  { %3457 = vrcp.f32 %v1233_v62  ;;  %v3073_v53 = vpack.c.bf16 %v1393_v50, %v1391_v51  ;;  %v1396_v62 = vld [vmem:[#allocation8 + $0x1e8] sm:$0xff] }
0x108f   :  { %v3458_v56 = vpop.eup %3457 }
0x10f6   :  { %v1240_v54 = vpop.permute.xlu0 %1239 }
0x10f7   :  { %v3978_v55 = vadd.f32 %v1240_v54, %v1236_v52  ;;  %v1398_v52 = vld [vmem:[#allocation8 + $0x1f8] sm:$0xff]  ;;  %v1395_v54 = vld [vmem:[#allocation8 + $0x1e0] sm:$0xff] }
0x10f9   :  { %3459 = vtanh.f32 %v3978_v55 }
0x1103   :  { %v3460_v57 = vpop.eup %3459 }
0x1104   :  { %v1244_v58 = vmul.f32 %v3460_v57, %v3458_v56  ;;  %v3075_v56 = vpack.c.bf16 %v1398_v52, %v1396_v62  ;;  %v1397_v57 = vld [vmem:[#allocation8 + $0x1f0] sm:$0xff] }
0x1106   :  { %1246 = vrot.lane.b32.xlu1 %v1244_v58, %s3685_s10  ;;  %1250 = vst.msk [vmem:[#allocation2 + $0x8] sm:$0xff] %vm409_vm0, %v1244_v58  ;;  %v3077_v58 = vpack.c.bf16 %v1397_v57, %v1395_v54 }
0x110d   :  { %v1357_v30 = vld [vmem:[#allocation2 + $0x8] sm:$0xff] }
0x1178   :  { %v1247_v59 = vpop.permute.xlu1 %1246 }
0x1179   :  { %1249 = vst.msk [vmem:[#allocation2 + $0x40] sm:$0xff] %vm305_vm1, %v1247_v59  ;;  %2768 = vmatmul.mubr.msk.f32.vlgmr.msra.gmra.mrb[18].mxu0 %vm305_vm1, %v1247_v59  ;;  %v1559_v59 = vld [vmem:[#allocation9 + $0x88] sm:$0xff] }
0x117a   :  { %v3988_v61 = vpack.c.bf16 %v1561_v60, %v1559_v59  ;;  %2852 = vmatprep.mubr.msk.f32.mxu0 %vm3687_vm2, %v3684_v7 }
0x124c   :  { %v1321_v14 = vpop.f32.mrb[18].mxu0 }
0x124d   :  { %v3283_v16 = vadd.f32 %v1321_v14, %v3806_v18  ;;  %v1323_v20 = vpop.f32.mrb[19].mxu0  ;;  %v1384_v18 = vld [vmem:[#allocation8 + $0x188] sm:$0xff]  ;;  %v3994_v14 = vpack.c.bf16 %v1560_v10, %v1558_v9 }
0x124e   :  { %v3284_v22 = vadd.f32 %v1323_v20, %v3810_v19  ;;  %v3063_v39 = vpack.c.bf16 %v1386_v36, %v1384_v18  ;;  %v1385_v19 = vld [vmem:[#allocation8 + $0x190] sm:$0xff]  ;;  %v1358_v36 = vld [vmem:[#allocation2 + $0x10] sm:$0xff] }
0x124f   :  { %v2769_v21 = vmul.f32 -1.442695, %v3283_v16  ;;  %v3065_v42 = vpack.c.bf16 %v1385_v19, %v1383_v38  ;;  %v3996_v16 = vpack.c.bf16 %v1565_v13, %v1563_v11  ;;  %v1564_v20 = vld [vmem:[#allocation9 + $0xb0] sm:$0xff] }
0x1250   :  { %3064 = vmatprep.subr.bf16.mxu1 %v3063_v39  ;;  %v2770_v63 = vmul.f32 -1.442695, %v3284_v22  ;;  %v1572_v18 = vld [vmem:[#allocation9 + $0xf0] sm:$0xff]  ;;  %v1359_v39 = vld [vmem:[#allocation2 + $0x18] sm:$0xff] }
0x1251   :  { %3461 = vpow2.f32 %v2769_v21  ;;  %3066 = vmatpush1.bf16.msra.mxu1 %v3065_v42  ;;  %v4014_v38 = vpack.c.bf16 %v1572_v18, %v1570_v35  ;;  %v1360_v19 = vld [vmem:[#allocation2 + $0x20] sm:$0xff]  ;;  %v1363_v42 = vld [vmem:[#allocation2 + $0x38] sm:$0xff] }
0x1252   :  { %3463 = vtanh.f32 %v3284_v22  ;;  %3068 = vmatprep.subr.bf16.mxu1 %v3067_v43  ;;  %v1567_v22 = vld [vmem:[#allocation9 + $0xc8] sm:$0xff]  ;;  %v1364_v43 = vld [vmem:[#allocation2 + $0x40] sm:$0xff] }
0x1255   :  { %3070 = vmatpush1.bf16.msra.mxu1 %v3069_v28 }
0x1256   :  { %3072 = vmatprep.subr.bf16.mxu1 %v3071_v34 }
0x1259   :  { %3074 = vmatpush1.bf16.msra.mxu1 %v3073_v53 }
0x125a   :  { %3076 = vmatprep.subr.bf16.mxu1 %v3075_v56 }
0x125b   :  { %v3462_v23 = vpop.eup %3461 }
0x125c   :  { %v1331_v26 = vadd.f32 1.0, %v3462_v23  ;;  %v3464_v49 = vpop.eup %3463  ;;  %v1569_v23 = vld [vmem:[#allocation9 + $0xd8] sm:$0xff] }
0x125d   :  { %3078 = vmatpush1.bf16.msra.mxu1 %v3077_v58  ;;  %v4003_v25 = vpack.c.bf16 %v1569_v23, %v1567_v22 }
0x125e   :  { %3465 = vrcp.f32 %v1331_v26  ;;  %3080 = vmatprep.subr.bf16.mxu1 %v3988_v61  ;;  %v1566_v26 = vld [vmem:[#allocation9 + $0xc0] sm:$0xff] }
0x125f   :  { %3467 = vpow2.f32 %v2770_v63  ;;  %v4007_v33 = vpack.c.bf16 %v1568_v29, %v1566_v26 }
0x1268   :  { %v3466_v37 = vpop.eup %3465 }
0x1269   :  { %v1342_v45 = vmul.f32 %v3466_v37, %v3464_v49  ;;  %v3468_v0 = vpop.eup %3467  ;;  %v1341_v2 = vmul.f32 %v3466_v37, %v3978_v55  ;;  %v1562_v55 = vld [vmem:[#allocation9 + $0xa0] sm:$0xff] }
0x126a   :  { %v1338_v1 = vadd.f32 1.0, %v3468_v0  ;;  %v4000_v24 = vpack.c.bf16 %v1564_v20, %v1562_v55 }
0x126b   :  { %1344 = vrot.lane.b32.xlu0 %v1342_v45, %s3685_s10  ;;  %v4047_v45 = vrot.slane %v2771_v47, %v138_v17 }
0x126c   :  { %3469 = vrcp.f32 %v1338_v1 }
0x1276   :  { %v3470_v5 = vpop.eup %3469 }
0x12dd   :  { %v1345_v3 = vpop.permute.xlu0 %1344 }
0x12de   :  { %v1347_v4 = vadd.f32 %v1345_v3, %v1341_v2 }
0x12e0   :  { %3471 = vtanh.f32 %v1347_v4 }
0x12ea   :  { %v3472_v6 = vpop.eup %3471 }
0x12eb   :  { %v1349_v8 = vmul.f32 %v3472_v6, %v3470_v5 }
0x12ed   :  { %1351 = vrot.lane.b32.xlu1 %v1349_v8, %s3685_s10  ;;  %1355 = vst.msk [vmem:[#allocation2] sm:$0xff] %vm409_vm0, %v1349_v8 }
0x12f4   :  { %v1356_v21 = vld [vmem:[#allocation2] sm:$0xff] }
0x12f5   :  { %1477 = vmatmul.mubr.f32.vlgmr.msra.gmra.mrb[2].mxu1 %v1356_v21 }
0x12f6   :  { %1482 = vmatprep.mubr.f32.mxu1 %v3684_v7  ;;  %3082 = vmatpush1.bf16.msra.mxu1 %v3994_v14 }
0x12f7   :  { %3084 = vmatprep.subr.bf16.mxu1 %v3996_v16 }
0x12f9   :  { %1483 = vmatmul.mubr.f32.gmra.mrb[4].mxu1 %v1357_v30 }
0x12fa   :  { %1488 = vmatprep.mubr.f32.mxu1 %v3684_v7  ;;  %3086 = vmatpush1.bf16.msra.mxu1 %v4000_v24 }
0x12fb   :  { %3088 = vmatprep.subr.bf16.mxu1 %v4003_v25 }
0x12fd   :  { %1489 = vmatmul.mubr.f32.gmra.mrb[6].mxu1 %v1358_v36 }
0x12fe   :  { %1494 = vmatprep.mubr.f32.mxu1 %v3684_v7  ;;  %3090 = vmatpush1.bf16.msra.mxu1 %v4007_v33 }
0x12ff   :  { %3092 = vmatprep.subr.bf16.mxu1 %v4010_v27 }
0x1301   :  { %1495 = vmatmul.mubr.f32.gmra.mrb[8].mxu1 %v1359_v39 }
0x1302   :  { %1500 = vmatprep.mubr.f32.mxu1 %v3684_v7  ;;  %3094 = vmatpush1.bf16.msra.mxu1 %v4014_v38 }
0x1303   :  { %3096 = vmatprep.subr.bf16.mxu1 %v3988_v61 }
0x1305   :  { %1501 = vmatmul.mubr.f32.gmra.mrb[10].mxu1 %v1360_v19 }
0x1306   :  { %1506 = vmatprep.mubr.f32.mxu1 %v3684_v7 }
0x1309   :  { %1507 = vmatmul.mubr.f32.gmra.mrb[12].mxu1 %v1361_v40 }
0x130a   :  { %1512 = vmatprep.mubr.f32.mxu1 %v3684_v7 }
0x130d   :  { %1513 = vmatmul.mubr.f32.gmra.mrb[14].mxu1 %v1362_v41 }
0x130e   :  { %1518 = vmatprep.mubr.f32.mxu1 %v3684_v7 }
0x1311   :  { %1519 = vmatmul.mubr.f32.gmra.mrb[16].mxu1 %v1363_v42 }
0x1312   :  { %1524 = vmatprep.mubr.f32.mxu1 %v3684_v7 }
0x1315   :  { %1525 = vmatmul.mubr.f32.gmra.mrb[18].mxu1 %v1364_v43 }
0x1316   :  { %1530 = vmatprep.mubr.f32.mxu1 %v3684_v7 }
0x135f   :  { %v1352_v44 = vpop.permute.xlu1 %1351 }
0x1360   :  { %1354 = vst.msk [vmem:[#allocation2 + $0x48] sm:$0xff] %vm305_vm1, %v1352_v44 }
0x1367   :  { %v1365_v46 = vld [vmem:[#allocation2 + $0x48] sm:$0xff] }
0x1368   :  { %1531 = vmatmul.mubr.f32.gmra.mrb[20].mxu1 %v1365_v46 }
0x1369   :  { %1640 = vmatprep.mubr.f32.mxu1 %v3684_v7 }
0x136c   :  { %1641 = vmatmul.mubr.f32.vlgmr.msra.gmra.mrb[2].mxu1 %v3684_v7 }
0x136d   :  { %3098 = vmatpush1.bf16.msra.mxu1 %v3994_v14  ;;  %1745 = vmatprep.mubr.f32.mxu1 %v3684_v7 }
0x136e   :  { %3100 = vmatprep.subr.bf16.mxu1 %v3996_v16 }
0x1371   :  { %3102 = vmatpush1.bf16.msra.mxu1 %v4000_v24 }
0x1372   :  { %3104 = vmatprep.subr.bf16.mxu1 %v4003_v25 }
0x1375   :  { %3106 = vmatpush1.bf16.msra.mxu1 %v4007_v33 }
0x1376   :  { %3108 = vmatprep.subr.bf16.mxu1 %v4010_v27 }
0x1379   :  { %3110 = vmatpush1.bf16.msra.mxu1 %v4014_v38 }
0x137a   :  { %3112 = vmatprep.subr.bf16.mxu1 %v3988_v61 }
0x143f   :  { %v1642_v28 = vpop.f32.mrb[2].mxu1 }
0x1440   :  { %v3285_v49 = vadd.f32 %v1642_v28, %v4042_v48  ;;  %v1644_v34 = vpop.f32.mrb[3].mxu1 }
0x1441   :  { %v3286_v51 = vadd.f32 %v1644_v34, %v4047_v45 }
0x1442   :  { %v2772_v37 = vmul.f32 -1.442695, %v3285_v49 }
0x1443   :  { %v2773_v54 = vmul.f32 -1.442695, %v3286_v51 }
0x1444   :  { %3473 = vpow2.f32 %v2772_v37 }
0x1445   :  { %3475 = vtanh.f32 %v3286_v51 }
0x144e   :  { %v3474_v50 = vpop.eup %3473 }
0x144f   :  { %v1652_v53 = vadd.f32 1.0, %v3474_v50  ;;  %v3476_v62 = vpop.eup %3475 }
0x1451   :  { %3477 = vrcp.f32 %v1652_v53 }
0x1452   :  { %3479 = vpow2.f32 %v2773_v54 }
0x145b   :  { %v3478_v52 = vpop.eup %3477 }
0x145c   :  { %v1663_v15 = vmul.f32 %v3478_v52, %v3476_v62  ;;  %v3480_v56 = vpop.eup %3479  ;;  %v1662_v58 = vmul.f32 0.0, %v3478_v52 }
0x145d   :  { %v1659_v57 = vadd.f32 1.0, %v3480_v56 }
0x145e   :  { %1665 = vrot.lane.b32.xlu0 %v1663_v15, %s3685_s10 }
0x145f   :  { %3481 = vrcp.f32 %v1659_v57 }
0x1469   :  { %v3482_v17 = vpop.eup %3481 }
0x14d0   :  { %v1666_v59 = vpop.permute.xlu0 %1665 }
0x14d1   :  { %v1668_v12 = vadd.f32 %v1666_v59, %v1662_v58 }
0x14d3   :  { %3483 = vtanh.f32 %v1668_v12 }
0x14dd   :  { %v3484_v60 = vpop.eup %3483 }
0x14de   :  { %v1670_v63 = vmul.f32 %v3484_v60, %v3482_v17 }
0x14e0   :  { %1672 = vrot.lane.b32.xlu1 %v1670_v63, %s3685_s10  ;;  %1676 = vst.msk [vmem:[#allocation2 + $0x48] sm:$0xff] %vm409_vm0, %v1670_v63 }
0x1552   :  { %v1673_v0 = vpop.permute.xlu1 %1672 }
0x1553   :  { %1675 = vst.msk [vmem:[#allocation2] sm:$0xff] %vm305_vm1, %v1673_v0  ;;  %2774 = vmatmul.mubr.msk.f32.vlgmr.msra.gmra.mrb[4].mxu1 %vm305_vm1, %v1673_v0 }
0x1554   :  { %3114 = vmatpush1.bf16.msra.mxu1 %v3994_v14  ;;  %1850 = vmatprep.mubr.f32.mxu1 %v3684_v7 }
0x1555   :  { %3116 = vmatprep.subr.bf16.mxu1 %v3996_v16 }
0x1558   :  { %3118 = vmatpush1.bf16.msra.mxu1 %v4000_v24 }
0x1559   :  { %3120 = vmatprep.subr.bf16.mxu1 %v4003_v25 }
0x155c   :  { %3122 = vmatpush1.bf16.msra.mxu1 %v4007_v33 }
0x155d   :  { %3124 = vmatprep.subr.bf16.mxu1 %v4010_v27 }
0x1560   :  { %3126 = vmatpush1.bf16.msra.mxu1 %v4014_v38 }
0x1561   :  { %3128 = vmatprep.subr.bf16.mxu1 %v3988_v61 }
0x1626   :  { %v1747_v1 = vpop.f32.mrb[4].mxu1 }
0x1627   :  { %v3287_v2 = vadd.f32 %v1747_v1, %v4042_v48  ;;  %v1749_v3 = vpop.f32.mrb[5].mxu1 }
0x1628   :  { %v3288_v5 = vadd.f32 %v1749_v3, %v4047_v45 }
0x1629   :  { %v2775_v4 = vmul.f32 -1.442695, %v3287_v2 }
0x162a   :  { %v2776_v13 = vmul.f32 -1.442695, %v3288_v5 }
0x162b   :  { %3485 = vpow2.f32 %v2775_v4 }
0x162c   :  { %3487 = vtanh.f32 %v3288_v5 }
0x1635   :  { %v3486_v6 = vpop.eup %3485 }
0x1636   :  { %v1757_v8 = vadd.f32 1.0, %v3486_v6  ;;  %v3488_v9 = vpop.eup %3487 }
0x1638   :  { %3489 = vrcp.f32 %v1757_v8 }
0x1639   :  { %3491 = vpow2.f32 %v2776_v13 }
0x1642   :  { %v3490_v10 = vpop.eup %3489 }
0x1643   :  { %v1768_v11 = vmul.f32 %v3490_v10, %v3488_v9  ;;  %v3492_v55 = vpop.eup %3491  ;;  %v1767_v21 = vmul.f32 %v3490_v10, %v1668_v12 }
0x1644   :  { %v1764_v20 = vadd.f32 1.0, %v3492_v55 }
0x1645   :  { %1770 = vrot.lane.b32.xlu0 %v1768_v11, %s3685_s10 }
0x1646   :  { %3493 = vrcp.f32 %v1764_v20 }
0x1650   :  { %v3494_v26 = vpop.eup %3493 }
0x16b7   :  { %v1771_v22 = vpop.permute.xlu0 %1770 }
0x16b8   :  { %v1773_v23 = vadd.f32 %v1771_v22, %v1767_v21 }
0x16ba   :  { %3495 = vtanh.f32 %v1773_v23 }
0x16c4   :  { %v3496_v29 = vpop.eup %3495 }
0x16c5   :  { %v1775_v30 = vmul.f32 %v3496_v29, %v3494_v26 }
0x16c7   :  { %1777 = vrot.lane.b32.xlu1 %v1775_v30, %s3685_s10  ;;  %1781 = vst.msk [vmem:[#allocation2 + $0x40] sm:$0xff] %vm409_vm0, %v1775_v30 }
0x1739   :  { %v1778_v31 = vpop.permute.xlu1 %1777 }
0x173a   :  { %1780 = vst.msk [vmem:[#allocation2 + $0x8] sm:$0xff] %vm305_vm1, %v1778_v31  ;;  %2777 = vmatmul.mubr.msk.f32.vlgmr.msra.gmra.mrb[6].mxu1 %vm305_vm1, %v1778_v31 }
0x173b   :  { %3130 = vmatpush1.bf16.msra.mxu1 %v3994_v14  ;;  %1955 = vmatprep.mubr.f32.mxu1 %v3684_v7 }
0x173c   :  { %3132 = vmatprep.subr.bf16.mxu1 %v3996_v16 }
0x173f   :  { %3134 = vmatpush1.bf16.msra.mxu1 %v4000_v24 }
0x1740   :  { %3136 = vmatprep.subr.bf16.mxu1 %v4003_v25 }
0x1743   :  { %3138 = vmatpush1.bf16.msra.mxu1 %v4007_v33 }
0x1744   :  { %3140 = vmatprep.subr.bf16.mxu1 %v4010_v27 }
0x1747   :  { %3142 = vmatpush1.bf16.msra.mxu1 %v4014_v38 }
0x1748   :  { %3144 = vmatprep.subr.bf16.mxu1 %v3988_v61 }
0x180d   :  { %v1852_v32 = vpop.f32.mrb[6].mxu1 }
0x180e   :  { %v3289_v35 = vadd.f32 %v1852_v32, %v4042_v48  ;;  %v1854_v18 = vpop.f32.mrb[7].mxu1 }
0x180f   :  { %v3290_v39 = vadd.f32 %v1854_v18, %v4047_v45 }
0x1810   :  { %v2778_v36 = vmul.f32 -1.442695, %v3289_v35 }
0x1811   :  { %v2779_v44 = vmul.f32 -1.442695, %v3290_v39 }
0x1812   :  { %3497 = vpow2.f32 %v2778_v36 }
0x1813   :  { %3499 = vtanh.f32 %v3290_v39 }
0x181c   :  { %v3498_v19 = vpop.eup %3497 }
0x181d   :  { %v1862_v40 = vadd.f32 1.0, %v3498_v19  ;;  %v3500_v41 = vpop.eup %3499 }
0x181f   :  { %3501 = vrcp.f32 %v1862_v40 }
0x1820   :  { %3503 = vpow2.f32 %v2779_v44 }
0x1829   :  { %v3502_v42 = vpop.eup %3501 }
0x182a   :  { %v1873_v43 = vmul.f32 %v3502_v42, %v3500_v41  ;;  %v3504_v46 = vpop.eup %3503  ;;  %v1872_v28 = vmul.f32 %v3502_v42, %v1773_v23 }
0x182b   :  { %v1869_v47 = vadd.f32 1.0, %v3504_v46 }
0x182c   :  { %1875 = vrot.lane.b32.xlu0 %v1873_v43, %s3685_s10 }
0x182d   :  { %3505 = vrcp.f32 %v1869_v47 }
0x1837   :  { %v3506_v37 = vpop.eup %3505 }
0x189e   :  { %v1876_v49 = vpop.permute.xlu0 %1875 }
0x189f   :  { %v1878_v34 = vadd.f32 %v1876_v49, %v1872_v28 }
0x18a1   :  { %3507 = vtanh.f32 %v1878_v34 }
0x18ab   :  { %v3508_v51 = vpop.eup %3507 }
0x18ac   :  { %v1880_v50 = vmul.f32 %v3508_v51, %v3506_v37 }
0x18ae   :  { %1882 = vrot.lane.b32.xlu1 %v1880_v50, %s3685_s10  ;;  %1886 = vst.msk [vmem:[#allocation2 + $0x38] sm:$0xff] %vm409_vm0, %v1880_v50 }
0x1920   :  { %v1883_v53 = vpop.permute.xlu1 %1882 }
0x1921   :  { %1885 = vst.msk [vmem:[#allocation2 + $0x10] sm:$0xff] %vm305_vm1, %v1883_v53  ;;  %2780 = vmatmul.mubr.msk.f32.vlgmr.msra.gmra.mrb[8].mxu1 %vm305_vm1, %v1883_v53 }
0x1922   :  { %3146 = vmatpush1.bf16.msra.mxu1 %v3994_v14  ;;  %2060 = vmatprep.mubr.f32.mxu1 %v3684_v7 }
0x1923   :  { %3148 = vmatprep.subr.bf16.mxu1 %v3996_v16 }
0x1926   :  { %3150 = vmatpush1.bf16.msra.mxu1 %v4000_v24 }
0x1927   :  { %3152 = vmatprep.subr.bf16.mxu1 %v4003_v25 }
0x192a   :  { %3154 = vmatpush1.bf16.msra.mxu1 %v4007_v33 }
0x192b   :  { %3156 = vmatprep.subr.bf16.mxu1 %v4010_v27 }
0x192e   :  { %3158 = vmatpush1.bf16.msra.mxu1 %v4014_v38 }
0x192f   :  { %3160 = vmatprep.subr.bf16.mxu1 %v3988_v61 }
0x19f4   :  { %v1957_v62 = vpop.f32.mrb[8].mxu1 }
0x19f5   :  { %v3291_v52 = vadd.f32 %v1957_v62, %v4042_v48  ;;  %v1959_v15 = vpop.f32.mrb[9].mxu1 }
0x19f6   :  { %v3292_v56 = vadd.f32 %v1959_v15, %v4047_v45 }
0x19f7   :  { %v2781_v54 = vmul.f32 -1.442695, %v3291_v52 }
0x19f8   :  { %v2782_v60 = vmul.f32 -1.442695, %v3292_v56 }
0x19f9   :  { %3509 = vpow2.f32 %v2781_v54 }
0x19fa   :  { %3511 = vtanh.f32 %v3292_v56 }
0x1a03   :  { %v3510_v57 = vpop.eup %3509 }
0x1a04   :  { %v1967_v58 = vadd.f32 1.0, %v3510_v57  ;;  %v3512_v59 = vpop.eup %3511 }
0x1a06   :  { %3513 = vrcp.f32 %v1967_v58 }
0x1a07   :  { %3515 = vpow2.f32 %v2782_v60 }
0x1a10   :  { %v3514_v12 = vpop.eup %3513 }
0x1a11   :  { %v1978_v17 = vmul.f32 %v3514_v12, %v3512_v59  ;;  %v3516_v63 = vpop.eup %3515  ;;  %v1977_v1 = vmul.f32 %v3514_v12, %v1878_v34 }
0x1a12   :  { %v1974_v0 = vadd.f32 1.0, %v3516_v63 }
0x1a13   :  { %1980 = vrot.lane.b32.xlu0 %v1978_v17, %s3685_s10 }
0x1a14   :  { %3517 = vrcp.f32 %v1974_v0 }
0x1a1e   :  { %v3518_v4 = vpop.eup %3517 }
0x1a85   :  { %v1981_v2 = vpop.permute.xlu0 %1980 }
0x1a86   :  { %v1983_v3 = vadd.f32 %v1981_v2, %v1977_v1 }
0x1a88   :  { %3519 = vtanh.f32 %v1983_v3 }
0x1a92   :  { %v3520_v5 = vpop.eup %3519 }
0x1a93   :  { %v1985_v6 = vmul.f32 %v3520_v5, %v3518_v4 }
0x1a95   :  { %1987 = vrot.lane.b32.xlu1 %v1985_v6, %s3685_s10  ;;  %1991 = vst.msk [vmem:[#allocation2 + $0x30] sm:$0xff] %vm409_vm0, %v1985_v6 }
0x1b07   :  { %v1988_v8 = vpop.permute.xlu1 %1987 }
0x1b08   :  { %1990 = vst.msk [vmem:[#allocation2 + $0x18] sm:$0xff] %vm305_vm1, %v1988_v8  ;;  %2783 = vmatmul.mubr.msk.f32.vlgmr.msra.gmra.mrb[10].mxu1 %vm305_vm1, %v1988_v8 }
0x1b09   :  { %3162 = vmatpush1.bf16.msra.mxu1 %v3994_v14  ;;  %2165 = vmatprep.mubr.f32.mxu1 %v3684_v7 }
0x1b0a   :  { %3164 = vmatprep.subr.bf16.mxu1 %v3996_v16 }
0x1b0d   :  { %3166 = vmatpush1.bf16.msra.mxu1 %v4000_v24 }
0x1b0e   :  { %3168 = vmatprep.subr.bf16.mxu1 %v4003_v25 }
0x1b11   :  { %3170 = vmatpush1.bf16.msra.mxu1 %v4007_v33 }
0x1b12   :  { %3172 = vmatprep.subr.bf16.mxu1 %v4010_v27 }
0x1b15   :  { %3174 = vmatpush1.bf16.msra.mxu1 %v4014_v38 }
0x1b16   :  { %3176 = vmatprep.subr.bf16.mxu1 %v3988_v61 }
0x1bdb   :  { %v2062_v9 = vpop.f32.mrb[10].mxu1 }
0x1bdc   :  { %v3293_v10 = vadd.f32 %v2062_v9, %v4042_v48  ;;  %v2064_v11 = vpop.f32.mrb[11].mxu1 }
0x1bdd   :  { %v3294_v55 = vadd.f32 %v2064_v11, %v4047_v45 }
0x1bde   :  { %v2784_v13 = vmul.f32 -1.442695, %v3293_v10 }
0x1bdf   :  { %v2785_v29 = vmul.f32 -1.442695, %v3294_v55 }
0x1be0   :  { %3521 = vpow2.f32 %v2784_v13 }
0x1be1   :  { %3523 = vtanh.f32 %v3294_v55 }
0x1bea   :  { %v3522_v20 = vpop.eup %3521 }
0x1beb   :  { %v2072_v21 = vadd.f32 1.0, %v3522_v20  ;;  %v3524_v22 = vpop.eup %3523 }
0x1bed   :  { %3525 = vrcp.f32 %v2072_v21 }
0x1bee   :  { %3527 = vpow2.f32 %v2785_v29 }
0x1bf7   :  { %v3526_v23 = vpop.eup %3525 }
0x1bf8   :  { %v2083_v26 = vmul.f32 %v3526_v23, %v3524_v22  ;;  %v3528_v30 = vpop.eup %3527  ;;  %v2082_v32 = vmul.f32 %v3526_v23, %v1983_v3 }
0x1bf9   :  { %v2079_v31 = vadd.f32 1.0, %v3528_v30 }
0x1bfa   :  { %2085 = vrot.lane.b32.xlu0 %v2083_v26, %s3685_s10 }
0x1bfb   :  { %3529 = vrcp.f32 %v2079_v31 }
0x1c05   :  { %v3530_v36 = vpop.eup %3529 }
0x1c6c   :  { %v2086_v35 = vpop.permute.xlu0 %2085 }
0x1c6d   :  { %v2088_v18 = vadd.f32 %v2086_v35, %v2082_v32 }
0x1c6f   :  { %3531 = vtanh.f32 %v2088_v18 }
0x1c79   :  { %v3532_v39 = vpop.eup %3531 }
0x1c7a   :  { %v2090_v19 = vmul.f32 %v3532_v39, %v3530_v36 }
0x1c7c   :  { %2092 = vrot.lane.b32.xlu1 %v2090_v19, %s3685_s10  ;;  %2096 = vst.msk [vmem:[#allocation2 + $0x28] sm:$0xff] %vm409_vm0, %v2090_v19 }
0x1cee   :  { %v2093_v40 = vpop.permute.xlu1 %2092 }
0x1cef   :  { %2095 = vst.msk [vmem:[#allocation2 + $0x20] sm:$0xff] %vm305_vm1, %v2093_v40  ;;  %2786 = vmatmul.mubr.msk.f32.vlgmr.msra.gmra.mrb[12].mxu1 %vm305_vm1, %v2093_v40 }
0x1cf0   :  { %3178 = vmatpush1.bf16.msra.mxu1 %v3994_v14  ;;  %2270 = vmatprep.mubr.f32.mxu1 %v3684_v7 }
0x1cf1   :  { %3180 = vmatprep.subr.bf16.mxu1 %v3996_v16 }
0x1cf4   :  { %3182 = vmatpush1.bf16.msra.mxu1 %v4000_v24 }
0x1cf5   :  { %3184 = vmatprep.subr.bf16.mxu1 %v4003_v25 }
0x1cf8   :  { %3186 = vmatpush1.bf16.msra.mxu1 %v4007_v33 }
0x1cf9   :  { %3188 = vmatprep.subr.bf16.mxu1 %v4010_v27 }
0x1cfc   :  { %3190 = vmatpush1.bf16.msra.mxu1 %v4014_v38 }
0x1cfd   :  { %3192 = vmatprep.subr.bf16.mxu1 %v3988_v61 }
0x1dc2   :  { %v2167_v41 = vpop.f32.mrb[12].mxu1 }
0x1dc3   :  { %v3295_v42 = vadd.f32 %v2167_v41, %v4042_v48  ;;  %v2169_v43 = vpop.f32.mrb[13].mxu1 }
0x1dc4   :  { %v3296_v46 = vadd.f32 %v2169_v43, %v4047_v45 }
0x1dc5   :  { %v2787_v44 = vmul.f32 -1.442695, %v3295_v42 }
0x1dc6   :  { %v2788_v51 = vmul.f32 -1.442695, %v3296_v46 }
0x1dc7   :  { %3533 = vpow2.f32 %v2787_v44 }
0x1dc8   :  { %3535 = vtanh.f32 %v3296_v46 }
0x1dd1   :  { %v3534_v47 = vpop.eup %3533 }
0x1dd2   :  { %v2177_v28 = vadd.f32 1.0, %v3534_v47  ;;  %v3536_v49 = vpop.eup %3535 }
0x1dd4   :  { %3537 = vrcp.f32 %v2177_v28 }
0x1dd5   :  { %3539 = vpow2.f32 %v2788_v51 }
0x1dde   :  { %v3538_v34 = vpop.eup %3537 }
0x1ddf   :  { %v2188_v37 = vmul.f32 %v3538_v34, %v3536_v49  ;;  %v3540_v50 = vpop.eup %3539  ;;  %v2187_v62 = vmul.f32 %v3538_v34, %v2088_v18 }
0x1de0   :  { %v2184_v53 = vadd.f32 1.0, %v3540_v50 }
0x1de1   :  { %2190 = vrot.lane.b32.xlu0 %v2188_v37, %s3685_s10 }
0x1de2   :  { %3541 = vrcp.f32 %v2184_v53 }
0x1dec   :  { %v3542_v54 = vpop.eup %3541 }
0x1e53   :  { %v2191_v52 = vpop.permute.xlu0 %2190 }
0x1e54   :  { %v2193_v15 = vadd.f32 %v2191_v52, %v2187_v62 }
0x1e56   :  { %3543 = vtanh.f32 %v2193_v15 }
0x1e60   :  { %v3544_v56 = vpop.eup %3543 }
0x1e61   :  { %v2195_v57 = vmul.f32 %v3544_v56, %v3542_v54 }
0x1e63   :  { %2197 = vrot.lane.b32.xlu1 %v2195_v57, %s3685_s10  ;;  %2201 = vst.msk [vmem:[#allocation2 + $0x20] sm:$0xff] %vm409_vm0, %v2195_v57 }
0x1ed5   :  { %v2198_v58 = vpop.permute.xlu1 %2197 }
0x1ed6   :  { %2200 = vst.msk [vmem:[#allocation2 + $0x28] sm:$0xff] %vm305_vm1, %v2198_v58  ;;  %2789 = vmatmul.mubr.msk.f32.vlgmr.msra.gmra.mrb[14].mxu1 %vm305_vm1, %v2198_v58 }
0x1ed7   :  { %3194 = vmatpush1.bf16.msra.mxu1 %v3994_v14  ;;  %2375 = vmatprep.mubr.f32.mxu1 %v3684_v7 }
0x1ed8   :  { %3196 = vmatprep.subr.bf16.mxu1 %v3996_v16 }
0x1edb   :  { %3198 = vmatpush1.bf16.msra.mxu1 %v4000_v24 }
0x1edc   :  { %3200 = vmatprep.subr.bf16.mxu1 %v4003_v25 }
0x1edf   :  { %3202 = vmatpush1.bf16.msra.mxu1 %v4007_v33 }
0x1ee0   :  { %3204 = vmatprep.subr.bf16.mxu1 %v4010_v27 }
0x1ee3   :  { %3206 = vmatpush1.bf16.msra.mxu1 %v4014_v38 }
0x1ee4   :  { %3208 = vmatprep.subr.bf16.mxu1 %v3988_v61 }
0x1fa9   :  { %v2272_v59 = vpop.f32.mrb[14].mxu1 }
0x1faa   :  { %v3297_v12 = vadd.f32 %v2272_v59, %v4042_v48  ;;  %v2274_v17 = vpop.f32.mrb[15].mxu1 }
0x1fab   :  { %v3298_v63 = vadd.f32 %v2274_v17, %v4047_v45 }
0x1fac   :  { %v2790_v60 = vmul.f32 -1.442695, %v3297_v12 }
0x1fad   :  { %v2791_v5 = vmul.f32 -1.442695, %v3298_v63 }
0x1fae   :  { %3545 = vpow2.f32 %v2790_v60 }
0x1faf   :  { %3547 = vtanh.f32 %v3298_v63 }
0x1fb8   :  { %v3546_v0 = vpop.eup %3545 }
0x1fb9   :  { %v2282_v1 = vadd.f32 1.0, %v3546_v0  ;;  %v3548_v2 = vpop.eup %3547 }
0x1fbb   :  { %3549 = vrcp.f32 %v2282_v1 }
0x1fbc   :  { %3551 = vpow2.f32 %v2791_v5  ;;  %v3686_v5 = vmov 0.0|0.0  }
0x1fbd   :  { %3239 = vmatprep.subr.bf16.mxu0 %v3686_v5 }
0x1fc5   :  { %v3550_v3 = vpop.eup %3549 }
0x1fc6   :  { %v2293_v4 = vmul.f32 %v3550_v3, %v3548_v2  ;;  %v3552_v6 = vpop.eup %3551  ;;  %v2292_v9 = vmul.f32 %v3550_v3, %v2193_v15 }
0x1fc7   :  { %v2289_v8 = vadd.f32 1.0, %v3552_v6 }
0x1fc8   :  { %2295 = vrot.lane.b32.xlu0 %v2293_v4, %s3685_s10  ;;  %v2630_v4 = vld [vmem:[%s4257_s5] sm:$0xff] }
0x1fc9   :  { %3553 = vrcp.f32 %v2289_v8  ;;  %v2633_v8 = vld [vmem:[%s4257_s5 + $0x18] sm:$0xff] }
0x1fd3   :  { %v3554_v13 = vpop.eup %3553 }
0x203a   :  { %v2296_v10 = vpop.permute.xlu0 %2295 }
0x203b   :  { %v2298_v11 = vadd.f32 %v2296_v10, %v2292_v9  ;;  %v2634_v10 = vld [vmem:[%s4257_s5 + $0x20] sm:$0xff] }
0x203d   :  { %3555 = vtanh.f32 %v2298_v11 }
0x2047   :  { %v3556_v55 = vpop.eup %3555 }
0x2048   :  { %v2300_v20 = vmul.f32 %v3556_v55, %v3554_v13  ;;  %v2636_v55 = vld [vmem:[%s4257_s5 + $0x30] sm:$0xff] }
0x204a   :  { %2302 = vrot.lane.b32.xlu1 %v2300_v20, %s3685_s10  ;;  %2306 = vst.msk [vmem:[#allocation2 + $0x18] sm:$0xff] %vm409_vm0, %v2300_v20  ;;  %v2637_v20 = vld [vmem:[%s4257_s5 + $0x38] sm:$0xff] }
0x20bc   :  { %v2303_v21 = vpop.permute.xlu1 %2302 }
0x20bd   :  { %2305 = vst.msk [vmem:[#allocation2 + $0x30] sm:$0xff] %vm305_vm1, %v2303_v21  ;;  %2792 = vmatmul.mubr.msk.f32.vlgmr.msra.gmra.mrb[16].mxu1 %vm305_vm1, %v2303_v21  ;;  %v3249_v21 = vpack.c.bf16 %v2637_v20, %v2636_v55 }
0x20be   :  { %3210 = vmatpush1.bf16.msra.mxu1 %v3994_v14  ;;  %2480 = vmatprep.mubr.f32.mxu1 %v3684_v7 }
0x20bf   :  { %3212 = vmatprep.subr.bf16.mxu1 %v3996_v16 }
0x20c2   :  { %3214 = vmatpush1.bf16.msra.mxu1 %v4000_v24 }
0x20c3   :  { %3216 = vmatprep.subr.bf16.mxu1 %v4003_v25 }
0x20c6   :  { %3218 = vmatpush1.bf16.msra.mxu1 %v4007_v33 }
0x20c7   :  { %3220 = vmatprep.subr.bf16.mxu1 %v4010_v27 }
0x20ca   :  { %3222 = vmatpush1.bf16.msra.mxu1 %v4014_v38 }
0x20cb   :  { %3224 = vmatprep.subr.bf16.mxu1 %v3988_v61 }
0x2190   :  { %v2377_v22 = vpop.f32.mrb[16].mxu1 }
0x2191   :  { %v3299_v23 = vadd.f32 %v2377_v22, %v4042_v48  ;;  %v2379_v26 = vpop.f32.mrb[17].mxu1  ;;  %v2638_v22 = vld [vmem:[%s4257_s5 + $0x40] sm:$0xff] }
0x2192   :  { %v3300_v30 = vadd.f32 %v2379_v26, %v4047_v45 }
0x2193   :  { %v2793_v29 = vmul.f32 -1.442695, %v3299_v23  ;;  %v2639_v23 = vld [vmem:[%s4257_s5 + $0x48] sm:$0xff] }
0x2194   :  { %v2794_v39 = vmul.f32 -1.442695, %v3300_v30  ;;  %v3252_v26 = vpack.c.bf16 %v2639_v23, %v2638_v22 }
0x2195   :  { %3557 = vpow2.f32 %v2793_v29 }
0x2196   :  { %3559 = vtanh.f32 %v3300_v30 }
0x219f   :  { %v3558_v31 = vpop.eup %3557 }
0x21a0   :  { %v2387_v32 = vadd.f32 1.0, %v3558_v31  ;;  %v3560_v35 = vpop.eup %3559 }
0x21a2   :  { %3561 = vrcp.f32 %v2387_v32 }
0x21a3   :  { %3563 = vpow2.f32 %v2794_v39  ;;  %v2641_v39 = vld [vmem:[%s4257_s5 + $0x58] sm:$0xff] }
0x21ac   :  { %v3562_v18 = vpop.eup %3561 }
0x21ad   :  { %v2398_v36 = vmul.f32 %v3562_v18, %v3560_v35  ;;  %v3564_v61 = vpop.eup %3563  ;;  %v2397_v40 = vmul.f32 %v3562_v18, %v2298_v11  ;;  %v2635_v11 = vld [vmem:[%s4257_s5 + $0x28] sm:$0xff] }
0x21ae   :  { %v2394_v19 = vadd.f32 1.0, %v3564_v61  ;;  %v3246_v13 = vpack.c.bf16 %v2635_v11, %v2634_v10  ;;  %v2642_v61 = vld [vmem:[%s4257_s5 + $0x60] sm:$0xff] }
0x21af   :  { %2400 = vrot.lane.b32.xlu0 %v2398_v36, %s3685_s10  ;;  %v2640_v36 = vld [vmem:[%s4257_s5 + $0x50] sm:$0xff] }
0x21b0   :  { %3565 = vrcp.f32 %v2394_v19  ;;  %v3255_v19 = vpack.c.bf16 %v2641_v39, %v2640_v36 }
0x21ba   :  { %v3566_v43 = vpop.eup %3565 }
0x2221   :  { %v2401_v41 = vpop.permute.xlu0 %2400 }
0x2222   :  { %v2403_v42 = vadd.f32 %v2401_v41, %v2397_v40  ;;  %v2643_v40 = vld [vmem:[%s4257_s5 + $0x68] sm:$0xff] }
0x2223   :  { %v3258_v41 = vpack.c.bf16 %v2643_v40, %v2642_v61 }
0x2224   :  { %3567 = vtanh.f32 %v2403_v42 }
0x222e   :  { %v3568_v44 = vpop.eup %3567 }
0x222f   :  { %v2405_v46 = vmul.f32 %v3568_v44, %v3566_v43  ;;  %v2645_v43 = vld [vmem:[%s4257_s5 + $0x78] sm:$0xff] }
0x2231   :  { %2407 = vrot.lane.b32.xlu1 %v2405_v46, %s3685_s10  ;;  %2411 = vst.msk [vmem:[#allocation2 + $0x10] sm:$0xff] %vm409_vm0, %v2405_v46 }
0x22a3   :  { %v2408_v47 = vpop.permute.xlu1 %2407 }
0x22a4   :  { %2410 = vst.msk [vmem:[#allocation2 + $0x38] sm:$0xff] %vm305_vm1, %v2408_v47  ;;  %2795 = vmatmul.mubr.msk.f32.vlgmr.msra.gmra.mrb[18].mxu1 %vm305_vm1, %v2408_v47 }
0x22a5   :  { %3226 = vmatpush1.bf16.msra.mxu1 %v3994_v14  ;;  %2585 = vmatprep.mubr.f32.mxu1 %v3684_v7 }
0x22a6   :  { %3228 = vmatprep.subr.bf16.mxu1 %v3996_v16 }
0x22a9   :  { %3230 = vmatpush1.bf16.msra.mxu1 %v4000_v24 }
0x22aa   :  { %3232 = vmatprep.subr.bf16.mxu1 %v4003_v25 }
0x22ad   :  { %3234 = vmatpush1.bf16.msra.mxu1 %v4007_v33 }
0x22ae   :  { %3236 = vmatprep.subr.bf16.mxu1 %v4010_v27 }
0x22b1   :  { %3238 = vmatpush1.bf16.msra.mxu1 %v4014_v38 }
0x2377   :  { %v2482_v28 = vpop.f32.mrb[18].mxu1 }
0x2378   :  { %v3301_v49 = vadd.f32 %v2482_v28, %v4042_v48  ;;  %v2484_v34 = vpop.f32.mrb[19].mxu1 }
0x2379   :  { %v3302_v14 = vadd.f32 %v2484_v34, %v4047_v45 }
0x237a   :  { %v2796_v37 = vmul.f32 -1.442695, %v3301_v49  ;;  %v2624_v49 = vstv %s2623_s8 }
0x237b   :  { %v2797_v33 = vmul.f32 -1.442695, %v3302_v14 }
0x237c   :  { %3569 = vpow2.f32 %v2796_v37  ;;  %v2627_v37 = vstv %s2801_s9 }
0x237d   :  { %3571 = vtanh.f32 %v3302_v14 }
0x2386   :  { %v3570_v51 = vpop.eup %3569 }
0x2387   :  { %v2492_v16 = vadd.f32 1.0, %v3570_v51  ;;  %v3572_v24 = vpop.eup %3571 }
0x2389   :  { %3573 = vrcp.f32 %v2492_v16 }
0x238a   :  { %3575 = vpow2.f32 %v2797_v33 }
0x2393   :  { %v3574_v25 = vpop.eup %3573 }
0x2394   :  { %v2503_v50 = vmul.f32 %v3574_v25, %v3572_v24  ;;  %v3576_v27 = vpop.eup %3575  ;;  %v2502_v53 = vmul.f32 %v3574_v25, %v2403_v42  ;;  %v2644_v42 = vld [vmem:[%s4257_s5 + $0x70] sm:$0xff]  ;;  %v2802_v24 = vld [vmem:[%s4258_s6] ss:$0 sm:$0xff] }
0x2395   :  { %v2499_v38 = vadd.f32 1.0, %v3576_v27  ;;  %v3261_v44 = vpack.c.bf16 %v2645_v43, %v2644_v42 }
0x2396   :  { %2505 = vrot.lane.b32.xlu0 %v2503_v50, %s3685_s10 }
0x2397   :  { %3577 = vrcp.f32 %v2499_v38 }
0x23a1   :  { %v3578_v15 = vpop.eup %3577 }
0x2408   :  { %v2506_v62 = vpop.permute.xlu0 %2505 }
0x2409   :  { %v2508_v52 = vadd.f32 %v2506_v62, %v2502_v53 }
0x240b   :  { %3579 = vtanh.f32 %v2508_v52 }
0x2415   :  { %v3580_v54 = vpop.eup %3579 }
0x2416   :  { %v2510_v56 = vmul.f32 %v3580_v54, %v3578_v15 }
0x2418   :  { %2512 = vrot.lane.b32.xlu1 %v2510_v56, %s3685_s10  ;;  %2516 = vst.msk [vmem:[#allocation2 + $0x8] sm:$0xff] %vm409_vm0, %v2510_v56 }
0x248a   :  { %v2513_v57 = vpop.permute.xlu1 %2512 }
0x248b   :  { %2515 = vst.msk [vmem:[#allocation2 + $0x40] sm:$0xff] %vm305_vm1, %v2513_v57  ;;  %2798 = vmatmul.mubr.msk.f32.vlgmr.msra.gmra.mrb[20].mxu1 %vm305_vm1, %v2513_v57 }
0x255e   :  { %v2587_v58 = vpop.f32.mrb[20].mxu1 }
0x255f   :  { %v3303_v59 = vadd.f32 %v2587_v58, %v4042_v48  ;;  %v2589_v12 = vpop.f32.mrb[21].mxu1  ;;  %v2631_v48 = vld [vmem:[%s4257_s5 + $0x8] sm:$0xff] }
0x2560   :  { %v3304_v60 = vadd.f32 %v2589_v12, %v4047_v45  ;;  %v2632_v45 = vld [vmem:[%s4257_s5 + $0x10] sm:$0xff]  ;;  %v3240_v6 = vpack.c.bf16 %v2631_v48, %v2630_v4 }
0x2561   :  { %v2799_v17 = vmul.f32 -1.442695, %v3303_v59  ;;  %v3243_v9 = vpack.c.bf16 %v2633_v8, %v2632_v45 }
0x2562   :  { %3241 = vmatpush3.bf16.msra.mxu0 %v3240_v6  ;;  %v2800_v29 = vmul.f32 -1.442695, %v3304_v60 }
0x2563   :  { %3581 = vpow2.f32 %v2799_v17  ;;  %3242 = vmatprep.subr.bf16.mxu0 %v3686_v5 }
0x2564   :  { %3583 = vtanh.f32 %v3304_v60 }
0x2566   :  { %3244 = vmatpush3.bf16.msra.mxu0 %v3243_v9 }
0x2567   :  { %3245 = vmatprep.subr.bf16.mxu0 %v3686_v5 }
0x256a   :  { %3247 = vmatpush3.bf16.msra.mxu0 %v3246_v13 }
0x256b   :  { %3248 = vmatprep.subr.bf16.mxu0 %v3686_v5 }
0x256d   :  { %v3582_v63 = vpop.eup %3581 }
0x256e   :  { %v2597_v0 = vadd.f32 1.0, %v3582_v63  ;;  %v3584_v1 = vpop.eup %3583  ;;  %3250 = vmatpush3.bf16.msra.mxu0 %v3249_v21 }
0x256f   :  { %3251 = vmatprep.subr.bf16.mxu0 %v3686_v5 }
0x2570   :  { %3585 = vrcp.f32 %v2597_v0 }
0x2571   :  { %3587 = vpow2.f32 %v2800_v29 }
0x2572   :  { %3253 = vmatpush3.bf16.msra.mxu0 %v3252_v26 }
0x2573   :  { %3254 = vmatprep.subr.bf16.mxu0 %v3686_v5 }
0x2576   :  { %3256 = vmatpush3.bf16.msra.mxu0 %v3255_v19 }
0x2577   :  { %3257 = vmatprep.subr.bf16.mxu0 %v3686_v5 }
0x257a   :  { %v3586_v2 = vpop.eup %3585  ;;  %3259 = vmatpush3.bf16.msra.mxu0 %v3258_v41 }
0x257b   :  { %v2608_v3 = vmul.f32 %v3586_v2, %v3584_v1  ;;  %v3588_v30 = vpop.eup %3587  ;;  %v2607_v32 = vmul.f32 %v3586_v2, %v2508_v52  ;;  %3260 = vmatprep.subr.bf16.mxu0 %v3686_v5 }
0x257c   :  { %v2604_v31 = vadd.f32 1.0, %v3588_v30 }
0x257d   :  { %2610 = vrot.lane.b32.xlu0 %v2608_v3, %s3685_s10 }
0x257e   :  { %3589 = vrcp.f32 %v2604_v31  ;;  %3262 = vmatpush3.bf16.msra.mxu0 %v3261_v44 }
0x2588   :  { %v3590_v46 = vpop.eup %3589 }
0x25ef   :  { %v2611_v35 = vpop.permute.xlu0 %2610 }
0x25f0   :  { %v2613_v18 = vadd.f32 %v2611_v35, %v2607_v32 }
0x25f2   :  { %3591 = vtanh.f32 %v2613_v18 }
0x25fc   :  { %v3592_v47 = vpop.eup %3591 }
0x25fd   :  { %v2615_v28 = vmul.f32 %v3592_v47, %v3590_v46 }
0x25ff   :  { %2617 = vrot.lane.b32.xlu1 %v2615_v28, %s3685_s10  ;;  %2621 = vst.msk [vmem:[#allocation2] sm:$0xff] %vm409_vm0, %v2615_v28  ;;  %s2731_s10 = sshll.u32 %s3688_s12, 4  ;;  %s2732_s10 = int_to_ptr.vmem [resolvable:$true] %s2731_s10 }
0x2600   :  { %s3649_s0 = scalar_lea.vmem %s2732_s10, 128  ;;  %p3654_p8 = scmp.lt.s32.totalorder %s2732_s10, %s2732_s10 }
0x2601   :  { %p3650_p7 = scmp.ne.s32.totalorder %s2732_s10, %s3649_s0  ;;  %p3655_p9 = scmp.lt.s32.totalorder %s3649_s0, %s3649_s0 }
0x2603   :  { %p3656_p10 = por %p3655_p9, %p3654_p8 }
0x2605   :  { %p3657_p11 = pnand %p3656_p10, %p3650_p7 }
0x2671   :  { %v2618_v7 = vpop.permute.xlu1 %2617 }
0x2672   :  { %2620 = vst.msk [vmem:[#allocation2 + $0x48] sm:$0xff] %vm305_vm1, %v2618_v7 }
0x2679   :  { %v2622_v34 = vld [vmem:[#allocation2 + $0x48] sm:$0xff] }
0x267a   :  { %v2625_v14 = vmul.f32 %v2624_v49, %v2622_v34 }
0x267c   :  { %v2628_v51 = vadd.f32 %v2627_v37, %v2625_v14 }
0x267e   :  { %v2629_v16 = vmax.f32 %v2628_v51, 0.0 }
0x2680   :  { %2853 = vmatmul.mubr.f32.vlgmr.msra.gmra.mrb[20].mxu0 %v2629_v16 }
0x2753   :  { %v2719_v25 = vpop.f32.mrb[20].mxu0 }
0x2754   :  { %v2720_v50 = vadd.f32 %v2802_v24, %v2719_v25  ;;  %v2854_v33 = vpop.f32.mrb[21].mxu0 }
0x2756   :  { %2724 = vst.msk [vmem:[#allocation11] sm:$0xff] %vm2723_vm3, %v2720_v50 }
0x2757   :  { %3660 = shalt.err (!%p3657_p11)
}
0x2758   :  { %s3661_s15 = scalar_lea.hbm %s4259_s7, 128 }
0x2759   :  { %p3662_p12 = scmp.ne.s32.totalorder %s4259_s7, %s3661_s15  ;;  %p3665_p13 = scmp.lt.u32.totalorder %s3661_s15, %s4259_s7 }
0x275b   :  { %p3667_p0 = pnand %p3665_p13, %p3662_p12 }
0x275d   :  { %3670 = shalt.err (!%p3667_p0)
}
0x275e   :  { %2734 = dma.vmem_to_hbm [thread:$0]  %s2732_s10, 128, %s4259_s7, [#allocation6]  }
0x275f   :  { %3677 = dma.done.wait [#allocation6], 128  }
0x2760   :  { %3678 = vsyncadd [#allocation6], 4294967168 }
0x2761   :  { %2738 = vsyncpa [#allocation5], 1 }
0x2762   :  { %2739 = vsyncpa [#allocation10], 1 }
0x2763   :  { %2740 = vsyncpa [#allocation6], 1 }
0x2764   :  { %2741 = vsyncpa [#allocation7], 1 }

</bundles_post_ra>
